<compile_context>
chip_gen: v7x
topology: tpu7x:2x2x1
jax: 0.10.0
libtpu: 0.0.40
codegen_flags: <defaults>
</compile_context>

<pallas_src>
import functools

import jax
import jax.numpy as jnp
from jax import lax
from jax.experimental import pallas as pl
from jax.experimental.pallas import tpu as pltpu


# ---------------------------------------------------------------------------
# Fused kernel: one (batch, input-row-tile) step.
#   xc_ref : (1, th*W, C1)      tile of input pixels, rows = (i, j), ones channel last
#   xt_ref : (1, 1, W, C1)      input row  t*th - 1  (all-zero row when out of range)
#   xb_ref : (1, 1, W, C1)      input row (t+1)*th   (all-zero row when out of range)
#   w_ref  : (n_shifts, C1, n_out)  fused weights, columns ordered (r, rw, co)
#   o_ref  : (1, th*W, n_out)   output block, rows = (i, j), cols = (r, rw, co)
# ---------------------------------------------------------------------------
def _upsample_fused_kernel(xc_ref, xt_ref, xb_ref, w_ref, o_ref, *,
                           shifts, th, W, n_out):
    f32 = jnp.float32
    rows = th * W
    C1 = xc_ref.shape[-1]

    top = xt_ref[0, 0].astype(f32)                       # (W, C1)
    mid = xc_ref[0].astype(f32)                          # (th*W, C1)
    bot = xb_ref[0, 0].astype(f32)                       # (W, C1)
    zrow = jnp.zeros((1, C1), f32)
    # ext rows: [pad, halo-top (W), tile (th*W), halo-bottom (W), pad]
    ext = jnp.concatenate([zrow, top, mid, bot, zrow], axis=0)

    # Column index j of each LHS row (row = i_local*W + j); used to zero the
    # width-boundary contributions of the j +/- 1 shifted terms.
    col = lax.broadcasted_iota(jnp.int32, (rows, 1), 0) % W

    acc = jnp.zeros((rows, n_out), f32)
    for m, di, dj in shifts:                             # static python loop (<= 9 terms)
        start = 1 + (1 + di) * W + dj                    # static offset into ext
        lhs = ext[start:start + rows, :]                 # x[i + di, j + dj, :]
        if dj == -1:
            lhs = jnp.where(col == 0, 0.0, lhs)          # j - 1 out of range -> 0
        elif dj == 1:
            lhs = jnp.where(col == W - 1, 0.0, lhs)      # j + 1 out of range -> 0
        acc = acc + jnp.dot(lhs, w_ref[m],
                            preferred_element_type=f32,
                            precision=lax.Precision.HIGHEST)
    o_ref[0] = acc.astype(o_ref.dtype)


def _phase_set(r, d, s, pL):
    """Transposed-conv kernel phases contributed by the input pixel at offset d in {-1,0,1}."""
    a0 = (r - pL) % s
    d_near = -1 if r < pL else 0
    if d == d_near:
        return list(range(a0, s))
    if d == d_near + 1:
        return list(range(0, a0))
    return []


def _build_fused_weights(weight, bias, s):
    """Fold (transposed conv + s x s box sum + bias) into per-shift (Cin+1, s*s*Cout) mats."""
    Cin, Cout = weight.shape[0], weight.shape[1]
    pL = s // 2
    w32 = weight.astype(jnp.float32)                     # (Cin, Cout, s, s)
    b32 = (jnp.zeros((Cout,), jnp.float32) if bias is None
           else bias.astype(jnp.float32))                # (Cout,)
    n_out = s * s * Cout

    mats, shifts = [], []
    for di in (-1, 0, 1):
        for dj in (-1, 0, 1):
            cols, nonzero = [], False
            for r in range(s):
                for rw in range(s):
                    SA = _phase_set(r, di, s, pL)
                    SD = _phase_set(rw, dj, s, pL)
                    if SA and SD:
                        wsum = sum(w32[:, :, a, d] for a in SA for d in SD)   # (Cin, Cout)
                        brow = float(len(SA) * len(SD)) * b32                 # (Cout,)
                        nonzero = True
                    else:
                        wsum = jnp.zeros((Cin, Cout), jnp.float32)
                        brow = jnp.zeros((Cout,), jnp.float32)
                    cols.append(jnp.concatenate([wsum, brow[None, :]], axis=0))  # (Cin+1, Cout)
            if nonzero:
                shifts.append((len(mats), di, dj))
                mats.append(jnp.concatenate(cols, axis=1))                    # (Cin+1, n_out)
    return jnp.stack(mats, axis=0), tuple(shifts), n_out


def _pick_row_tile(B, H, W, n_out, itemsize, budget_bytes=2 * 1024 * 1024):
    """Largest divisor of H whose (th*W, n_out) output block stays under the VMEM budget."""
    divisors = [d for d in range(1, H + 1) if H % d == 0]
    valid = [d for d in divisors if (d * W) % 8 == 0 or d == H]      # (8,128) block rule
    fits = [d for d in valid if d * W * n_out * itemsize <= budget_bytes] or [min(valid)]
    th = max(fits)
    if B * (H // th) < 2:                       # keep >= 2 grid steps (megacore / pipelining)
        smaller = [d for d in fits if B * (H // d) >= 2]
        if smaller:
            th = max(smaller)
    return th


@functools.partial(jax.jit, static_argnames=("stride", "order"))
def upsampling2d_pallas(x, weight, bias, *, stride, order=0):
    """UpSampling2d forward (hold_mode='hold_last', bias_mode='bias_first').

    x      : (B, Cin, H, W)    NCHW
    weight : (Cin, Cout, k, k) ConvTranspose2d weight with k == stride
    bias   : (Cout,)           ConvTranspose2d bias (or None)
    returns: (B, Cout, stride*H, stride*W) NCHW
    """
    s = int(stride)
    B, Cin, H, W = x.shape
    wCin, Cout, kh, kw = weight.shape
    if order != 0 or kh != s or kw != s or wCin != Cin:
        # TODO(synk): kernel_size != stride, dilation/groups != 1, order > 0 hold
        # kernels and 'circular' padding are not implemented in the Pallas path.
        raise NotImplementedError("Pallas UpSampling2d supports kernel_size == stride, order == 0")

    dtype = x.dtype
    C1 = Cin + 1

    # ---- fused weights (transposed conv + box filter + bias), tiny, built in XLA ----
    w_fused, shifts, n_out = _build_fused_weights(weight, bias, s)

    # ---- input prep: all passes are over the SMALL input tensor only ----
    x_nhwc = jnp.transpose(x, (0, 2, 3, 1))
    x_aug = jnp.concatenate([x_nhwc, jnp.ones((B, H, W, 1), dtype)], axis=-1)   # (B,H,W,C1)
    x_rows = x_aug.reshape(B, H * W, C1)                                        # center tiles
    x_hpad = jnp.pad(x_aug, ((0, 0), (1, 1), (0, 0), (0, 0)))                   # halo rows

    th = _pick_row_tile(B, H, W, n_out, x.dtype.itemsize)
    n_tiles = H // th
    rows_per_tile = th * W

    kernel = functools.partial(_upsample_fused_kernel,
                               shifts=shifts, th=th, W=W, n_out=n_out)

    out = pl.pallas_call(
        kernel,
        out_shape=jax.ShapeDtypeStruct((B, H * W, n_out), dtype),
        grid=(B, n_tiles),
        in_specs=[
            pl.BlockSpec((1, rows_per_tile, C1), lambda b, t: (b, t, 0)),
            pl.BlockSpec((1, 1, W, C1), lambda b, t: (b, t * th, 0, 0)),         # row t*th - 1
            pl.BlockSpec((1, 1, W, C1), lambda b, t: (b, (t + 1) * th + 1, 0, 0)),  # row (t+1)*th
            pl.BlockSpec(w_fused.shape, lambda b, t: (0, 0, 0)),
        ],
        out_specs=pl.BlockSpec((1, rows_per_tile, n_out), lambda b, t: (b, t, 0)),
        compiler_params=pltpu.CompilerParams(
            dimension_semantics=("parallel", "parallel"),
            vmem_limit_bytes=32 * 1024 * 1024),
        cost_estimate=pl.CostEstimate(
            flops=2 * B * H * W * C1 * n_out * len(shifts),
            transcendentals=0,
            bytes_accessed=(B * H * W * C1 + B * H * W * n_out) * x.dtype.itemsize
                           + w_fused.size * 4),
    )(x_rows, x_hpad, x_hpad, w_fused)

    # ---- layout epilogue: free reshapes + ONE transpose of the big tensor ----
    # out[b, i*W + j, (r*s + rw)*Cout + co] == z[b, co, s*i + r, s*j + rw]
    z = out.reshape(B, H, W, s, s, Cout)
    z = z.transpose(0, 5, 1, 3, 2, 4)            # (B, Cout, H, s, W, s)
    # TODO(synk): returning channel-last output would remove this last full-tensor
    # transpose; it is kept to match the PyTorch module's NCHW output exactly.
    return z.reshape(B, Cout, s * H, s * W)


def upsampling2d_reference(x, weight, bias, *, stride):
    """Pure-JAX reference: ConvTranspose2d(k=s, stride=s, pad=0) then HoldConv2d(order=0)."""
    s = int(stride)
    Cout = weight.shape[1]
    hi = jax.lax.Precision.HIGHEST
    # ConvTranspose2d == input-dilated conv with the spatially flipped, IO-transposed kernel.
    w_flip = jnp.flip(weight, axis=(2, 3)).transpose(1, 0, 2, 3)        # (Cout, Cin, s, s)
    y = jax.lax.conv_general_dilated(
        x, w_flip, window_strides=(1, 1),
        padding=((s - 1, s - 1), (s - 1, s - 1)),
        lhs_dilation=(s, s), rhs_dilation=(1, 1),
        dimension_numbers=("NCHW", "OIHW", "NCHW"), precision=hi)
    y = y + bias[None, :, None, None]
    # HoldConv2d: F.pad(left=s//2, right=(s-1)//2, top=s//2, bottom=(s-1)//2) + depthwise ones(s,s).
    y = jnp.pad(y, ((0, 0), (0, 0), (s // 2, (s - 1) // 2), (s // 2, (s - 1) // 2)))
    hold_k = jnp.ones((Cout, 1, s, s), x.dtype)
    return jax.lax.conv_general_dilated(
        y, hold_k, window_strides=(1, 1), padding="VALID",
        dimension_numbers=("NCHW", "OIHW", "NCHW"),
        feature_group_count=Cout, precision=hi)


if __name__ == "__main__":
    key = jax.random.PRNGKey(0)
    kx, kw_, kb = jax.random.split(key, 3)

    # Small config consistent with the module: NCHW input, 2x up-sampling.
    B, Cin, H, W = 2, 4, 16, 16
    Cout, stride = 8, 2

    x = jax.random.normal(kx, (B, Cin, H, W), jnp.float32)
    weight = 0.25 * jax.random.normal(kw_, (Cin, Cout, stride, stride), jnp.float32)
    bias = 0.1 * jax.random.normal(kb, (Cout,), jnp.float32)

    z = upsampling2d_pallas(x, weight, bias, stride=stride)
    jax.block_until_ready(z)

    z_ref = upsampling2d_reference(x, weight, bias, stride=stride)
    assert z.shape == (B, Cout, stride * H, stride * W), z.shape
    max_err = float(jnp.max(jnp.abs(z - z_ref)))
    assert bool(jnp.allclose(z, z_ref, rtol=2e-2, atol=2e-2)), f"max abs err = {max_err}"

    print("KERNEL_OK")
</pallas_src>

<mosaic_0001>
module attributes {stable_mosaic.version = 11 : i64} {
  func.func @_upsample_fused_kernel(%arg0: i32, %arg1: i32, %arg2: memref<1x256x5xf32, #tpu.memory_space<vmem>>, %arg3: memref<1x1x16x5xf32, #tpu.memory_space<vmem>>, %arg4: memref<1x1x16x5xf32, #tpu.memory_space<vmem>>, %arg5: memref<4x5x32xf32, #tpu.memory_space<vmem>>, %arg6: memref<1x256x32xf32, #tpu.memory_space<vmem>>) attributes {dimension_semantics = [#tpu.dimension_semantics<parallel>, #tpu.dimension_semantics<parallel>], iteration_bounds = array<i64: 2, 1>, scalar_prefetch = 0 : i64, scratch_operands = 0 : i64, tpu.core_type = #tpu.core_type<tc>, window_params = [{transform_indices = @transform_0, window_bounds = array<i64: 1, 256, 5>}, {transform_indices = @transform_1, window_bounds = array<i64: 1, 1, 16, 5>}, {transform_indices = @transform_2, window_bounds = array<i64: 1, 1, 16, 5>}, {pipeline_mode = #tpu.pipeline_mode<synchronous>, transform_indices = @transform_3, window_bounds = array<i64: 4, 5, 32>}, {transform_indices = @transform_4, window_bounds = array<i64: 1, 256, 32>}]} {
    %c0 = arith.constant 0 : index
    %c0_0 = arith.constant 0 : index
    %c0_1 = arith.constant 0 : index
    %c0_2 = arith.constant 0 : index
    %0 = vector.load %arg3[%c0, %c0_0, %c0_1, %c0_2] : memref<1x1x16x5xf32, #tpu.memory_space<vmem>>, vector<1x1x16x5xf32>
    %1 = vector.shape_cast %0 : vector<1x1x16x5xf32> to vector<16x5xf32>
    %c0_3 = arith.constant 0 : index
    %c0_4 = arith.constant 0 : index
    %c0_5 = arith.constant 0 : index
    %2 = vector.load %arg2[%c0_3, %c0_4, %c0_5] : memref<1x256x5xf32, #tpu.memory_space<vmem>>, vector<1x256x5xf32>
    %3 = vector.shape_cast %2 : vector<1x256x5xf32> to vector<256x5xf32>
    %c0_6 = arith.constant 0 : index
    %c0_7 = arith.constant 0 : index
    %c0_8 = arith.constant 0 : index
    %c0_9 = arith.constant 0 : index
    %4 = vector.load %arg4[%c0_6, %c0_7, %c0_8, %c0_9] : memref<1x1x16x5xf32, #tpu.memory_space<vmem>>, vector<1x1x16x5xf32>
    %5 = vector.shape_cast %4 : vector<1x1x16x5xf32> to vector<16x5xf32>
    %cst = arith.constant 0.000000e+00 : f32
    %6 = vector.broadcast %cst : f32 to vector<1x5xf32>
    %7 = tpu.concatenate %6, %1, %3, %5, %6 in 0 : vector<1x5xf32>, vector<16x5xf32>, vector<256x5xf32>, vector<16x5xf32>, vector<1x5xf32> -> vector<290x5xf32>
    %8 = tpu.iota {dimensions = array<i32: 0>} : vector<256x1xi32>
    %c16_i32 = arith.constant 16 : i32
    %c0_i32 = arith.constant 0 : i32
    %9 = arith.cmpi eq, %c16_i32, %c0_i32 : i32
    %c1_i32 = arith.constant 1 : i32
    %10 = arith.select %9, %c1_i32, %c16_i32 : i32
    %11 = vector.broadcast %10 : i32 to vector<256x1xi32>
    %12 = arith.remsi %8, %11 : vector<256x1xi32>
    %c0_i32_10 = arith.constant 0 : i32
    %13 = vector.broadcast %c0_i32_10 : i32 to vector<256x1xi32>
    %14 = arith.cmpi ne, %12, %13 : vector<256x1xi32>
    %c0_i32_11 = arith.constant 0 : i32
    %15 = vector.broadcast %c0_i32_11 : i32 to vector<256x1xi32>
    %16 = arith.cmpi slt, %12, %15 : vector<256x1xi32>
    %c0_i32_12 = arith.constant 0 : i32
    %17 = arith.cmpi slt, %10, %c0_i32_12 : i32
    %18 = vector.broadcast %17 : i1 to vector<256x1xi1>
    %19 = vector.broadcast %18 : vector<256x1xi1> to vector<256x1xi1>
    %20 = arith.xori %16, %19 : vector<256x1xi1>
    %21 = arith.andi %20, %14 : vector<256x1xi1>
    %22 = vector.broadcast %10 : i32 to vector<256x1xi32>
    %23 = arith.addi %12, %22 : vector<256x1xi32>
    %24 = arith.select %21, %23, %12 : vector<256x1xi1>, vector<256x1xi32>
    %cst_13 = arith.constant 0.000000e+00 : f32
    %25 = vector.broadcast %cst_13 : f32 to vector<256x32xf32>
    %26 = vector.extract_strided_slice %7 {offsets = [0, 0], sizes = [256, 5], strides = [1, 1]} : vector<290x5xf32> to vector<256x5xf32>
    %c0_i32_14 = arith.constant 0 : i32
    %27 = vector.broadcast %c0_i32_14 : i32 to vector<256x1xi32>
    %28 = arith.cmpi eq, %24, %27 : vector<256x1xi32>
    %cst_15 = arith.constant 0.000000e+00 : f32
    %29 = vector.shape_cast %28 : vector<256x1xi1> to vector<256x1xi1>
    %30 = vector.broadcast %29 : vector<256x1xi1> to vector<256x5xi1>
    %31 = vector.broadcast %cst_15 : f32 to vector<256x5xf32>
    %32 = arith.select %30, %31, %26 : vector<256x5xi1>, vector<256x5xf32>
    %c0_16 = arith.constant 0 : index
    %c0_17 = arith.constant 0 : index
    %c0_18 = arith.constant 0 : index
    %33 = vector.load %arg5[%c0_16, %c0_17, %c0_18] : memref<4x5x32xf32, #tpu.memory_space<vmem>>, vector<1x5x32xf32>
    %34 = vector.shape_cast %33 : vector<1x5x32xf32> to vector<5x32xf32>
    %cst_19 = arith.constant dense<0.000000e+00> : vector<256x32xf32>
    %35 = tpu.matmul %32, %34, %cst_19 {dimension_numbers = #tpu.dot_dimension_numbers<[1], [0], [0], [1], [0, 0, 1, 1], [], []>, precision = #tpu.contract_precision<fp32>} : vector<256x5xf32>, vector<5x32xf32>, vector<256x32xf32> -> vector<256x32xf32>
    %36 = arith.addf %25, %35 : vector<256x32xf32>
    %37 = vector.extract_strided_slice %7 {offsets = [1, 0], sizes = [256, 5], strides = [1, 1]} : vector<290x5xf32> to vector<256x5xf32>
    %c1 = arith.constant 1 : index
    %c0_20 = arith.constant 0 : index
    %c0_21 = arith.constant 0 : index
    %38 = vector.load %arg5[%c1, %c0_20, %c0_21] : memref<4x5x32xf32, #tpu.memory_space<vmem>>, vector<1x5x32xf32>
    %39 = vector.shape_cast %38 : vector<1x5x32xf32> to vector<5x32xf32>
    %cst_22 = arith.constant dense<0.000000e+00> : vector<256x32xf32>
    %40 = tpu.matmul %37, %39, %cst_22 {dimension_numbers = #tpu.dot_dimension_numbers<[1], [0], [0], [1], [0, 0, 1, 1], [], []>, precision = #tpu.contract_precision<fp32>} : vector<256x5xf32>, vector<5x32xf32>, vector<256x32xf32> -> vector<256x32xf32>
    %41 = arith.addf %36, %40 : vector<256x32xf32>
    %42 = vector.extract_strided_slice %7 {offsets = [16, 0], sizes = [256, 5], strides = [1, 1]} : vector<290x5xf32> to vector<256x5xf32>
    %c0_i32_23 = arith.constant 0 : i32
    %43 = vector.broadcast %c0_i32_23 : i32 to vector<256x1xi32>
    %44 = arith.cmpi eq, %24, %43 : vector<256x1xi32>
    %cst_24 = arith.constant 0.000000e+00 : f32
    %45 = vector.shape_cast %44 : vector<256x1xi1> to vector<256x1xi1>
    %46 = vector.broadcast %45 : vector<256x1xi1> to vector<256x5xi1>
    %47 = vector.broadcast %cst_24 : f32 to vector<256x5xf32>
    %48 = arith.select %46, %47, %42 : vector<256x5xi1>, vector<256x5xf32>
    %c2 = arith.constant 2 : index
    %c0_25 = arith.constant 0 : index
    %c0_26 = arith.constant 0 : index
    %49 = vector.load %arg5[%c2, %c0_25, %c0_26] : memref<4x5x32xf32, #tpu.memory_space<vmem>>, vector<1x5x32xf32>
    %50 = vector.shape_cast %49 : vector<1x5x32xf32> to vector<5x32xf32>
    %cst_27 = arith.constant dense<0.000000e+00> : vector<256x32xf32>
    %51 = tpu.matmul %48, %50, %cst_27 {dimension_numbers = #tpu.dot_dimension_numbers<[1], [0], [0], [1], [0, 0, 1, 1], [], []>, precision = #tpu.contract_precision<fp32>} : vector<256x5xf32>, vector<5x32xf32>, vector<256x32xf32> -> vector<256x32xf32>
    %52 = arith.addf %41, %51 : vector<256x32xf32>
    %53 = vector.extract_strided_slice %7 {offsets = [17, 0], sizes = [256, 5], strides = [1, 1]} : vector<290x5xf32> to vector<256x5xf32>
    %c3 = arith.constant 3 : index
    %c0_28 = arith.constant 0 : index
    %c0_29 = arith.constant 0 : index
    %54 = vector.load %arg5[%c3, %c0_28, %c0_29] : memref<4x5x32xf32, #tpu.memory_space<vmem>>, vector<1x5x32xf32>
    %55 = vector.shape_cast %54 : vector<1x5x32xf32> to vector<5x32xf32>
    %cst_30 = arith.constant dense<0.000000e+00> : vector<256x32xf32>
    %56 = tpu.matmul %53, %55, %cst_30 {dimension_numbers = #tpu.dot_dimension_numbers<[1], [0], [0], [1], [0, 0, 1, 1], [], []>, precision = #tpu.contract_precision<fp32>} : vector<256x5xf32>, vector<5x32xf32>, vector<256x32xf32> -> vector<256x32xf32>
    %57 = arith.addf %52, %56 : vector<256x32xf32>
    %c0_31 = arith.constant 0 : index
    %c0_32 = arith.constant 0 : index
    %c0_33 = arith.constant 0 : index
    %58 = vector.load %arg6[%c0_31, %c0_32, %c0_33] : memref<1x256x32xf32, #tpu.memory_space<vmem>>, vector<1x256x32xf32>
    %59 = vector.shape_cast %58 : vector<1x256x32xf32> to vector<256x32xf32>
    %60 = vector.shape_cast %57 : vector<256x32xf32> to vector<1x256x32xf32>
    tpu.vector_store %arg6[%c0_31, %c0_32, %c0_33], %60 {strides = array<i32>} : memref<1x256x32xf32, #tpu.memory_space<vmem>>, vector<1x256x32xf32>,
    return
  }
  func.func @transform_0(%arg0: i32, %arg1: i32) -> (i32, i32, i32) {
    %c0_i32 = arith.constant 0 : i32
    %c0_i32_0 = arith.constant 0 : i32
    return %arg0, %arg1, %c0_i32 : i32, i32, i32
  }
  func.func @transform_1(%arg0: i32, %arg1: i32) -> (i32, i32, i32, i32) {
    %c16_i32 = arith.constant 16 : i32
    %0 = arith.muli %arg1, %c16_i32 : i32
    %c0_i32 = arith.constant 0 : i32
    %c0_i32_0 = arith.constant 0 : i32
    %c0_i32_1 = arith.constant 0 : i32
    return %arg0, %0, %c0_i32, %c0_i32_0 : i32, i32, i32, i32
  }
  func.func @transform_2(%arg0: i32, %arg1: i32) -> (i32, i32, i32, i32) {
    %c1_i32 = arith.constant 1 : i32
    %0 = arith.addi %arg1, %c1_i32 : i32
    %c16_i32 = arith.constant 16 : i32
    %1 = arith.muli %0, %c16_i32 : i32
    %c1_i32_0 = arith.constant 1 : i32
    %2 = arith.addi %1, %c1_i32_0 : i32
    %c0_i32 = arith.constant 0 : i32
    %c0_i32_1 = arith.constant 0 : i32
    %c0_i32_2 = arith.constant 0 : i32
    return %arg0, %2, %c0_i32, %c0_i32_1 : i32, i32, i32, i32
  }
  func.func @transform_3(%arg0: i32, %arg1: i32) -> (i32, i32, i32) {
    %c0_i32 = arith.constant 0 : i32
    %c0_i32_0 = arith.constant 0 : i32
    %c0_i32_1 = arith.constant 0 : i32
    %c0_i32_2 = arith.constant 0 : i32
    return %c0_i32, %c0_i32_0, %c0_i32_1 : i32, i32, i32
  }
  func.func @transform_4(%arg0: i32, %arg1: i32) -> (i32, i32, i32) {
    %c0_i32 = arith.constant 0 : i32
    %c0_i32_0 = arith.constant 0 : i32
    return %arg0, %arg1, %c0_i32 : i32, i32, i32
  }
}

</mosaic_0001>

<bundles_post_ra>
// kernel: upsampling2d_pallas.1
= control target key start
LH: loop header
LB: loop body
LE: loop exit
PB: predicated region body
PF: predicated region fallthrough
CT: control target
= control target key end

     0   :  { %s11608_s15 = smov 0   ;;  %s11610_s16 = smov 0   ;;  %s13974_s0 = inlined_call_operand.vmem [shape: f32[2,256,5], index: 0, kind: input, shape index: {}]   ;;  %s13975_s1 = inlined_call_operand.vmem [shape: f32[2,18,16,5], index: 1, kind: input, shape index: {}, may-alias: {1,2}]   ;;  %s13976_s2 = inlined_call_operand.vmem [shape: f32[2,18,16,5], index: 2, kind: input, shape index: {}, may-alias: {1,2}]   ;;  %s13977_s3 = inlined_call_operand.vmem [shape: f32[4,5,32], index: 3, kind: input, shape index: {}]   ;;  %s13978_s4 = inlined_call_operand.vmem [shape: f32[2,256,32], index: 4, kind: output, shape index: {}]  }
   0x1   :  { %s11612_s17 = smov 0  }
   0x2 LB: > { %s26_s18 = sadd.s32 1, %s11577_s16  ;;  %p8788_p0 = scmp.ge.s32.totalorder %s11581_s17, 1  ;;  %s11581_s17 = sphi %s11612_s17, %s14_s17   ;;  %s11577_s16 = sphi %s11610_s16, %s15252_s16   ;;  %s11573_s15 = sphi %s11608_s15, %s15251_s15  }
   0x3   : > { %p28_p1 = scmp.ge.s32.totalorder %s26_s18, 2  ;;  %p231_p2 = scmp.lt.s32.totalorder %s11581_s17, 3 }
   0x5   : > { %s15254_s18 = smov (%p28_p1, %s26_s18), 0  ;;  %p232_p3 = pnand %p8788_p0, %p231_p2 }
   0x7   : > { %235 = sbr.rel (%p232_p3) target bundleno = 1106 (0x452), region = 36 }
   0xe   : > { %vm14221_vm0 = vcmask 1044480   ;;  %v8796_v0 = vld [vmem:[%s13977_s3 + $0x10] sm:$0x1f]  ;;  %v8795_v1 = vld [vmem:[%s13977_s3 + $0x8] sm:$0x1f]  ;;  %p288_p4 = scmp.lt.s32.totalorder %s11573_s15, 1  ;;  %v511_v2 = vlaneseq }
   0xf   : > { %v4984_v3 = vsel %vm14221_vm0, %v8796_v0, 0  ;;  %v1194_v4 = vsel %vm14221_vm0, %v8795_v1, 0  ;;  %vm14268_vm1 = vcmask 1040384   ;;  %vm14275_vm2 = vcmask 39936  }
  0x10   : > { %v11634_v5 = vand.u32 4294901760, %v4984_v3  ;;  %v11636_v6 = vand.u32 4294901760, %v1194_v4  ;;  %s15256_s15 = smov (!%p288_p4, %s11573_s15), 1  ;;  %v11640_v7 = vshrl.u32 %v511_v2, 7  ;;  %vm14250_vm3 = vcmask 1046528  }
  0x11   : > { %s8800_s23 = sshll.u32 %s15256_s15, 8  ;;  %s11532_s24 = smul.u32 288, %s15256_s15  ;;  %v14460_v25 = vmov 0  ;;  %v14466_v47 = vmov 0 }
  0x12   : > { %10196 = vmatprep.subr.mxu0 %v11634_v5  ;;  %9596 = vmatprep.subr.mxu1 %v11636_v6  ;;  %v548_v8 = vand.u32 15, %v11640_v7  ;;  %v11648_v9 = vsub.f32 %v1194_v4, %v11636_v6  ;;  %v11651_v10 = vsub.f32 %v4984_v3, %v11634_v5  ;;  %s11659_s27 = scalar_lea.vmem %s13974_s0, %s8800_s23  ;;  %v514_v11 = vadd.s32 16, %v11640_v7  ;;  %s13899_s19 = scalar_lea.vmem %s13978_s4, %s8800_s23 }
  0x13   : > { %10197 = vmatpush3.msra.mxu0 %v11634_v5  ;;  %9597 = vmatpush3.msra.mxu1 %v11636_v6  ;;  %s306_s30 = scalar_lea.vmem %s13975_s1, %s11532_s24  ;;  %v335_v12 = vld [vmem:[%s11659_s27] sm:$0xff]  ;;  %v336_v13 = vld [vmem:[%s11659_s27 + $0x8] sm:$0xff]  ;;  %v11677_v16 = vadd.s32 32, %v11640_v7  ;;  %v337_v21 = vld [vmem:[%s11659_s27 + $0x10] sm:$0xff]  ;;  %v11681_v22 = vadd.s32 48, %v11640_v7  ;;  %v11693_v30 = vadd.s32 64, %v11640_v7 }
  0x14   : > { %v11671_v14 = vand.u32 4294901760, %v11648_v9  ;;  %v11674_v15 = vand.u32 4294901760, %v11651_v10  ;;  %v333_v17 = vld [vmem:[%s306_s30] sm:$0xff]  ;;  %v334_v18 = vld [vmem:[%s306_s30 + $0x8] sm:$0xff]  ;;  %v409_v19 = vrot.slane %v335_v12, 7  ;;  %v410_v20 = vrot.slane %v336_v13, 7 }
  0x15   : > { %v371_v23 = vrot.slane %v333_v17, 7  ;;  %v372_v24 = vrot.slane %v334_v18, 7  ;;  %vm11683_vm4 = vcmp.eq.s32.totalorder %v548_v8, 0  ;;  %v562_v29 = vand.u32 15, %v514_v11  ;;  %v338_v39 = vld [vmem:[%s11659_s27 + $0x18] sm:$0xff]  ;;  %v339_v13 = vld [vmem:[%s11659_s27 + $0x20] sm:$0xff] }
  0x16   : > { %14458 = vst [vmem:[#allocation2_spill] sm:$0xff] %v11671_v14  ;;  %14459 = vst [vmem:[#allocation3_spill] sm:$0xff] %v11674_v15  ;;  %v14461_v25 = vsel %vm11683_vm4, 4294967295, %v14460_v25  ;;  %v1586_v26 = vsub.f32 %v11648_v9, %v11671_v14  ;;  %v411_v27 = vsel %vm14268_vm1, %v409_v19, %v410_v20  ;;  %v5376_v28 = vsub.f32 %v11651_v10, %v11674_v15  ;;  %s8802_s9 = sadd.s32 272, %s11532_s24 }
  0x17   : > { %14462 = vst [vmem:[#allocation4_spill] sm:$0xff] %v14461_v25  ;;  %v11696_v31 = vsel %vm14268_vm1, 0.0, %v371_v23  ;;  %v11699_v32 = vsel %vm14268_vm1, %v372_v24, %v409_v19  ;;  %v2985_v33 = vsel %vm14275_vm2, %v411_v27, 0  ;;  %v412_v34 = vrot.slane %v337_v21, 7  ;;  %s319_s12 = scalar_lea.vmem %s13976_s2, %s8802_s9 }
  0x18   : > { %14463 = vst [vmem:[#allocation5_spill] sm:$0xff] %v11696_v31  ;;  %14464 = vst [vmem:[#allocation6_spill] sm:$0xff] %v11699_v32  ;;  %v1062_v36 = vrot.slane %v11696_v31, 1  ;;  %v1065_v37 = vrot.slane %v11699_v32, 1  ;;  %v4853_v38 = vsel %vm11683_vm4, 0.0, %v11699_v32  ;;  %v11712_v41 = vand.u32 4294901760, %v2985_v33 }
  0x19   : > { %v4888_v40 = vsel %vm14275_vm2, %v4853_v38, 0  ;;  %v11715_v42 = vsel %vm14268_vm1, %v371_v23, %v372_v24  ;;  %v11717_v43 = vand.u32 4294901760, %v1586_v26  ;;  %v5377_v46 = vand.u32 4294901760, %v5376_v28 }
  0x1a   : > { %14465 = vst [vmem:[#allocation7_spill] sm:$0xff] %v11715_v42  ;;  %v11719_v44 = vand.u32 4294901760, %v4888_v40  ;;  %v1063_v45 = vrot.slane %v11715_v42, 1  ;;  %vm11722_vm5 = vcmp.eq.s32.totalorder %v562_v29, 0  ;;  %v1067_v48 = vrot.slane %v411_v27, 1  ;;  %v344_v42 = vld [vmem:[%s11659_s27 + $0x48] sm:$0xff] }
  0x1b   : > { %v14467_v47 = vsel %vm11722_vm5, 4294967295, %v14466_v47  ;;  %v11727_v49 = vsub.f32 %v2985_v33, %v11712_v41  ;;  %9646 = vmatprep.subr.mxu1 %v11717_v43  ;;  %v11731_v50 = vsel %vm14268_vm1, %v410_v20, %v412_v34  ;;  %v414_v51 = vrot.slane %v338_v39, 7  ;;  %10246 = vmatprep.subr.mxu0 %v5377_v46 }
  0x1c   : > { %14468 = vst [vmem:[#allocation8_spill] sm:$0xff] %v14467_v47  ;;  %14470 = vst [vmem:[#allocation10_spill] sm:$0xff] %v11731_v50  ;;  %v11734_v52 = vsub.f32 %v4888_v40, %v11719_v44  ;;  %v1064_v53 = vsel %vm14250_vm3, %v1062_v36, %v1063_v45  ;;  %v1066_v54 = vsel %vm14250_vm3, %v1063_v45, %v1065_v37  ;;  %v11739_v55 = vadd.s32 80, %v11640_v7 }
  0x1d   : > { %14469 = vst [vmem:[#allocation9_spill] sm:$0xff] %v11727_v49  ;;  %v11742_v56 = vand.u32 4294901760, %v11727_v49  ;;  %v1128_v57 = vsel %vm14275_vm2, %v1064_v53, 0  ;;  %v1130_v58 = vsel %vm14275_vm2, %v1066_v54, 0  ;;  %v1069_v59 = vrot.slane %v11731_v50, 1  ;;  %v340_v53 = vld [vmem:[%s11659_s27 + $0x28] sm:$0xff] }
  0x1e   : > { %14471 = vst [vmem:[#allocation11_spill] sm:$0xff] %v11734_v52  ;;  %v13982_v60 = vand.u32 4294901760, %v11734_v52  ;;  %v11748_v61 = vand.u32 4294901760, %v1128_v57  ;;  %v11750_v62 = vand.u32 4294901760, %v1130_v58  ;;  %v4855_v63 = vsel %vm11722_vm5, 0.0, %v11731_v50 }
  0x1f   : > { %14472 = vst [vmem:[#allocation12_spill] sm:$0xff] %v11742_v56  ;;  %v3173_v0 = vsub.f32 %v11727_v49, %v11742_v56  ;;  %v4894_v1 = vsel %vm14275_vm2, %v4855_v63, 0  ;;  %v415_v2 = vsel %vm14268_vm1, %v412_v34, %v414_v51  ;;  %v1068_v3 = vsel %vm14250_vm3, %v1065_v37, %v1067_v48 }
  0x20   : > { %v5055_v4 = vsub.f32 %v11734_v52, %v13982_v60  ;;  %v11764_v8 = vsub.f32 %v1128_v57, %v11748_v61  ;;  %v11767_v11 = vsub.f32 %v1130_v58, %v11750_v62  ;;  %v11769_v12 = vand.u32 4294901760, %v4894_v1  ;;  %v355_v52 = vld [vmem:[%s11659_s27 + $0xa0] sm:$0xff] }
  0x21   : > { %v11772_v17 = vand.u32 4294901760, %v3173_v0  ;;  %v1071_v18 = vrot.slane %v415_v2, 1  ;;  %v2991_v19 = vsel %vm14275_vm2, %v415_v2, 0  ;;  %v1132_v20 = vsel %vm14275_vm2, %v1068_v3, 0 }
  0x22   : > { %14473 = vst [vmem:[#allocation13_spill] sm:$0xff] %v11764_v8  ;;  %14474 = vst [vmem:[#allocation14_spill] sm:$0xff] %v11767_v11  ;;  %v5056_v21 = vand.u32 4294901760, %v5055_v4  ;;  %v13981_v23 = vand.u32 4294901760, %v11764_v8  ;;  %v13979_v24 = vand.u32 4294901760, %v11767_v11  ;;  %v11779_v26 = vsub.f32 %v4894_v1, %v11769_v12 }
  0x23   : > { %14475 = vst [vmem:[#allocation15_spill] sm:$0xff] %v11772_v17  ;;  %v11781_v27 = vand.u32 4294901760, %v2991_v19  ;;  %v11783_v28 = vand.u32 4294901760, %v1132_v20  ;;  %v1070_v29 = vsel %vm14250_vm3, %v1067_v48, %v1069_v59  ;;  %v416_v33 = vrot.slane %v339_v13, 7 }
  0x24   : > { %14476 = vst [vmem:[#allocation16_spill] sm:$0xff] %v11779_v26  ;;  %10198 = vmatprep.mubr.f32.mxu0 %v5056_v21  ;;  %v1265_v34 = vsub.f32 %v11764_v8, %v13981_v23  ;;  %v1275_v36 = vsub.f32 %v11767_v11, %v13979_v24  ;;  %v13980_v37 = vand.u32 4294901760, %v11779_v26  ;;  %v1134_v38 = vsel %vm14275_vm2, %v1070_v29, 0  ;;  %v353_v11 = vld [vmem:[%s11659_s27 + $0x90] sm:$0xff] }
  0x25   : > { %10199 = vmatmul.mubr.f32.vlgmr.msra.gmra.mrb[0].mxu0 %v11772_v17  ;;  %v11796_v39 = vsub.f32 %v2991_v19, %v11781_v27  ;;  %v11799_v40 = vsub.f32 %v1132_v20, %v11783_v28  ;;  %v11801_v45 = vand.u32 4294901760, %v1134_v38  ;;  %v11804_v48 = vsel %vm14268_vm1, %v414_v51, %v416_v33 }
  0x26   : > { %14479 = vst [vmem:[#allocation19_spill] sm:$0xff] %v11804_v48  ;;  %v1266_v54 = vand.u32 4294901760, %v1265_v34  ;;  %v1276_v57 = vand.u32 4294901760, %v1275_v36  ;;  %10247 = vmatpush3.msra.mxu0 %v5377_v46  ;;  %v5075_v58 = vsub.f32 %v11779_v26, %v13980_v37  ;;  %v576_v63 = vand.u32 15, %v11677_v16 }
  0x27   : > { %14477 = vst [vmem:[#allocation17_spill] sm:$0xff] %v11796_v39  ;;  %14478 = vst [vmem:[#allocation18_spill] sm:$0xff] %v11799_v40  ;;  %v11812_v0 = vand.u32 4294901760, %v11796_v39  ;;  %v11815_v1 = vand.u32 4294901760, %v11799_v40  ;;  %v11818_v2 = vsub.f32 %v1134_v38, %v11801_v45  ;;  %v1073_v51 = vrot.slane %v11804_v48, 1  ;;  %10296 = vmatprep.subr.mxu0 %v11651_v10 }
  0x28   : > { %9598 = vmatprep.mubr.f32.mxu1 %v1266_v54  ;;  %v5076_v46 = vand.u32 4294901760, %v5075_v58  ;;  %vm11822_vm6 = vcmp.eq.s32.totalorder %v576_v63, 0  ;;  %v14483_v3 = vmov 0  ;;  %v418_v16 = vrot.slane %v340_v53, 7  ;;  %v341_v58 = vld [vmem:[%s11659_s27 + $0x30] sm:$0xff] }
  0x29   : > { %14480 = vst [vmem:[#allocation20_spill] sm:$0xff] %v11812_v0  ;;  %14481 = vst [vmem:[#allocation21_spill] sm:$0xff] %v11815_v1  ;;  %v14484_v3 = vsel %vm11822_vm6, 4294967295, %v14483_v3  ;;  %v1072_v4 = vsel %vm14250_vm3, %v1069_v59, %v1071_v18  ;;  %9599 = vmatmul.mubr.f32.vlgmr.msra.gmra.mrb[0].mxu1 %v1276_v57  ;;  %v3193_v13 = vsub.f32 %v11796_v39, %v11812_v0  ;;  %v11832_v20 = vand.u32 4294901760, %v11818_v2 }
  0x2a   : > { %14482 = vst [vmem:[#allocation22_spill] sm:$0xff] %v11818_v2  ;;  %14485 = vst [vmem:[#allocation23_spill] sm:$0xff] %v14484_v3  ;;  %v1285_v19 = vsub.f32 %v11799_v40, %v11815_v1  ;;  %v4857_v21 = vsel %vm11822_vm6, 0.0, %v11804_v48  ;;  %9647 = vmatpush3.msra.mxu1 %v11717_v43  ;;  %10201 = vmatprep.mubr.f32.mxu0 %v5076_v46  ;;  %v419_v29 = vsel %vm14268_vm1, %v416_v33, %v418_v16  ;;  %v11852_v43 = vld [vmem:[%s11659_s27 + $0x38] sm:$0xff]  ;;  %v343_v48 = vld [vmem:[%s11659_s27 + $0x40] sm:$0xff] }
  0x2b   : > { %14486 = vst [vmem:[#allocation24_spill] sm:$0xff] %v11832_v20  ;;  %v4900_v59 = vsel %vm14275_vm2, %v4857_v21, 0  ;;  %v1136_v34 = vsel %vm14275_vm2, %v1072_v4, 0  ;;  %v1074_v36 = vsel %vm14250_vm3, %v1071_v18, %v1073_v51  ;;  %v11842_v38 = vand.u32 4294901760, %v3193_v13  ;;  %9696 = vmatprep.subr.mxu1 %v11648_v9  ;;  %v346_v1 = vld [vmem:[%s11659_s27 + $0x58] sm:$0xff] }
  0x2c   : > { %v11844_v53 = vand.u32 4294901760, %v1285_v19  ;;  %v1295_v54 = vsub.f32 %v11818_v2, %v11832_v20  ;;  %v11848_v57 = vand.u32 4294901760, %v4900_v59  ;;  %v1075_v63 = vrot.slane %v419_v29, 1 }
  0x2d   : > { %14487 = vst [vmem:[#allocation25_spill] sm:$0xff] %v11842_v38  ;;  %v2997_v33 = vsel %vm14275_vm2, %v419_v29, 0  ;;  %v11856_v46 = vand.u32 4294901760, %v1136_v34  ;;  %v1138_v18 = vsel %vm14275_vm2, %v1074_v36, 0  ;;  %10202 = vmatmul.mubr.f32.gmra.mrb[2].mxu0 %v11842_v38  ;;  %v420_v29 = vrot.slane %v341_v58, 7 }
  0x2e   : > { %14488 = vst [vmem:[#allocation26_spill] sm:$0xff] %v11844_v53  ;;  %9601 = vmatprep.mubr.f32.mxu1 %v11844_v53  ;;  %v11861_v4 = vand.u32 4294901760, %v1295_v54  ;;  %v11864_v13 = vsub.f32 %v4900_v59, %v11848_v57  ;;  %v11866_v19 = vand.u32 4294901760, %v2997_v33  ;;  %v11868_v21 = vand.u32 4294901760, %v1138_v18 }
  0x2f   : > { %v11871_v35 = vsub.f32 %v1136_v34, %v11856_v46  ;;  %v590_v24 = vand.u32 15, %v11681_v22  ;;  %v422_v36 = vrot.slane %v11852_v43, 7  ;;  %v1076_v23 = vsel %vm14250_vm3, %v1073_v51, %v1075_v63 }
  0x30   : > { %14489 = vst [vmem:[#allocation27_spill] sm:$0xff] %v11861_v4  ;;  %14490 = vst [vmem:[#allocation28_spill] sm:$0xff] %v11864_v13  ;;  %9602 = vmatmul.mubr.f32.gmra.mrb[2].mxu1 %v11861_v4  ;;  %v13983_v54 = vand.u32 4294901760, %v11864_v13  ;;  %v11878_v37 = vsub.f32 %v2997_v33, %v11866_v19  ;;  %v11881_v59 = vsub.f32 %v1138_v18, %v11868_v21  ;;  %v14496_v58 = vmov 0 }
  0x31   : > { %14491 = vst [vmem:[#allocation29_spill] sm:$0xff] %v11871_v35  ;;  %v11885_v34 = vand.u32 4294901760, %v11871_v35  ;;  %v11888_v22 = vsel %vm14268_vm1, %v418_v16, %v420_v29  ;;  %vm11890_vm7 = vcmp.eq.s32.totalorder %v590_v24, 0  ;;  %v11895_v43 = vsel %vm14268_vm1, %v420_v29, %v422_v36 }
  0x32   : > { %14492 = vst [vmem:[#allocation30_spill] sm:$0xff] %v11878_v37  ;;  %14493 = vst [vmem:[#allocation31_spill] sm:$0xff] %v11881_v59  ;;  %v14497_v58 = vsel %vm11890_vm7, 4294967295, %v14496_v58  ;;  %v5095_v33 = vsub.f32 %v11864_v13, %v13983_v54  ;;  %v11901_v51 = vand.u32 4294901760, %v11878_v37  ;;  %v11904_v18 = vand.u32 4294901760, %v11881_v59  ;;  %v351_v13 = vld [vmem:[%s11659_s27 + $0x80] sm:$0xff] }
  0x33   : > { %14494 = vst [vmem:[#allocation32_spill] sm:$0xff] %v11885_v34  ;;  %14495 = vst [vmem:[#allocation33_spill] sm:$0xff] %v11888_v22  ;;  %v1077_v16 = vrot.slane %v11888_v22, 1  ;;  %v1305_v24 = vsub.f32 %v11871_v35, %v11885_v34  ;;  %v4859_v29 = vsel %vm11890_vm7, 0.0, %v11888_v22  ;;  %v1079_v60 = vrot.slane %v11895_v43, 1 }
  0x34   : > { %14498 = vst [vmem:[#allocation34_spill] sm:$0xff] %v14497_v58  ;;  %14499 = vst [vmem:[#allocation35_spill] sm:$0xff] %v11901_v51  ;;  %v3003_v54 = vsel %vm14275_vm2, %v11895_v43, 0  ;;  %v5096_v38 = vand.u32 4294901760, %v5095_v33  ;;  %v3213_v17 = vsub.f32 %v11878_v37, %v11901_v51  ;;  %v1315_v4 = vsub.f32 %v11881_v59, %v11904_v18 }
  0x35   : > { %14500 = vst [vmem:[#allocation36_spill] sm:$0xff] %v11904_v18  ;;  %v4906_v53 = vsel %vm14275_vm2, %v4859_v29, 0  ;;  %v11921_v3 = vand.u32 4294901760, %v1305_v24  ;;  %v11925_v22 = vand.u32 4294901760, %v3003_v54  ;;  %v1140_v58 = vsel %vm14275_vm2, %v1076_v23, 0 }
  0x36   : > { %v11923_v50 = vand.u32 4294901760, %v4906_v53  ;;  %10204 = vmatprep.mubr.f32.mxu0 %v5096_v38  ;;  %v11929_v43 = vand.u32 4294901760, %v3213_v17  ;;  %v11931_v33 = vand.u32 4294901760, %v1315_v4  ;;  %v11933_v47 = vand.u32 4294901760, %v1140_v58 }
  0x37   : > { %14501 = vst [vmem:[#allocation37_spill] sm:$0xff] %v11921_v3  ;;  %v1078_v32 = vsel %vm14250_vm3, %v1075_v63, %v1077_v16  ;;  %9604 = vmatprep.mubr.f32.mxu1 %v11921_v3  ;;  %v11941_v29 = vsub.f32 %v3003_v54, %v11925_v22  ;;  %v424_v31 = vrot.slane %v343_v48, 7  ;;  %v604_v63 = vand.u32 15, %v11693_v30 }
  0x38   : > { %14502 = vst [vmem:[#allocation38_spill] sm:$0xff] %v11929_v43  ;;  %14503 = vst [vmem:[#allocation39_spill] sm:$0xff] %v11931_v33  ;;  %v11938_v24 = vsub.f32 %v4906_v53, %v11923_v50  ;;  %v1142_v23 = vsel %vm14275_vm2, %v1078_v32, 0  ;;  %10205 = vmatmul.mubr.f32.gmra.mrb[4].mxu0 %v11929_v43  ;;  %9605 = vmatmul.mubr.f32.gmra.mrb[4].mxu1 %v11931_v33  ;;  %v11947_v17 = vsub.f32 %v1140_v58, %v11933_v47  ;;  %v14511_v30 = vmov 0 }
  0x39   : > { %14505 = vst [vmem:[#allocation41_spill] sm:$0xff] %v11941_v29  ;;  %v11949_v38 = vand.u32 4294901760, %v1142_v23  ;;  %v426_v4 = vrot.slane %v344_v42, 7  ;;  %v11954_v54 = vand.u32 4294901760, %v11941_v29  ;;  %v11957_v32 = vsel %vm14268_vm1, %v422_v36, %v424_v31 }
  0x3a   : > { %14504 = vst [vmem:[#allocation40_spill] sm:$0xff] %v11938_v24  ;;  %14506 = vst [vmem:[#allocation42_spill] sm:$0xff] %v11947_v17  ;;  %v14003_v53 = vand.u32 4294901760, %v11938_v24  ;;  %v1080_v48 = vsel %vm14250_vm3, %v1077_v16, %v1079_v60  ;;  %v11961_v43 = vand.u32 4294901760, %v11947_v17  ;;  %vm11966_vm8 = vcmp.eq.s32.totalorder %v604_v63, 0 }
  0x3b   : > { %14507 = vst [vmem:[#allocation43_spill] sm:$0xff] %v11954_v54  ;;  %14508 = vst [vmem:[#allocation44_spill] sm:$0xff] %v11957_v32  ;;  %v11964_v58 = vsub.f32 %v1142_v23, %v11949_v38  ;;  %v14512_v30 = vsel %vm11966_vm8, 4294967295, %v14511_v30  ;;  %v1081_v42 = vrot.slane %v11957_v32, 1  ;;  %v3233_v36 = vsub.f32 %v11941_v29, %v11954_v54 }
  0x3c   : > { %14509 = vst [vmem:[#allocation45_spill] sm:$0xff] %v11961_v43  ;;  %14513 = vst [vmem:[#allocation47_spill] sm:$0xff] %v14512_v30  ;;  %v5115_v33 = vsub.f32 %v11938_v24, %v14003_v53  ;;  %v4861_v16 = vsel %vm11966_vm8, 0.0, %v11957_v32  ;;  %v427_v23 = vsel %vm14268_vm1, %v424_v31, %v426_v4  ;;  %v1325_v63 = vsub.f32 %v11947_v17, %v11961_v43  ;;  %v345_v53 = vld [vmem:[%s11659_s27 + $0x50] sm:$0xff] }
  0x3d   : > { %14510 = vst [vmem:[#allocation46_spill] sm:$0xff] %v11964_v58  ;;  %v11983_v3 = vand.u32 4294901760, %v11964_v58  ;;  %v4912_v25 = vsel %vm14275_vm2, %v4861_v16, 0  ;;  %v1083_v18 = vrot.slane %v427_v23, 1  ;;  %v11987_v34 = vand.u32 4294901760, %v3233_v36 }
  0x3e   : > { %v5116_v51 = vand.u32 4294901760, %v5115_v33  ;;  %v11989_v54 = vand.u32 4294901760, %v4912_v25  ;;  %v3009_v32 = vsel %vm14275_vm2, %v427_v23, 0  ;;  %v11992_v30 = vand.u32 4294901760, %v1325_v63 }
  0x3f   : > { %14514 = vst [vmem:[#allocation48_spill] sm:$0xff] %v11983_v3  ;;  %14515 = vst [vmem:[#allocation49_spill] sm:$0xff] %v11987_v34  ;;  %v1335_v31 = vsub.f32 %v11964_v58, %v11983_v3  ;;  %v11996_v43 = vand.u32 4294901760, %v3009_v32  ;;  %v1144_v20 = vsel %vm14275_vm2, %v1080_v48, 0  ;;  %v1082_v36 = vsel %vm14250_vm3, %v1079_v60, %v1081_v42 }
  0x40   : > { %14516 = vst [vmem:[#allocation50_spill] sm:$0xff] %v11992_v30  ;;  %10207 = vmatprep.mubr.f32.mxu0 %v5116_v51  ;;  %v12000_v16 = vsub.f32 %v4912_v25, %v11989_v54  ;;  %v12002_v33 = vand.u32 4294901760, %v1144_v20  ;;  %v428_v0 = vrot.slane %v345_v53, 7  ;;  %9607 = vmatprep.mubr.f32.mxu1 %v11992_v30  ;;  %v1146_v51 = vsel %vm14275_vm2, %v1082_v36, 0 }
  0x41   : > { %10208 = vmatmul.mubr.f32.gmra.mrb[6].mxu0 %v11987_v34  ;;  %v12008_v23 = vand.u32 4294901760, %v1335_v31  ;;  %v12011_v63 = vsub.f32 %v3009_v32, %v11996_v43  ;;  %v618_v25 = vand.u32 15, %v11739_v55  ;;  %v12019_v60 = vand.u32 4294901760, %v1146_v51 }
  0x42   : > { %14517 = vst [vmem:[#allocation51_spill] sm:$0xff] %v12000_v16  ;;  %v14027_v48 = vand.u32 4294901760, %v12000_v16  ;;  %v12017_v3 = vsub.f32 %v1144_v20, %v12002_v33  ;;  %v12022_v53 = vsel %vm14268_vm1, %v426_v4, %v428_v0  ;;  %v14523_v32 = vmov 0 }
  0x43   : > { %14518 = vst [vmem:[#allocation52_spill] sm:$0xff] %v12008_v23  ;;  %14519 = vst [vmem:[#allocation53_spill] sm:$0xff] %v12011_v63  ;;  %9608 = vmatmul.mubr.f32.gmra.mrb[6].mxu1 %v12008_v23  ;;  %v12026_v31 = vand.u32 4294901760, %v12011_v63  ;;  %vm12028_vm9 = vcmp.eq.s32.totalorder %v618_v25, 0  ;;  %v1085_v55 = vrot.slane %v12022_v53, 1  ;;  %v430_v36 = vrot.slane %v346_v1, 7 }
  0x44   : > { %14520 = vst [vmem:[#allocation54_spill] sm:$0xff] %v12017_v3  ;;  %14521 = vst [vmem:[#allocation55_spill] sm:$0xff] %v12022_v53  ;;  %v14524_v32 = vsel %vm12028_vm9, 4294967295, %v14523_v32  ;;  %v5135_v20 = vsub.f32 %v12000_v16, %v14027_v48  ;;  %v12037_v4 = vand.u32 4294901760, %v12017_v3  ;;  %v12040_v34 = vsub.f32 %v1146_v51, %v12019_v60 }
  0x45   : > { %14522 = vst [vmem:[#allocation56_spill] sm:$0xff] %v12026_v31  ;;  %14525 = vst [vmem:[#allocation57_spill] sm:$0xff] %v14524_v32  ;;  %v4863_v25 = vsel %vm12028_vm9, 0.0, %v12022_v53  ;;  %v3253_v23 = vsub.f32 %v12011_v63, %v12026_v31  ;;  %v431_v1 = vsel %vm14268_vm1, %v428_v0, %v430_v36  ;;  %v1084_v56 = vsel %vm14250_vm3, %v1081_v42, %v1083_v18  ;;  %v347_v53 = vld [vmem:[%s11659_s27 + $0x60] sm:$0xff] }
  0x46   : > { %14526 = vst [vmem:[#allocation58_spill] sm:$0xff] %v12037_v4  ;;  %14527 = vst [vmem:[#allocation59_spill] sm:$0xff] %v12040_v34  ;;  %v4918_v30 = vsel %vm14275_vm2, %v4863_v25, 0  ;;  %v5136_v48 = vand.u32 4294901760, %v5135_v20  ;;  %v1345_v58 = vsub.f32 %v12017_v3, %v12037_v4  ;;  %v12053_v51 = vand.u32 4294901760, %v12040_v34 }
  0x47   : > { %v12055_v16 = vand.u32 4294901760, %v4918_v30  ;;  %v12058_v32 = vand.u32 4294901760, %v3253_v23  ;;  %v1087_v31 = vrot.slane %v431_v1, 1  ;;  %v3015_v25 = vsel %vm14275_vm2, %v431_v1, 0 }
  0x48   : > { %14528 = vst [vmem:[#allocation60_spill] sm:$0xff] %v12053_v51  ;;  %v1148_v0 = vsel %vm14275_vm2, %v1084_v56, 0  ;;  %10210 = vmatprep.mubr.f32.mxu0 %v5136_v48  ;;  %v12062_v42 = vand.u32 4294901760, %v1345_v58  ;;  %v1355_v20 = vsub.f32 %v12040_v34, %v12053_v51  ;;  %v12069_v63 = vand.u32 4294901760, %v3015_v25  ;;  %v348_v48 = vld [vmem:[%s11659_s27 + $0x68] sm:$0xff] }
  0x49   : > { %14529 = vst [vmem:[#allocation61_spill] sm:$0xff] %v12058_v32  ;;  %v12067_v4 = vsub.f32 %v4918_v30, %v12055_v16  ;;  %10211 = vmatmul.mubr.f32.gmra.mrb[8].mxu0 %v12058_v32  ;;  %v12072_v23 = vand.u32 4294901760, %v1148_v0  ;;  %v1086_v3 = vsel %vm14250_vm3, %v1083_v18, %v1085_v55  ;;  %v432_v1 = vrot.slane %v347_v53, 7 }
  0x4a   : > { %14530 = vst [vmem:[#allocation62_spill] sm:$0xff] %v12062_v42  ;;  %v524_v56 = vadd.s32 96, %v11640_v7  ;;  %9610 = vmatprep.mubr.f32.mxu1 %v12062_v42  ;;  %v12078_v58 = vand.u32 4294901760, %v1355_v20  ;;  %v12082_v30 = vsub.f32 %v3015_v25, %v12069_v63  ;;  %v1150_v34 = vsel %vm14275_vm2, %v1086_v3, 0 }
  0x4b   : > { %14531 = vst [vmem:[#allocation63_spill] sm:$0xff] %v12067_v4  ;;  %v14051_v51 = vand.u32 4294901760, %v12067_v4  ;;  %v12086_v32 = vsub.f32 %v1148_v0, %v12072_v23  ;;  %v12088_v29 = vand.u32 4294901760, %v1150_v34  ;;  %v12091_v18 = vsel %vm14268_vm1, %v430_v36, %v432_v1 }
  0x4c   : > { %14532 = vst [vmem:[#allocation64_spill] sm:$0xff] %v12078_v58  ;;  %14533 = vst [vmem:[#allocation65_spill] sm:$0xff] %v12082_v30  ;;  %v632_v53 = vand.u32 15, %v524_v56  ;;  %9611 = vmatmul.mubr.f32.gmra.mrb[8].mxu1 %v12078_v58  ;;  %v12098_v25 = vand.u32 4294901760, %v12082_v30  ;;  %v1089_v3 = vrot.slane %v12091_v18, 1  ;;  %v434_v0 = vrot.slane %v348_v48, 7 }
  0x4d   : > { %14534 = vst [vmem:[#allocation66_spill] sm:$0xff] %v12086_v32  ;;  %14535 = vst [vmem:[#allocation67_spill] sm:$0xff] %v12091_v18  ;;  %v5155_v20 = vsub.f32 %v12067_v4, %v14051_v51  ;;  %v12102_v42 = vand.u32 4294901760, %v12086_v32  ;;  %v12105_v36 = vsub.f32 %v1150_v34, %v12088_v29  ;;  %v14539_v56 = vmov 0 }
  0x4e   : > { %14536 = vst [vmem:[#allocation68_spill] sm:$0xff] %v12098_v25  ;;  %vm12107_vm10 = vcmp.eq.s32.totalorder %v632_v53, 0  ;;  %v1088_v58 = vsel %vm14250_vm3, %v1085_v55, %v1087_v31  ;;  %v3273_v4 = vsub.f32 %v12082_v30, %v12098_v25  ;;  %v435_v17 = vsel %vm14268_vm1, %v432_v1, %v434_v0  ;;  %v349_v55 = vld [vmem:[%s11659_s27 + $0x70] sm:$0xff] }
  0x4f   : > { %14537 = vst [vmem:[#allocation69_spill] sm:$0xff] %v12102_v42  ;;  %14538 = vst [vmem:[#allocation70_spill] sm:$0xff] %v12105_v36  ;;  %v14540_v56 = vsel %vm12107_vm10, 4294967295, %v14539_v56  ;;  %v5156_v51 = vand.u32 4294901760, %v5155_v20  ;;  %v4865_v48 = vsel %vm12107_vm10, 0.0, %v12091_v18  ;;  %v1365_v34 = vsub.f32 %v12086_v32, %v12102_v42 }
  0x50   : > { %14541 = vst [vmem:[#allocation71_spill] sm:$0xff] %v14540_v56  ;;  %v12121_v53 = vand.u32 4294901760, %v12105_v36  ;;  %v4924_v59 = vsel %vm14275_vm2, %v4865_v48, 0  ;;  %v1091_v24 = vrot.slane %v435_v17, 1  ;;  %v12125_v20 = vand.u32 4294901760, %v3273_v4 }
  0x51   : > { %10213 = vmatprep.mubr.f32.mxu0 %v5156_v51  ;;  %v12127_v25 = vand.u32 4294901760, %v4924_v59  ;;  %v3021_v18 = vsel %vm14275_vm2, %v435_v17, 0  ;;  %v1152_v1 = vsel %vm14275_vm2, %v1088_v58, 0  ;;  %v12131_v56 = vand.u32 4294901760, %v1365_v34  ;;  %v350_v58 = vld [vmem:[%s11659_s27 + $0x78] sm:$0xff] }
  0x52   : > { %14542 = vst [vmem:[#allocation72_spill] sm:$0xff] %v12121_v53  ;;  %14543 = vst [vmem:[#allocation73_spill] sm:$0xff] %v12125_v20  ;;  %v1375_v42 = vsub.f32 %v12105_v36, %v12121_v53  ;;  %v12135_v30 = vand.u32 4294901760, %v3021_v18  ;;  %v12137_v48 = vand.u32 4294901760, %v1152_v1  ;;  %10214 = vmatmul.mubr.f32.gmra.mrb[10].mxu0 %v12125_v20  ;;  %v1090_v51 = vsel %vm14250_vm3, %v1087_v31, %v1089_v3 }
  0x53   : > { %14544 = vst [vmem:[#allocation74_spill] sm:$0xff] %v12131_v56  ;;  %v12141_v4 = vsub.f32 %v4924_v59, %v12127_v25  ;;  %v436_v32 = vrot.slane %v349_v55, 7  ;;  %v526_v17 = vadd.s32 112, %v11640_v7  ;;  %9613 = vmatprep.mubr.f32.mxu1 %v12131_v56  ;;  %v1154_v20 = vsel %vm14275_vm2, %v1090_v51, 0 }
  0x54   : > { %v12147_v34 = vand.u32 4294901760, %v1375_v42  ;;  %v12150_v53 = vsub.f32 %v3021_v18, %v12135_v30  ;;  %v12153_v36 = vsub.f32 %v1152_v1, %v12137_v48  ;;  %v12157_v37 = vand.u32 4294901760, %v1154_v20 }
  0x55   : > { %14545 = vst [vmem:[#allocation75_spill] sm:$0xff] %v12141_v4  ;;  %v14083_v59 = vand.u32 4294901760, %v12141_v4  ;;  %v12160_v31 = vsel %vm14268_vm1, %v434_v0, %v436_v32  ;;  %v646_v55 = vand.u32 15, %v526_v17  ;;  %v438_v51 = vrot.slane %v350_v58, 7 }
  0x56   : > { %14546 = vst [vmem:[#allocation76_spill] sm:$0xff] %v12147_v34  ;;  %14547 = vst [vmem:[#allocation77_spill] sm:$0xff] %v12150_v53  ;;  %9614 = vmatmul.mubr.f32.gmra.mrb[10].mxu1 %v12147_v34  ;;  %v12164_v42 = vand.u32 4294901760, %v12150_v53  ;;  %v12167_v18 = vand.u32 4294901760, %v12153_v36  ;;  %v1093_v1 = vrot.slane %v12160_v31, 1  ;;  %v12174_v0 = vsub.f32 %v1154_v20, %v12157_v37 }
  0x57   : > { %14548 = vst [vmem:[#allocation78_spill] sm:$0xff] %v12153_v36  ;;  %14549 = vst [vmem:[#allocation79_spill] sm:$0xff] %v12157_v37  ;;  %v5175_v56 = vsub.f32 %v12141_v4, %v14083_v59  ;;  %vm12176_vm11 = vcmp.eq.s32.totalorder %v646_v55, 0  ;;  %v14554_v17 = vmov 0  ;;  %v1092_v34 = vsel %vm14250_vm3, %v1089_v3, %v1091_v24 }
  0x58   : > { %14550 = vst [vmem:[#allocation80_spill] sm:$0xff] %v12160_v31  ;;  %14551 = vst [vmem:[#allocation81_spill] sm:$0xff] %v12164_v42  ;;  %v14555_v17 = vsel %vm12176_vm11, 4294967295, %v14554_v17  ;;  %v3293_v35 = vsub.f32 %v12150_v53, %v12164_v42  ;;  %v1385_v2 = vsub.f32 %v12153_v36, %v12167_v18  ;;  %v4867_v58 = vsel %vm12176_vm11, 0.0, %v12160_v31  ;;  %v352_v53 = vld [vmem:[%s11659_s27 + $0x88] sm:$0xff] }
  0x59   : > { %14552 = vst [vmem:[#allocation82_spill] sm:$0xff] %v12167_v18  ;;  %14553 = vst [vmem:[#allocation83_spill] sm:$0xff] %v12174_v0  ;;  %v439_v20 = vsel %vm14268_vm1, %v436_v32, %v438_v51  ;;  %v5176_v59 = vand.u32 4294901760, %v5175_v56  ;;  %v12190_v55 = vand.u32 4294901760, %v12174_v0  ;;  %v4930_v4 = vsel %vm14275_vm2, %v4867_v58, 0 }
  0x5a   : > { %14556 = vst [vmem:[#allocation84_spill] sm:$0xff] %v14555_v17  ;;  %v1095_v3 = vrot.slane %v439_v20, 1  ;;  %v12194_v14 = vand.u32 4294901760, %v3293_v35  ;;  %v12196_v42 = vand.u32 4294901760, %v1385_v2  ;;  %v12198_v18 = vand.u32 4294901760, %v4930_v4 }
  0x5b   : > { %14557 = vst [vmem:[#allocation85_spill] sm:$0xff] %v12190_v55  ;;  %v3027_v17 = vsel %vm14275_vm2, %v439_v20, 0  ;;  %10216 = vmatprep.mubr.f32.mxu0 %v5176_v59  ;;  %v1395_v32 = vsub.f32 %v12174_v0, %v12190_v55  ;;  %v1156_v31 = vsel %vm14275_vm2, %v1092_v34, 0  ;;  %v1094_v58 = vsel %vm14250_vm3, %v1091_v24, %v1093_v1 }
  0x5c   : > { %14558 = vst [vmem:[#allocation86_spill] sm:$0xff] %v12194_v14  ;;  %14559 = vst [vmem:[#allocation87_spill] sm:$0xff] %v12196_v42  ;;  %v12203_v56 = vand.u32 4294901760, %v3027_v17  ;;  %10217 = vmatmul.mubr.f32.gmra.mrb[12].mxu0 %v12194_v14  ;;  %9616 = vmatprep.mubr.f32.mxu1 %v12196_v42  ;;  %v12211_v35 = vsub.f32 %v4930_v4, %v12198_v18  ;;  %v12213_v2 = vand.u32 4294901760, %v1156_v31  ;;  %v1158_v59 = vsel %vm14275_vm2, %v1094_v58, 0 }
  0x5d   : > { %14560 = vst [vmem:[#allocation88_spill] sm:$0xff] %v12198_v18  ;;  %v440_v20 = vrot.slane %v351_v13, 7  ;;  %v12216_v55 = vand.u32 4294901760, %v1395_v32  ;;  %v12221_v34 = vand.u32 4294901760, %v1158_v59  ;;  %v528_v24 = vadd.s32 128, %v11640_v7 }
  0x5e   : > { %14561 = vst [vmem:[#allocation89_spill] sm:$0xff] %v12203_v56  ;;  %14562 = vst [vmem:[#allocation90_spill] sm:$0xff] %v12211_v35  ;;  %v12219_v0 = vsub.f32 %v3027_v17, %v12203_v56  ;;  %v14109_v14 = vand.u32 4294901760, %v12211_v35  ;;  %v12226_v42 = vsub.f32 %v1156_v31, %v12213_v2  ;;  %v442_v36 = vrot.slane %v352_v53, 7 }
  0x5f   : > { %14563 = vst [vmem:[#allocation91_spill] sm:$0xff] %v12213_v2  ;;  %14564 = vst [vmem:[#allocation92_spill] sm:$0xff] %v12216_v55  ;;  %v12229_v4 = vsel %vm14268_vm1, %v438_v51, %v440_v20  ;;  %9617 = vmatmul.mubr.f32.gmra.mrb[12].mxu1 %v12216_v55  ;;  %v12236_v17 = vsub.f32 %v1158_v59, %v12221_v34  ;;  %v660_v32 = vand.u32 15, %v528_v24  ;;  %v14573_v24 = vmov 0 }
  0x60   : > { %14565 = vst [vmem:[#allocation93_spill] sm:$0xff] %v12219_v0  ;;  %14566 = vst [vmem:[#allocation94_spill] sm:$0xff] %v12221_v34  ;;  %v12233_v13 = vand.u32 4294901760, %v12219_v0  ;;  %v1097_v58 = vrot.slane %v12229_v4, 1  ;;  %v5195_v31 = vsub.f32 %v12211_v35, %v14109_v14  ;;  %v12243_v51 = vand.u32 4294901760, %v12226_v42 }
  0x61   : > { %14567 = vst [vmem:[#allocation95_spill] sm:$0xff] %v12226_v42  ;;  %14568 = vst [vmem:[#allocation96_spill] sm:$0xff] %v12229_v4  ;;  %v443_v53 = vsel %vm14268_vm1, %v440_v20, %v442_v36  ;;  %v1096_v55 = vsel %vm14250_vm3, %v1093_v1, %v1095_v3  ;;  %v12250_v59 = vand.u32 4294901760, %v12236_v17  ;;  %vm12252_vm12 = vcmp.eq.s32.totalorder %v660_v32, 0 }
  0x62   : > { %14569 = vst [vmem:[#allocation97_spill] sm:$0xff] %v12233_v13  ;;  %14570 = vst [vmem:[#allocation98_spill] sm:$0xff] %v12236_v17  ;;  %v3313_v39 = vsub.f32 %v12219_v0, %v12233_v13  ;;  %v14574_v24 = vsel %vm12252_vm12, 4294967295, %v14573_v24  ;;  %v1099_v14 = vrot.slane %v443_v53, 1  ;;  %v5196_v35 = vand.u32 4294901760, %v5195_v31 }
  0x63   : > { %14571 = vst [vmem:[#allocation99_spill] sm:$0xff] %v12243_v51  ;;  %14572 = vst [vmem:[#allocation100_spill] sm:$0xff] %v12250_v59  ;;  %v1405_v40 = vsub.f32 %v12226_v42, %v12243_v51  ;;  %v4869_v1 = vsel %vm12252_vm12, 0.0, %v12229_v4  ;;  %v3033_v20 = vsel %vm14275_vm2, %v443_v53, 0  ;;  %v1415_v32 = vsub.f32 %v12236_v17, %v12250_v59  ;;  %v354_v53 = vld [vmem:[%s11659_s27 + $0x98] sm:$0xff] }
  0x64   : > { %14575 = vst [vmem:[#allocation101_spill] sm:$0xff] %v14574_v24  ;;  %v12262_v13 = vand.u32 4294901760, %v3313_v39  ;;  %v4936_v0 = vsel %vm14275_vm2, %v4869_v1, 0  ;;  %v12267_v15 = vand.u32 4294901760, %v3033_v20  ;;  %10219 = vmatprep.mubr.f32.mxu0 %v5196_v35  ;;  %v1160_v24 = vsel %vm14275_vm2, %v1096_v55, 0 }
  0x65   : > { %v12270_v31 = vand.u32 4294901760, %v1405_v40  ;;  %v12272_v51 = vand.u32 4294901760, %v4936_v0  ;;  %v1098_v4 = vsel %vm14250_vm3, %v1095_v3, %v1097_v58  ;;  %v12278_v39 = vand.u32 4294901760, %v1415_v32 }
  0x66   : > { %14576 = vst [vmem:[#allocation102_spill] sm:$0xff] %v12262_v13  ;;  %14577 = vst [vmem:[#allocation103_spill] sm:$0xff] %v12267_v15  ;;  %10220 = vmatmul.mubr.f32.gmra.mrb[14].mxu0 %v12262_v13  ;;  %v12281_v59 = vsub.f32 %v3033_v20, %v12267_v15  ;;  %v12283_v1 = vand.u32 4294901760, %v1160_v24  ;;  %v1162_v35 = vsel %vm14275_vm2, %v1098_v4, 0  ;;  %v444_v3 = vrot.slane %v353_v11, 7 }
  0x67   : > { %14578 = vst [vmem:[#allocation104_spill] sm:$0xff] %v12270_v31  ;;  %14579 = vst [vmem:[#allocation105_spill] sm:$0xff] %v12272_v51  ;;  %9619 = vmatprep.mubr.f32.mxu1 %v12270_v31  ;;  %v12288_v40 = vsub.f32 %v4936_v0, %v12272_v51  ;;  %v12290_v55 = vand.u32 4294901760, %v1162_v35  ;;  %v530_v17 = vadd.s32 144, %v11640_v7  ;;  %v446_v13 = vrot.slane %v354_v53, 7 }
  0x68   : > { %14580 = vst [vmem:[#allocation106_spill] sm:$0xff] %v12278_v39  ;;  %14581 = vst [vmem:[#allocation107_spill] sm:$0xff] %v12281_v59  ;;  %9620 = vmatmul.mubr.f32.gmra.mrb[14].mxu1 %v12278_v39  ;;  %v12295_v32 = vand.u32 4294901760, %v12281_v59  ;;  %v12298_v20 = vsub.f32 %v1160_v24, %v12283_v1  ;;  %v1100_v4 = vsel %vm14250_vm3, %v1097_v58, %v1099_v14 }
  0x69   : > { %14582 = vst [vmem:[#allocation108_spill] sm:$0xff] %v12283_v1  ;;  %14583 = vst [vmem:[#allocation109_spill] sm:$0xff] %v12288_v40  ;;  %v14141_v31 = vand.u32 4294901760, %v12288_v40  ;;  %v12303_v0 = vsub.f32 %v1162_v35, %v12290_v55  ;;  %v12306_v11 = vsel %vm14268_vm1, %v442_v36, %v444_v3  ;;  %v674_v42 = vand.u32 15, %v530_v17 }
  0x6a   : > { %14584 = vst [vmem:[#allocation110_spill] sm:$0xff] %v12290_v55  ;;  %14585 = vst [vmem:[#allocation111_spill] sm:$0xff] %v12295_v32  ;;  %v3333_v39 = vsub.f32 %v12281_v59, %v12295_v32  ;;  %v12311_v26 = vand.u32 4294901760, %v12298_v20  ;;  %v1101_v24 = vrot.slane %v12306_v11, 1  ;;  %v447_v58 = vsel %vm14268_vm1, %v444_v3, %v446_v13 }
  0x6b   : > { %14586 = vst [vmem:[#allocation112_spill] sm:$0xff] %v12298_v20  ;;  %14587 = vst [vmem:[#allocation113_spill] sm:$0xff] %v12303_v0  ;;  %v5215_v53 = vsub.f32 %v12288_v40, %v14141_v31  ;;  %v12319_v35 = vand.u32 4294901760, %v12303_v0  ;;  %vm12321_vm13 = vcmp.eq.s32.totalorder %v674_v42, 0  ;;  %v14591_v36 = vmov 0 }
  0x6c   : > { %14588 = vst [vmem:[#allocation114_spill] sm:$0xff] %v12306_v11  ;;  %14589 = vst [vmem:[#allocation115_spill] sm:$0xff] %v12311_v26  ;;  %v14592_v36 = vsel %vm12321_vm13, 4294967295, %v14591_v36  ;;  %v1103_v17 = vrot.slane %v447_v58, 1  ;;  %v12325_v32 = vand.u32 4294901760, %v3333_v39  ;;  %v1425_v59 = vsub.f32 %v12298_v20, %v12311_v26 }
  0x6d   : > { %14590 = vst [vmem:[#allocation116_spill] sm:$0xff] %v12319_v35  ;;  %14593 = vst [vmem:[#allocation117_spill] sm:$0xff] %v14592_v36  ;;  %v4871_v3 = vsel %vm12321_vm13, 0.0, %v12306_v11  ;;  %v3039_v31 = vsel %vm14275_vm2, %v447_v58, 0  ;;  %v5216_v40 = vand.u32 4294901760, %v5215_v53  ;;  %v1435_v49 = vsub.f32 %v12303_v0, %v12319_v35  ;;  %v12346_v11 = vld [vmem:[%s11659_s27 + $0xa8] sm:$0xff] }
  0x6e   : > { %14594 = vst [vmem:[#allocation118_spill] sm:$0xff] %v12325_v32  ;;  %v4942_v42 = vsel %vm14275_vm2, %v4871_v3, 0  ;;  %v12336_v8 = vand.u32 4294901760, %v3039_v31  ;;  %v12339_v39 = vand.u32 4294901760, %v1425_v59  ;;  %v1164_v26 = vsel %vm14275_vm2, %v1100_v4, 0 }
  0x6f   : > { %v12341_v55 = vand.u32 4294901760, %v4942_v42  ;;  %v1102_v36 = vsel %vm14250_vm3, %v1099_v14, %v1101_v24  ;;  %10222 = vmatprep.mubr.f32.mxu0 %v5216_v40  ;;  %v12348_v58 = vand.u32 4294901760, %v1435_v49  ;;  %v12353_v3 = vand.u32 4294901760, %v1164_v26 }
  0x70   : > { %14595 = vst [vmem:[#allocation119_spill] sm:$0xff] %v12336_v8  ;;  %14596 = vst [vmem:[#allocation120_spill] sm:$0xff] %v12339_v39  ;;  %v12351_v53 = vsub.f32 %v3039_v31, %v12336_v8  ;;  %v1166_v35 = vsel %vm14275_vm2, %v1102_v36, 0  ;;  %10223 = vmatmul.mubr.f32.gmra.mrb[16].mxu0 %v12325_v32  ;;  %9622 = vmatprep.mubr.f32.mxu1 %v12339_v39  ;;  %v448_v4 = vrot.slane %v355_v52, 7  ;;  %v532_v49 = vadd.s32 160, %v11640_v7 }
  0x71   : > { %14597 = vst [vmem:[#allocation121_spill] sm:$0xff] %v12341_v55  ;;  %14598 = vst [vmem:[#allocation122_spill] sm:$0xff] %v12348_v58  ;;  %v12359_v59 = vsub.f32 %v4942_v42, %v12341_v55  ;;  %v12361_v14 = vand.u32 4294901760, %v1166_v35  ;;  %9623 = vmatmul.mubr.f32.gmra.mrb[16].mxu1 %v12348_v58  ;;  %v12369_v40 = vsub.f32 %v1164_v26, %v12353_v3  ;;  %v450_v36 = vrot.slane %v12346_v11, 7 }
  0x72   : > { %14599 = vst [vmem:[#allocation123_spill] sm:$0xff] %v12351_v53  ;;  %14600 = vst [vmem:[#allocation124_spill] sm:$0xff] %v12353_v3  ;;  %v12366_v31 = vand.u32 4294901760, %v12351_v53  ;;  %v1104_v32 = vsel %vm14250_vm3, %v1101_v24, %v1103_v17  ;;  %v12378_v52 = vsel %vm14268_vm1, %v446_v13, %v448_v4  ;;  %v688_v0 = vand.u32 15, %v532_v49  ;;  %v357_v3 = vld [vmem:[%s11659_s27 + $0xb0] sm:$0xff] }
  0x73   : > { %14601 = vst [vmem:[#allocation125_spill] sm:$0xff] %v12359_v59  ;;  %14602 = vst [vmem:[#allocation126_spill] sm:$0xff] %v12361_v14  ;;  %v14169_v42 = vand.u32 4294901760, %v12359_v59  ;;  %v12375_v39 = vsub.f32 %v1166_v35, %v12361_v14  ;;  %v12383_v26 = vand.u32 4294901760, %v12369_v40  ;;  %v1105_v11 = vrot.slane %v12378_v52, 1 }
  0x74   : > { %14603 = vst [vmem:[#allocation127_spill] sm:$0xff] %v12366_v31  ;;  %14604 = vst [vmem:[#allocation128_spill] sm:$0xff] %v12369_v40  ;;  %v3353_v58 = vsub.f32 %v12351_v53, %v12366_v31  ;;  %v451_v24 = vsel %vm14268_vm1, %v448_v4, %v450_v36  ;;  %vm12393_vm14 = vcmp.eq.s32.totalorder %v688_v0, 0  ;;  %v14609_v13 = vmov 0 }
  0x75   : > { %14605 = vst [vmem:[#allocation129_spill] sm:$0xff] %v12375_v39  ;;  %14606 = vst [vmem:[#allocation130_spill] sm:$0xff] %v12378_v52  ;;  %v5235_v35 = vsub.f32 %v12359_v59, %v14169_v42  ;;  %v12391_v20 = vand.u32 4294901760, %v12375_v39  ;;  %v14610_v13 = vsel %vm12393_vm14, 4294967295, %v14609_v13  ;;  %v1107_v49 = vrot.slane %v451_v24, 1 }
  0x76   : > { %14607 = vst [vmem:[#allocation131_spill] sm:$0xff] %v12383_v26  ;;  %14611 = vst [vmem:[#allocation133_spill] sm:$0xff] %v14610_v13  ;;  %v12397_v31 = vand.u32 4294901760, %v3353_v58  ;;  %v1445_v53 = vsub.f32 %v12369_v40, %v12383_v26  ;;  %v4873_v4 = vsel %vm12393_vm14, 0.0, %v12378_v52  ;;  %v3045_v42 = vsel %vm14275_vm2, %v451_v24, 0  ;;  %v12418_v52 = vld [vmem:[%s11659_s27 + $0xb8] sm:$0xff] }
  0x77   : > { %14608 = vst [vmem:[#allocation132_spill] sm:$0xff] %v12391_v20  ;;  %v5236_v59 = vand.u32 4294901760, %v5235_v35  ;;  %v1455_v14 = vsub.f32 %v12375_v39, %v12391_v20  ;;  %v4948_v0 = vsel %vm14275_vm2, %v4873_v4, 0  ;;  %v12408_v8 = vand.u32 4294901760, %v3045_v42 }
  0x78   : > { %14612 = vst [vmem:[#allocation134_spill] sm:$0xff] %v12397_v31  ;;  %v12411_v58 = vand.u32 4294901760, %v1445_v53  ;;  %v12413_v55 = vand.u32 4294901760, %v4948_v0  ;;  %v1168_v26 = vsel %vm14275_vm2, %v1104_v32, 0  ;;  %v1106_v13 = vsel %vm14250_vm3, %v1103_v17, %v1105_v11 }
  0x79   : > { %14613 = vst [vmem:[#allocation135_spill] sm:$0xff] %v12408_v8  ;;  %10225 = vmatprep.mubr.f32.mxu0 %v5236_v59  ;;  %v12420_v24 = vand.u32 4294901760, %v1455_v14  ;;  %v12423_v35 = vsub.f32 %v3045_v42, %v12408_v8  ;;  %v12425_v4 = vand.u32 4294901760, %v1168_v26  ;;  %v1170_v20 = vsel %vm14275_vm2, %v1106_v13, 0 }
  0x7a   : > { %14614 = vst [vmem:[#allocation136_spill] sm:$0xff] %v12411_v58  ;;  %14615 = vst [vmem:[#allocation137_spill] sm:$0xff] %v12413_v55  ;;  %10226 = vmatmul.mubr.f32.gmra.mrb[18].mxu0 %v12397_v31  ;;  %9625 = vmatprep.mubr.f32.mxu1 %v12411_v58  ;;  %v12431_v32 = vsub.f32 %v4948_v0, %v12413_v55  ;;  %v12433_v17 = vand.u32 4294901760, %v1170_v20  ;;  %v452_v53 = vrot.slane %v357_v3, 7  ;;  %v534_v59 = vadd.s32 176, %v11640_v7 }
  0x7b   : > { %14616 = vst [vmem:[#allocation138_spill] sm:$0xff] %v12420_v24  ;;  %14617 = vst [vmem:[#allocation139_spill] sm:$0xff] %v12423_v35  ;;  %9626 = vmatmul.mubr.f32.gmra.mrb[18].mxu1 %v12420_v24  ;;  %v12438_v14 = vand.u32 4294901760, %v12423_v35  ;;  %v12441_v42 = vsub.f32 %v1168_v26, %v12425_v4  ;;  %v454_v13 = vrot.slane %v12418_v52, 7  ;;  %v1108_v31 = vsel %vm14250_vm3, %v1105_v11, %v1107_v49 }
  0x7c   : > { %14618 = vst [vmem:[#allocation140_spill] sm:$0xff] %v12425_v4  ;;  %14619 = vst [vmem:[#allocation141_spill] sm:$0xff] %v12431_v32  ;;  %v14197_v0 = vand.u32 4294901760, %v12431_v32  ;;  %v12447_v58 = vsub.f32 %v1170_v20, %v12433_v17  ;;  %v12450_v3 = vsel %vm14268_vm1, %v450_v36, %v452_v53  ;;  %v702_v39 = vand.u32 15, %v534_v59  ;;  %v359_v4 = vld [vmem:[%s11659_s27 + $0xc0] sm:$0xff] }
  0x7d   : > { %14620 = vst [vmem:[#allocation142_spill] sm:$0xff] %v12433_v17  ;;  %14621 = vst [vmem:[#allocation143_spill] sm:$0xff] %v12438_v14  ;;  %v3373_v24 = vsub.f32 %v12423_v35, %v12438_v14  ;;  %v12455_v26 = vand.u32 4294901760, %v12441_v42  ;;  %v1109_v52 = vrot.slane %v12450_v3, 1  ;;  %v455_v11 = vsel %vm14268_vm1, %v452_v53, %v454_v13 }
  0x7e   : > { %14622 = vst [vmem:[#allocation144_spill] sm:$0xff] %v12441_v42  ;;  %14623 = vst [vmem:[#allocation145_spill] sm:$0xff] %v12447_v58  ;;  %v5255_v20 = vsub.f32 %v12431_v32, %v14197_v0  ;;  %v12463_v40 = vand.u32 4294901760, %v12447_v58  ;;  %vm12465_vm15 = vcmp.eq.s32.totalorder %v702_v39, 0  ;;  %v14627_v36 = vmov 0 }
  0x7f   : > { %14624 = vst [vmem:[#allocation146_spill] sm:$0xff] %v12450_v3  ;;  %14625 = vst [vmem:[#allocation147_spill] sm:$0xff] %v12455_v26  ;;  %v14628_v36 = vsel %vm12465_vm15, 4294967295, %v14627_v36  ;;  %v1111_v59 = vrot.slane %v455_v11, 1  ;;  %v12469_v14 = vand.u32 4294901760, %v3373_v24  ;;  %v1465_v35 = vsub.f32 %v12441_v42, %v12455_v26 }
  0x80   : > { %14626 = vst [vmem:[#allocation148_spill] sm:$0xff] %v12463_v40  ;;  %14629 = vst [vmem:[#allocation149_spill] sm:$0xff] %v14628_v36  ;;  %v4875_v53 = vsel %vm12465_vm15, 0.0, %v12450_v3  ;;  %v3051_v0 = vsel %vm14275_vm2, %v455_v11, 0  ;;  %v5256_v32 = vand.u32 4294901760, %v5255_v20  ;;  %v1475_v17 = vsub.f32 %v12447_v58, %v12463_v40  ;;  %v12490_v3 = vld [vmem:[%s11659_s27 + $0xc8] sm:$0xff] }
  0x81   : > { %14630 = vst [vmem:[#allocation150_spill] sm:$0xff] %v12469_v14  ;;  %v4954_v39 = vsel %vm14275_vm2, %v4875_v53, 0  ;;  %v12480_v8 = vand.u32 4294901760, %v3051_v0  ;;  %v12483_v24 = vand.u32 4294901760, %v1465_v35  ;;  %v1172_v26 = vsel %vm14275_vm2, %v1108_v31, 0 }
  0x82   : > { %v12485_v55 = vand.u32 4294901760, %v4954_v39  ;;  %v1110_v36 = vsel %vm14250_vm3, %v1107_v49, %v1109_v52  ;;  %10228 = vmatprep.mubr.f32.mxu0 %v5256_v32  ;;  %v12492_v11 = vand.u32 4294901760, %v1475_v17  ;;  %v12497_v53 = vand.u32 4294901760, %v1172_v26 }
  0x83   : > { %14631 = vst [vmem:[#allocation151_spill] sm:$0xff] %v12480_v8  ;;  %14632 = vst [vmem:[#allocation152_spill] sm:$0xff] %v12483_v24  ;;  %v12495_v20 = vsub.f32 %v3051_v0, %v12480_v8  ;;  %v1174_v40 = vsel %vm14275_vm2, %v1110_v36, 0  ;;  %10229 = vmatmul.mubr.f32.gmra.mrb[20].mxu0 %v12469_v14  ;;  %9628 = vmatprep.mubr.f32.mxu1 %v12483_v24  ;;  %v456_v35 = vrot.slane %v359_v4, 7  ;;  %v536_v32 = vadd.s32 192, %v11640_v7 }
  0x84   : > { %14633 = vst [vmem:[#allocation153_spill] sm:$0xff] %v12485_v55  ;;  %14634 = vst [vmem:[#allocation154_spill] sm:$0xff] %v12492_v11  ;;  %v12503_v31 = vsub.f32 %v4954_v39, %v12485_v55  ;;  %v12505_v49 = vand.u32 4294901760, %v1174_v40  ;;  %9629 = vmatmul.mubr.f32.gmra.mrb[20].mxu1 %v12492_v11  ;;  %v12513_v0 = vsub.f32 %v1172_v26, %v12497_v53  ;;  %v458_v36 = vrot.slane %v12490_v3, 7 }
  0x85   : > { %14635 = vst [vmem:[#allocation155_spill] sm:$0xff] %v12495_v20  ;;  %14636 = vst [vmem:[#allocation156_spill] sm:$0xff] %v12497_v53  ;;  %v12510_v17 = vand.u32 4294901760, %v12495_v20  ;;  %v1112_v14 = vsel %vm14250_vm3, %v1109_v52, %v1111_v59  ;;  %v12522_v4 = vsel %vm14268_vm1, %v454_v13, %v456_v35  ;;  %v716_v58 = vand.u32 15, %v536_v32  ;;  %v361_v53 = vld [vmem:[%s11659_s27 + $0xd0] sm:$0xff] }
  0x86   : > { %14637 = vst [vmem:[#allocation157_spill] sm:$0xff] %v12503_v31  ;;  %14638 = vst [vmem:[#allocation158_spill] sm:$0xff] %v12505_v49  ;;  %v14226_v39 = vand.u32 4294901760, %v12503_v31  ;;  %v12519_v24 = vsub.f32 %v1174_v40, %v12505_v49  ;;  %v12527_v26 = vand.u32 4294901760, %v12513_v0  ;;  %v1113_v3 = vrot.slane %v12522_v4, 1 }
  0x87   : > { %14639 = vst [vmem:[#allocation159_spill] sm:$0xff] %v12510_v17  ;;  %14640 = vst [vmem:[#allocation160_spill] sm:$0xff] %v12513_v0  ;;  %v3393_v11 = vsub.f32 %v12495_v20, %v12510_v17  ;;  %v459_v52 = vsel %vm14268_vm1, %v456_v35, %v458_v36  ;;  %vm12537_vm0 = vcmp.eq.s32.totalorder %v716_v58, 0  ;;  %v14645_v13 = vmov 0 }
  0x88   : > { %14641 = vst [vmem:[#allocation161_spill] sm:$0xff] %v12519_v24  ;;  %14642 = vst [vmem:[#allocation162_spill] sm:$0xff] %v12522_v4  ;;  %v5275_v40 = vsub.f32 %v12503_v31, %v14226_v39  ;;  %v12535_v42 = vand.u32 4294901760, %v12519_v24  ;;  %v14646_v13 = vsel %vm12537_vm0, 4294967295, %v14645_v13  ;;  %v1115_v32 = vrot.slane %v459_v52, 1 }
  0x89   : > { %14643 = vst [vmem:[#allocation163_spill] sm:$0xff] %v12527_v26  ;;  %14647 = vst [vmem:[#allocation165_spill] sm:$0xff] %v14646_v13  ;;  %v12541_v17 = vand.u32 4294901760, %v3393_v11  ;;  %v1485_v20 = vsub.f32 %v12513_v0, %v12527_v26  ;;  %v4877_v35 = vsel %vm12537_vm0, 0.0, %v12522_v4  ;;  %v3057_v39 = vsel %vm14275_vm2, %v459_v52, 0  ;;  %v12562_v4 = vld [vmem:[%s11659_s27 + $0xd8] sm:$0xff] }
  0x8a   : > { %14644 = vst [vmem:[#allocation164_spill] sm:$0xff] %v12535_v42  ;;  %v5276_v31 = vand.u32 4294901760, %v5275_v40  ;;  %v1495_v49 = vsub.f32 %v12519_v24, %v12535_v42  ;;  %v4960_v58 = vsel %vm14275_vm2, %v4877_v35, 0  ;;  %v12552_v8 = vand.u32 4294901760, %v3057_v39 }
  0x8b   : > { %14648 = vst [vmem:[#allocation166_spill] sm:$0xff] %v12541_v17  ;;  %v12555_v11 = vand.u32 4294901760, %v1485_v20  ;;  %v12557_v55 = vand.u32 4294901760, %v4960_v58  ;;  %v1176_v26 = vsel %vm14275_vm2, %v1112_v14, 0  ;;  %v1114_v13 = vsel %vm14250_vm3, %v1111_v59, %v1113_v3 }
  0x8c   : > { %14649 = vst [vmem:[#allocation167_spill] sm:$0xff] %v12552_v8  ;;  %10231 = vmatprep.mubr.f32.mxu0 %v5276_v31  ;;  %v12564_v52 = vand.u32 4294901760, %v1495_v49  ;;  %v12567_v40 = vsub.f32 %v3057_v39, %v12552_v8  ;;  %v12569_v35 = vand.u32 4294901760, %v1176_v26  ;;  %v1178_v42 = vsel %vm14275_vm2, %v1114_v13, 0 }
  0x8d   : > { %14650 = vst [vmem:[#allocation168_spill] sm:$0xff] %v12555_v11  ;;  %14651 = vst [vmem:[#allocation169_spill] sm:$0xff] %v12557_v55  ;;  %10232 = vmatmul.mubr.f32.gmra.mrb[22].mxu0 %v12541_v17  ;;  %9631 = vmatprep.mubr.f32.mxu1 %v12555_v11  ;;  %v12575_v14 = vsub.f32 %v4960_v58, %v12557_v55  ;;  %v12577_v59 = vand.u32 4294901760, %v1178_v42  ;;  %v460_v20 = vrot.slane %v361_v53, 7  ;;  %v538_v31 = vadd.s32 208, %v11640_v7 }
  0x8e   : > { %14652 = vst [vmem:[#allocation170_spill] sm:$0xff] %v12564_v52  ;;  %14653 = vst [vmem:[#allocation171_spill] sm:$0xff] %v12567_v40  ;;  %9632 = vmatmul.mubr.f32.gmra.mrb[22].mxu1 %v12564_v52  ;;  %v12582_v49 = vand.u32 4294901760, %v12567_v40  ;;  %v12585_v39 = vsub.f32 %v1176_v26, %v12569_v35  ;;  %v462_v13 = vrot.slane %v12562_v4, 7  ;;  %v1116_v17 = vsel %vm14250_vm3, %v1113_v3, %v1115_v32 }
  0x8f   : > { %14654 = vst [vmem:[#allocation172_spill] sm:$0xff] %v12569_v35  ;;  %14655 = vst [vmem:[#allocation173_spill] sm:$0xff] %v12575_v14  ;;  %v14255_v58 = vand.u32 4294901760, %v12575_v14  ;;  %v12591_v11 = vsub.f32 %v1178_v42, %v12577_v59  ;;  %v12594_v53 = vsel %vm14268_vm1, %v458_v36, %v460_v20  ;;  %v730_v24 = vand.u32 15, %v538_v31  ;;  %v363_v35 = vld [vmem:[%s11659_s27 + $0xe0] sm:$0xff] }
  0x90   : > { %14656 = vst [vmem:[#allocation174_spill] sm:$0xff] %v12577_v59  ;;  %14657 = vst [vmem:[#allocation175_spill] sm:$0xff] %v12582_v49  ;;  %v3413_v52 = vsub.f32 %v12567_v40, %v12582_v49  ;;  %v12599_v26 = vand.u32 4294901760, %v12585_v39  ;;  %v1117_v4 = vrot.slane %v12594_v53, 1  ;;  %v463_v3 = vsel %vm14268_vm1, %v460_v20, %v462_v13 }
  0x91   : > { %14658 = vst [vmem:[#allocation176_spill] sm:$0xff] %v12585_v39  ;;  %14659 = vst [vmem:[#allocation177_spill] sm:$0xff] %v12591_v11  ;;  %v5295_v42 = vsub.f32 %v12575_v14, %v14255_v58  ;;  %v12607_v0 = vand.u32 4294901760, %v12591_v11  ;;  %vm12609_vm3 = vcmp.eq.s32.totalorder %v730_v24, 0  ;;  %v14663_v36 = vmov 0 }
  0x92   : > { %14660 = vst [vmem:[#allocation178_spill] sm:$0xff] %v12594_v53  ;;  %14661 = vst [vmem:[#allocation179_spill] sm:$0xff] %v12599_v26  ;;  %v14664_v36 = vsel %vm12609_vm3, 4294967295, %v14663_v36  ;;  %v1119_v31 = vrot.slane %v463_v3, 1  ;;  %v12613_v49 = vand.u32 4294901760, %v3413_v52  ;;  %v1505_v40 = vsub.f32 %v12585_v39, %v12599_v26 }
  0x93   : > { %14662 = vst [vmem:[#allocation180_spill] sm:$0xff] %v12607_v0  ;;  %14665 = vst [vmem:[#allocation181_spill] sm:$0xff] %v14664_v36  ;;  %v4879_v20 = vsel %vm12609_vm3, 0.0, %v12594_v53  ;;  %v3063_v58 = vsel %vm14275_vm2, %v463_v3, 0  ;;  %v5296_v14 = vand.u32 4294901760, %v5295_v42  ;;  %v1515_v59 = vsub.f32 %v12591_v11, %v12607_v0  ;;  %v12634_v53 = vld [vmem:[%s11659_s27 + $0xe8] sm:$0xff] }
  0x94   : > { %14666 = vst [vmem:[#allocation182_spill] sm:$0xff] %v12613_v49  ;;  %v4966_v24 = vsel %vm14275_vm2, %v4879_v20, 0  ;;  %v12624_v8 = vand.u32 4294901760, %v3063_v58  ;;  %v12627_v52 = vand.u32 4294901760, %v1505_v40  ;;  %v1180_v26 = vsel %vm14275_vm2, %v1116_v17, 0 }
  0x95   : > { %v12629_v55 = vand.u32 4294901760, %v4966_v24  ;;  %vm14670_vm1 = vcmask 1046528   ;;  %10234 = vmatprep.mubr.f32.mxu0 %v5296_v14  ;;  %v12636_v3 = vand.u32 4294901760, %v1515_v59  ;;  %v12641_v20 = vand.u32 4294901760, %v1180_v26 }
  0x96   : > { %14667 = vst [vmem:[#allocation183_spill] sm:$0xff] %v12624_v8  ;;  %14668 = vst [vmem:[#allocation184_spill] sm:$0xff] %v12627_v52  ;;  %v1118_v36 = vsel %vm14670_vm1, %v1115_v32, %v1117_v4  ;;  %v12639_v42 = vsub.f32 %v3063_v58, %v12624_v8  ;;  %10235 = vmatmul.mubr.f32.gmra.mrb[24].mxu0 %v12613_v49  ;;  %9634 = vmatprep.mubr.f32.mxu1 %v12627_v52  ;;  %v464_v40 = vrot.slane %v363_v35, 7  ;;  %vm14694_vm15 = vcmask 1046528  }
  0x97   : > { %14669 = vst [vmem:[#allocation185_spill] sm:$0xff] %v12629_v55  ;;  %14671 = vst [vmem:[#allocation186_spill] sm:$0xff] %v12636_v3  ;;  %v1182_v0 = vsel %vm14275_vm2, %v1118_v36, 0  ;;  %v12647_v17 = vsub.f32 %v4966_v24, %v12629_v55  ;;  %v540_v14 = vadd.s32 224, %v11640_v7  ;;  %9635 = vmatmul.mubr.f32.gmra.mrb[24].mxu1 %v12636_v3  ;;  %v12657_v58 = vsub.f32 %v1180_v26, %v12641_v20 }
  0x98   : > { %14672 = vst [vmem:[#allocation187_spill] sm:$0xff] %v12639_v42  ;;  %14673 = vst [vmem:[#allocation188_spill] sm:$0xff] %v12641_v20  ;;  %v12649_v32 = vand.u32 4294901760, %v1182_v0  ;;  %v12654_v59 = vand.u32 4294901760, %v12639_v42  ;;  %v466_v36 = vrot.slane %v12634_v53, 7  ;;  %v1120_v49 = vsel %vm14670_vm1, %v1117_v4, %v1119_v31 }
  0x99   : > { %14674 = vst [vmem:[#allocation189_spill] sm:$0xff] %v12647_v17  ;;  %14677 = vst [vmem:[#allocation192_spill] sm:$0xff] %v12657_v58  ;;  %v14286_v24 = vand.u32 4294901760, %v12647_v17  ;;  %vm14679_vm2 = vcmask 1040384   ;;  %v744_v11 = vand.u32 15, %v540_v14  ;;  %v12671_v26 = vand.u32 4294901760, %v12657_v58 }
  0x9a   : > { %14675 = vst [vmem:[#allocation190_spill] sm:$0xff] %v12649_v32  ;;  %14676 = vst [vmem:[#allocation191_spill] sm:$0xff] %v12654_v59  ;;  %v12663_v52 = vsub.f32 %v1182_v0, %v12649_v32  ;;  %v12666_v35 = vsel %vm14679_vm2, %v462_v13, %v464_v40  ;;  %v3433_v3 = vsub.f32 %v12639_v42, %v12654_v59  ;;  %v14684_v14 = vmov 0 }
  0x9b   : > { %14680 = vst [vmem:[#allocation194_spill] sm:$0xff] %v12666_v35  ;;  %14681 = vst [vmem:[#allocation195_spill] sm:$0xff] %v12671_v26  ;;  %v1121_v53 = vrot.slane %v12666_v35, 1  ;;  %v5315_v0 = vsub.f32 %v12647_v17, %v14286_v24 }
  0x9c   : > { %14678 = vst [vmem:[#allocation193_spill] sm:$0xff] %v12663_v52  ;;  %vm14682_vm3 = vmmov %vm14679_vm2  ;;  %v12681_v13 = vand.u32 4294901760, %v12663_v52  ;;  %vm12683_vm2 = vcmp.eq.s32.totalorder %v744_v11, 0  ;;  %v12688_v42 = vand.u32 4294901760, %v3433_v3  ;;  %v365_v3 = vld [vmem:[%s11659_s27 + $0xf0] sm:$0xff] }
  0x9d   : > { %v12675_v4 = vsel %vm14682_vm3, %v464_v40, %v466_v36  ;;  %v14685_v14 = vsel %vm12683_vm2, 4294967295, %v14684_v14  ;;  %v1525_v40 = vsub.f32 %v12657_v58, %v12671_v26  ;;  %v4881_v39 = vsel %vm12683_vm2, 0.0, %v12666_v35 }
  0x9e   : > { %14683 = vst [vmem:[#allocation196_spill] sm:$0xff] %v12681_v13  ;;  %14686 = vst [vmem:[#allocation197_spill] sm:$0xff] %v14685_v14  ;;  %v1123_v59 = vrot.slane %v12675_v4, 1  ;;  %vm14688_vm3 = vcmask 39936   ;;  %v5316_v17 = vand.u32 4294901760, %v5315_v0  ;;  %v1535_v11 = vsub.f32 %v12663_v52, %v12681_v13  ;;  %v12710_v14 = vld [vmem:[%s11659_s27 + $0xf8] sm:$0xff] }
  0x9f   : > { %14687 = vst [vmem:[#allocation198_spill] sm:$0xff] %v12688_v42  ;;  %v3069_v24 = vsel %vm14688_vm3, %v12675_v4, 0  ;;  %vm14689_vm1 = vmmov %vm14688_vm3  ;;  %v12703_v20 = vand.u32 4294901760, %v1525_v40  ;;  %v1122_v35 = vsel %vm14694_vm15, %v1119_v31, %v1121_v53  ;;  %v468_v40 = vrot.slane %v365_v3, 7 }
  0xa0   : > { %v4972_v32 = vsel %vm14689_vm1, %v4881_v39, 0  ;;  %v12700_v8 = vand.u32 4294901760, %v3069_v24  ;;  %vm14693_vm0 = vmmov %vm14689_vm1  ;;  %14695 = vst [vmem:[#allocation202_spill] sm:$0xff] %v12710_v14  ;;  %10237 = vmatprep.mubr.f32.mxu0 %v5316_v17  ;;  %v12712_v4 = vand.u32 4294901760, %v1535_v11  ;;  %v542_v17 = vadd.s32 240, %v11640_v7 }
  0xa1   : > { %14691 = vst [vmem:[#allocation200_spill] sm:$0xff] %v12703_v20  ;;  %v12705_v55 = vand.u32 4294901760, %v4972_v32  ;;  %v1184_v26 = vsel %vm14693_vm0, %v1120_v49, 0  ;;  %vm14699_vm3 = vmmov %vm14693_vm0  ;;  %10238 = vmatmul.mubr.f32.gmra.mrb[26].mxu0 %v12688_v42  ;;  %9637 = vmatprep.mubr.f32.mxu1 %v12703_v20 }
  0xa2   : > { %14690 = vst [vmem:[#allocation199_spill] sm:$0xff] %v12700_v8  ;;  %14696 = vst [vmem:[#allocation203_spill] sm:$0xff] %v12712_v4  ;;  %v12715_v0 = vsub.f32 %v3069_v24, %v12700_v8  ;;  %v12717_v39 = vand.u32 4294901760, %v1184_v26  ;;  %v1186_v13 = vsel %vm14699_vm3, %v1122_v35, 0  ;;  %9638 = vmatmul.mubr.f32.gmra.mrb[26].mxu1 %v12712_v4  ;;  %v14312_v35 = vrot.slane %v12710_v14, 7 }
  0xa3   : > { %14692 = vst [vmem:[#allocation201_spill] sm:$0xff] %v12705_v55  ;;  %v12723_v49 = vsub.f32 %v4972_v32, %v12705_v55  ;;  %v12725_v31 = vand.u32 4294901760, %v1186_v13  ;;  %vm14704_vm0 = vmmov %vm14694_vm15  ;;  %vm14706_vm15 = vcmask 1040384   ;;  %v758_v7 = vand.u32 15, %v542_v17 }
  0xa4   : > { %14697 = vst [vmem:[#allocation204_spill] sm:$0xff] %v12715_v0  ;;  %14698 = vst [vmem:[#allocation205_spill] sm:$0xff] %v12717_v39  ;;  %v12730_v24 = vand.u32 4294901760, %v12715_v0  ;;  %v12733_v11 = vsub.f32 %v1184_v26, %v12717_v39  ;;  %v1124_v42 = vsel %vm14704_vm0, %v1121_v53, %v1123_v59  ;;  %v12742_v3 = vsel %vm14706_vm15, %v466_v36, %v468_v40 }
  0xa5   : > { %14700 = vst [vmem:[#allocation206_spill] sm:$0xff] %v12723_v49  ;;  %14701 = vst [vmem:[#allocation207_spill] sm:$0xff] %v12725_v31  ;;  %v14313_v32 = vand.u32 4294901760, %v12723_v49  ;;  %v12739_v20 = vsub.f32 %v1186_v13, %v12725_v31  ;;  %vm12761_vm3 = vcmp.eq.s32.totalorder %v758_v7, 0  ;;  %v14712_v17 = vmov 0 }
  0xa6   : > { %14702 = vst [vmem:[#allocation208_spill] sm:$0xff] %v12730_v24  ;;  %14703 = vst [vmem:[#allocation209_spill] sm:$0xff] %v12733_v11  ;;  %v3453_v4 = vsub.f32 %v12715_v0, %v12730_v24  ;;  %v12747_v52 = vand.u32 4294901760, %v12733_v11  ;;  %v14713_v17 = vsel %vm12761_vm3, 4294967295, %v14712_v17  ;;  %vm14715_vm0 = vcmask 39936  }
  0xa7   : > { %14705 = vst [vmem:[#allocation210_spill] sm:$0xff] %v12739_v20  ;;  %14707 = vst [vmem:[#allocation211_spill] sm:$0xff] %v12742_v3  ;;  %v5335_v13 = vsub.f32 %v12723_v49, %v14313_v32  ;;  %v12759_v36 = vand.u32 4294901760, %v12739_v20 }
  0xa8   : > { %14708 = vst [vmem:[#allocation212_spill] sm:$0xff] %v12747_v52  ;;  %vm14709_vm1 = vmmov %vm14706_vm15  ;;  %v12767_v26 = vand.u32 4294901760, %v3453_v4 }
  0xa9   : > { %v12753_v53 = vsel %vm14709_vm1, %v468_v40, %v14312_v35  ;;  %14711 = vst [vmem:[#allocation214_spill] sm:$0xff] %v12759_v36  ;;  %14714 = vst [vmem:[#allocation215_spill] sm:$0xff] %v14713_v17  ;;  %v1545_v40 = vsub.f32 %v12733_v11, %v12747_v52  ;;  %v4883_v35 = vsel %vm12761_vm3, 0.0, %v12742_v3  ;;  %v5336_v14 = vand.u32 4294901760, %v5335_v13 }
  0xaa   : > { %14710 = vst [vmem:[#allocation213_spill] sm:$0xff] %v12753_v53  ;;  %v4981_v24 = vsel %vm14715_vm0, %v12753_v53, 0  ;;  %14716 = vst [vmem:[#allocation216_spill] sm:$0xff] %v12767_v26  ;;  %v1555_v7 = vsub.f32 %v12739_v20, %v12759_v36  ;;  %v14724_v13 = vrot.slane %v12742_v3, 1 }
  0xab   : > { %v12774_v32 = vand.u32 4294901760, %v4981_v24  ;;  %vm14718_vm15 = vmmov %vm14715_vm0  ;;  %v12779_v49 = vand.u32 4294901760, %v1545_v40  ;;  %10240 = vmatprep.mubr.f32.mxu0 %v5336_v14 }
  0xac   : > { %v4978_v0 = vsel %vm14718_vm15, %v4883_v35, 0  ;;  %vm14721_vm1 = vmmov %vm14715_vm0  ;;  %v12787_v17 = vand.u32 4294901760, %v1555_v7  ;;  %vm14725_vm0 = vcmask 1046528   ;;  %10241 = vmatmul.mubr.f32.gmra.mrb[28].mxu0 %v12767_v26 }
  0xad   : > { %14717 = vst [vmem:[#allocation217_spill] sm:$0xff] %v12774_v32  ;;  %14719 = vst [vmem:[#allocation218_spill] sm:$0xff] %v12779_v49  ;;  %v12781_v53 = vand.u32 4294901760, %v4978_v0  ;;  %v12784_v4 = vsub.f32 %v4981_v24, %v12774_v32  ;;  %v1188_v52 = vsel %vm14721_vm1, %v1124_v42, 0  ;;  %v1126_v36 = vsel %vm14725_vm0, %v1123_v59, %v14724_v13  ;;  %9640 = vmatprep.mubr.f32.mxu1 %v12779_v49 }
  0xae   : > { %14722 = vst [vmem:[#allocation220_spill] sm:$0xff] %v12787_v17  ;;  %v12789_v11 = vand.u32 4294901760, %v1188_v52  ;;  %vm14726_vm15 = vmmov %vm14721_vm1  ;;  %9641 = vmatmul.mubr.f32.gmra.mrb[28].mxu1 %v12787_v17  ;;  %vm14876_vm1 = vcmask 1044480  }
  0xaf   : > { %14720 = vst [vmem:[#allocation219_spill] sm:$0xff] %v12781_v53  ;;  %v12797_v35 = vsub.f32 %v4978_v0, %v12781_v53  ;;  %v14332_v24 = vand.u32 4294901760, %v12784_v4  ;;  %v1190_v42 = vsel %vm14726_vm15, %v1126_v36, 0  ;;  %vm14878_vm0 = vmmov %vm14876_vm1  ;;  %vm14903_vm15 = vcmask 1040384  }
  0xb0   : > { %14723 = vst [vmem:[#allocation221_spill] sm:$0xff] %v12789_v11  ;;  %v12803_v14 = vsub.f32 %v1188_v52, %v12789_v11  ;;  %v12805_v40 = vand.u32 4294901760, %v1190_v42 }
  0xb1   : > { %v14333_v59 = vand.u32 4294901760, %v12797_v35  ;;  %v5365_v7 = vsub.f32 %v12784_v4, %v14332_v24 }
  0xb2   : > { %14727 = vst [vmem:[#allocation222_spill] sm:$0xff] %v12803_v14  ;;  %14728 = vst [vmem:[#allocation223_spill] sm:$0xff] %v12805_v40  ;;  %v12812_v0 = vand.u32 4294901760, %v12803_v14  ;;  %v12815_v13 = vsub.f32 %v1190_v42, %v12805_v40 }
  0xb3   : > { %v5355_v36 = vsub.f32 %v12797_v35, %v14333_v59  ;;  %v5366_v52 = vand.u32 4294901760, %v5365_v7  ;;  %v14739_v7 = vld [vmem:[#allocation126_spill] sm:$0xff]  ;;  %v14742_v59 = vld [vmem:[#allocation153_spill] sm:$0xff] }
  0xb4   : > { %14729 = vst [vmem:[#allocation224_spill] sm:$0xff] %v12812_v0  ;;  %14730 = vst [vmem:[#allocation225_spill] sm:$0xff] %v12815_v13  ;;  %v1565_v26 = vsub.f32 %v12803_v14, %v12812_v0  ;;  %v12823_v17 = vand.u32 4294901760, %v12815_v13 }
  0xb5   : > { %v5356_v49 = vand.u32 4294901760, %v5355_v36  ;;  %v14740_v36 = vld [vmem:[#allocation140_spill] sm:$0xff] }
  0xb6   : > { %14731 = vst [vmem:[#allocation226_spill] sm:$0xff] %v12823_v17  ;;  %v12825_v3 = vand.u32 4294901760, %v1565_v26  ;;  %v1575_v24 = vsub.f32 %v12815_v13, %v12823_v17  ;;  %v14737_v26 = vld [vmem:[#allocation119_spill] sm:$0xff] }
  0xb7   : > { %10243 = vmatprep.mubr.f32.mxu0 %v5356_v49  ;;  %v14736_v49 = vld [vmem:[#allocation124_spill] sm:$0xff] }
  0xb8   : > { %14732 = vst [vmem:[#allocation227_spill] sm:$0xff] %v12825_v3  ;;  %10244 = vmatmul.mubr.f32.gmra.mrb[30].mxu0 %v5366_v52  ;;  %9643 = vmatprep.mubr.f32.mxu1 %v12825_v3  ;;  %v12830_v42 = vand.u32 4294901760, %v1575_v24  ;;  %v14738_v24 = vld [vmem:[#allocation137_spill] sm:$0xff]  ;;  %v14741_v52 = vld [vmem:[#allocation135_spill] sm:$0xff]  ;;  %v14744_v3 = vld [vmem:[#allocation156_spill] sm:$0xff] }
  0xb9   : > { %10248 = vmatprep.mubr.f32.mxu0 %v11719_v44 }
  0xba   : > { %14733 = vst [vmem:[#allocation228_spill] sm:$0xff] %v12830_v42  ;;  %9644 = vmatmul.mubr.f32.gmra.mrb[30].mxu1 %v12830_v42  ;;  %v14743_v42 = vld [vmem:[#allocation142_spill] sm:$0xff] }
  0xbb   : > { %9648 = vmatprep.mubr.f32.mxu1 %v11748_v61 }
  0xbc   : > { %10249 = vmatmul.mubr.f32.vlgmr.msra.gmra.mrb[0].mxu0 %v11712_v41 }
  0xbd   : > { %10297 = vmatpush3.msra.mxu0 %v11651_v10  ;;  %10251 = vmatprep.mubr.f32.mxu0 %v11769_v12  ;;  %v14735_v10 = vld [vmem:[#allocation110_spill] sm:$0xff] }
  0xbe   : > { %9649 = vmatmul.mubr.f32.vlgmr.msra.gmra.mrb[0].mxu1 %v11750_v62  ;;  %10346 = vmatprep.subr.mxu0 %v11634_v5 }
  0xbf   : > { %9697 = vmatpush3.msra.mxu1 %v11648_v9  ;;  %9651 = vmatprep.mubr.f32.mxu1 %v11783_v28  ;;  %v14734_v9 = vld [vmem:[#allocation121_spill] sm:$0xff] }
  0xc0   : > { %10252 = vmatmul.mubr.f32.gmra.mrb[2].mxu0 %v11781_v27  ;;  %9746 = vmatprep.subr.mxu1 %v11636_v6 }
  0xc1   : > { %10254 = vmatprep.mubr.f32.mxu0 %v11848_v57 }
  0xc2   : > { %9652 = vmatmul.mubr.f32.gmra.mrb[2].mxu1 %v11801_v45 }
  0xc3   : > { %9654 = vmatprep.mubr.f32.mxu1 %v11856_v46 }
  0xc4   : > { %10255 = vmatmul.mubr.f32.gmra.mrb[4].mxu0 %v11866_v19 }
  0xc5   : > { %10257 = vmatprep.mubr.f32.mxu0 %v11923_v50 }
  0xc6   : > { %9655 = vmatmul.mubr.f32.gmra.mrb[4].mxu1 %v11868_v21 }
  0xc7   : > { %9657 = vmatprep.mubr.f32.mxu1 %v11933_v47 }
  0xc8   : > { %10258 = vmatmul.mubr.f32.gmra.mrb[6].mxu0 %v11925_v22 }
  0xc9   : > { %10260 = vmatprep.mubr.f32.mxu0 %v11989_v54 }
  0xca   : > { %9658 = vmatmul.mubr.f32.gmra.mrb[6].mxu1 %v11949_v38 }
  0xcb   : > { %9660 = vmatprep.mubr.f32.mxu1 %v12002_v33 }
  0xcc   : > { %10261 = vmatmul.mubr.f32.gmra.mrb[8].mxu0 %v11996_v43 }
  0xcd   : > { %10263 = vmatprep.mubr.f32.mxu0 %v12055_v16 }
  0xce   : > { %9661 = vmatmul.mubr.f32.gmra.mrb[8].mxu1 %v12019_v60 }
  0xcf   : > { %9663 = vmatprep.mubr.f32.mxu1 %v12072_v23 }
  0xd0   : > { %10264 = vmatmul.mubr.f32.gmra.mrb[10].mxu0 %v12069_v63 }
  0xd1   : > { %10266 = vmatprep.mubr.f32.mxu0 %v12127_v25 }
  0xd2   : > { %9664 = vmatmul.mubr.f32.gmra.mrb[10].mxu1 %v12088_v29 }
  0xd3   : > { %9666 = vmatprep.mubr.f32.mxu1 %v12137_v48 }
  0xd4   : > { %10267 = vmatmul.mubr.f32.gmra.mrb[12].mxu0 %v12135_v30 }
  0xd5   : > { %10269 = vmatprep.mubr.f32.mxu0 %v12198_v18  ;;  %v14814_v18 = vld [vmem:[#allocation204_spill] sm:$0xff] }
  0xd6   : > { %9667 = vmatmul.mubr.f32.gmra.mrb[12].mxu1 %v12157_v37  ;;  %v14807_v37 = vld [vmem:[#allocation171_spill] sm:$0xff] }
  0xd7   : > { %9669 = vmatprep.mubr.f32.mxu1 %v12213_v2  ;;  %v14803_v2 = vld [vmem:[#allocation155_spill] sm:$0xff] }
  0xd8   : > { %10270 = vmatmul.mubr.f32.gmra.mrb[14].mxu0 %v12203_v56  ;;  %v14799_v56 = vld [vmem:[#allocation139_spill] sm:$0xff] }
  0xd9   : > { %10272 = vmatprep.mubr.f32.mxu0 %v12272_v51  ;;  %v14795_v51 = vld [vmem:[#allocation123_spill] sm:$0xff] }
  0xda   : > { %9670 = vmatmul.mubr.f32.gmra.mrb[14].mxu1 %v12221_v34  ;;  %v14791_v34 = vld [vmem:[#allocation107_spill] sm:$0xff] }
  0xdb   : > { %9672 = vmatprep.mubr.f32.mxu1 %v12283_v1  ;;  %v14787_v1 = vld [vmem:[#allocation93_spill] sm:$0xff] }
  0xdc   : > { %10273 = vmatmul.mubr.f32.gmra.mrb[16].mxu0 %v12267_v15  ;;  %v14783_v15 = vld [vmem:[#allocation77_spill] sm:$0xff] }
  0xdd   : > { %10275 = vmatprep.mubr.f32.mxu0 %v14734_v9  ;;  %v14745_v9 = vld [vmem:[#allocation151_spill] sm:$0xff] }
  0xde   : > { %9673 = vmatmul.mubr.f32.gmra.mrb[16].mxu1 %v14735_v10  ;;  %v14746_v10 = vld [vmem:[#allocation169_spill] sm:$0xff] }
  0xdf   : > { %9675 = vmatprep.mubr.f32.mxu1 %v14736_v49  ;;  %v14747_v49 = vld [vmem:[#allocation158_spill] sm:$0xff] }
  0xe0   : > { %10276 = vmatmul.mubr.f32.gmra.mrb[18].mxu0 %v14737_v26  ;;  %v14748_v26 = vld [vmem:[#allocation172_spill] sm:$0xff] }
  0xe1   : > { %10278 = vmatprep.mubr.f32.mxu0 %v14738_v24  ;;  %v14749_v24 = vld [vmem:[#allocation167_spill] sm:$0xff] }
  0xe2   : > { %9676 = vmatmul.mubr.f32.gmra.mrb[18].mxu1 %v14739_v7  ;;  %v14750_v7 = vld [vmem:[#allocation185_spill] sm:$0xff] }
  0xe3   : > { %9678 = vmatprep.mubr.f32.mxu1 %v14740_v36  ;;  %v14751_v36 = vld [vmem:[#allocation174_spill] sm:$0xff] }
  0xe4   : > { %10279 = vmatmul.mubr.f32.gmra.mrb[20].mxu0 %v14741_v52  ;;  %v14752_v52 = vld [vmem:[#allocation188_spill] sm:$0xff] }
  0xe5   : > { %10281 = vmatprep.mubr.f32.mxu0 %v14742_v59  ;;  %v14753_v59 = vld [vmem:[#allocation183_spill] sm:$0xff] }
  0xe6   : > { %9679 = vmatmul.mubr.f32.gmra.mrb[20].mxu1 %v14743_v42  ;;  %v14779_v42 = vld [vmem:[#allocation65_spill] sm:$0xff] }
  0xe7   : > { %9681 = vmatprep.mubr.f32.mxu1 %v14744_v3  ;;  %v14754_v3 = vld [vmem:[#allocation190_spill] sm:$0xff] }
  0xe8   : > { %10282 = vmatmul.mubr.f32.gmra.mrb[22].mxu0 %v14745_v9  ;;  %v14775_v9 = vld [vmem:[#allocation53_spill] sm:$0xff] }
  0xe9   : > { %10284 = vmatprep.mubr.f32.mxu0 %v14746_v10  ;;  %v14774_v10 = vld [vmem:[#allocation54_spill] sm:$0xff] }
  0xea   : > { %9682 = vmatmul.mubr.f32.gmra.mrb[22].mxu1 %v14747_v49  ;;  %v14771_v49 = vld [vmem:[#allocation41_spill] sm:$0xff] }
  0xeb   : > { %9684 = vmatprep.mubr.f32.mxu1 %v14748_v26  ;;  %v14770_v26 = vld [vmem:[#allocation42_spill] sm:$0xff] }
  0xec   : > { %10285 = vmatmul.mubr.f32.gmra.mrb[24].mxu0 %v14749_v24  ;;  %v14769_v24 = vld [vmem:[#allocation31_spill] sm:$0xff] }
  0xed   : > { %10287 = vmatprep.mubr.f32.mxu0 %v14750_v7  ;;  %v14768_v7 = vld [vmem:[#allocation40_spill] sm:$0xff] }
  0xee   : > { %9685 = vmatmul.mubr.f32.gmra.mrb[24].mxu1 %v14751_v36  ;;  %v14755_v36 = vld [vmem:[#allocation11_spill] sm:$0xff] }
  0xef   : > { %9687 = vmatprep.mubr.f32.mxu1 %v14752_v52  ;;  %v14767_v52 = vld [vmem:[#allocation30_spill] sm:$0xff] }
  0xf0   : > { %10288 = vmatmul.mubr.f32.gmra.mrb[26].mxu0 %v14753_v59  ;;  %v14756_v59 = vld [vmem:[#allocation13_spill] sm:$0xff] }
  0xf1   : > { %10290 = vmatprep.mubr.f32.mxu0 %v12705_v55  ;;  %v14757_v55 = vld [vmem:[#allocation9_spill] sm:$0xff] }
  0xf2   : > { %9688 = vmatmul.mubr.f32.gmra.mrb[26].mxu1 %v14754_v3  ;;  %v14765_v3 = vld [vmem:[#allocation22_spill] sm:$0xff] }
  0xf3   : > { %9690 = vmatprep.mubr.f32.mxu1 %v12717_v39  ;;  %v14758_v39 = vld [vmem:[#allocation16_spill] sm:$0xff] }
  0xf4   : > { %10291 = vmatmul.mubr.f32.gmra.mrb[28].mxu0 %v12700_v8  ;;  %v14759_v8 = vld [vmem:[#allocation14_spill] sm:$0xff] }
  0xf5   : > { %10293 = vmatprep.mubr.f32.mxu0 %v12781_v53  ;;  %v14760_v53 = vld [vmem:[#allocation3_spill] sm:$0xff] }
  0xf6   : > { %9691 = vmatmul.mubr.f32.gmra.mrb[28].mxu1 %v12725_v31  ;;  %v14763_v31 = vld [vmem:[#allocation2_spill] sm:$0xff] }
  0xf7   : > { %9693 = vmatprep.mubr.f32.mxu1 %v12789_v11  ;;  %v14761_v11 = vld [vmem:[#allocation18_spill] sm:$0xff] }
  0xf8   : > { %10294 = vmatmul.mubr.f32.gmra.mrb[30].mxu0 %v12774_v32  ;;  %v14762_v32 = vld [vmem:[#allocation17_spill] sm:$0xff] }
  0xf9   : > { %10298 = vmatprep.mubr.f32.mxu0 %v14755_v36 }
  0xfa   : > { %9694 = vmatmul.mubr.f32.gmra.mrb[30].mxu1 %v12805_v40  ;;  %v14764_v40 = vld [vmem:[#allocation28_spill] sm:$0xff] }
  0xfb   : > { %9698 = vmatprep.mubr.f32.mxu1 %v14756_v59 }
  0xfc   : > { %10299 = vmatmul.mubr.f32.vlgmr.msra.gmra.mrb[0].mxu0 %v14757_v55  ;;  %v14766_v55 = vld [vmem:[#allocation29_spill] sm:$0xff] }
  0xfd   : > { %10347 = vmatpush3.msra.mxu0 %v11634_v5  ;;  %10301 = vmatprep.mubr.f32.mxu0 %v14758_v39 }
  0xfe   : > { %9699 = vmatmul.mubr.f32.vlgmr.msra.gmra.mrb[0].mxu1 %v14759_v8  ;;  %10396 = vmatprep.subr.mxu0 %v14760_v53 }
  0xff   : > { %9747 = vmatpush3.msra.mxu1 %v11636_v6  ;;  %9701 = vmatprep.mubr.f32.mxu1 %v14761_v11  ;;  %v14772_v11 = vld [vmem:[#allocation51_spill] sm:$0xff] }
 0x100   : > { %10302 = vmatmul.mubr.f32.gmra.mrb[2].mxu0 %v14762_v32  ;;  %9796 = vmatprep.subr.mxu1 %v14763_v31  ;;  %v14773_v32 = vld [vmem:[#allocation46_spill] sm:$0xff] }
 0x101   : > { %10304 = vmatprep.mubr.f32.mxu0 %v14764_v40 }
 0x102   : > { %9702 = vmatmul.mubr.f32.gmra.mrb[2].mxu1 %v14765_v3  ;;  %v14776_v3 = vld [vmem:[#allocation63_spill] sm:$0xff] }
 0x103   : > { %9704 = vmatprep.mubr.f32.mxu1 %v14766_v55  ;;  %v14777_v55 = vld [vmem:[#allocation59_spill] sm:$0xff] }
 0x104   : > { %10305 = vmatmul.mubr.f32.gmra.mrb[4].mxu0 %v14767_v52  ;;  %v14778_v52 = vld [vmem:[#allocation66_spill] sm:$0xff] }
 0x105   : > { %10307 = vmatprep.mubr.f32.mxu0 %v14768_v7 }
 0x106   : > { %9705 = vmatmul.mubr.f32.gmra.mrb[4].mxu1 %v14769_v24  ;;  %v14780_v24 = vld [vmem:[#allocation75_spill] sm:$0xff] }
 0x107   : > { %9707 = vmatprep.mubr.f32.mxu1 %v14770_v26  ;;  %v14781_v26 = vld [vmem:[#allocation70_spill] sm:$0xff] }
 0x108   : > { %10308 = vmatmul.mubr.f32.gmra.mrb[6].mxu0 %v14771_v49  ;;  %v14782_v49 = vld [vmem:[#allocation78_spill] sm:$0xff] }
 0x109   : > { %10310 = vmatprep.mubr.f32.mxu0 %v14772_v11 }
 0x10a   : > { %9708 = vmatmul.mubr.f32.gmra.mrb[6].mxu1 %v14773_v32  ;;  %v14784_v32 = vld [vmem:[#allocation90_spill] sm:$0xff] }
 0x10b   : > { %9710 = vmatprep.mubr.f32.mxu1 %v14774_v10  ;;  %v14785_v10 = vld [vmem:[#allocation83_spill] sm:$0xff] }
 0x10c   : > { %10311 = vmatmul.mubr.f32.gmra.mrb[8].mxu0 %v14775_v9  ;;  %v14786_v9 = vld [vmem:[#allocation95_spill] sm:$0xff] }
 0x10d   : > { %10313 = vmatprep.mubr.f32.mxu0 %v14776_v3 }
 0x10e   : > { %9711 = vmatmul.mubr.f32.gmra.mrb[8].mxu1 %v14777_v55  ;;  %v14788_v55 = vld [vmem:[#allocation109_spill] sm:$0xff] }
 0x10f   : > { %9713 = vmatprep.mubr.f32.mxu1 %v14778_v52  ;;  %v14789_v52 = vld [vmem:[#allocation98_spill] sm:$0xff] }
 0x110   : > { %10314 = vmatmul.mubr.f32.gmra.mrb[10].mxu0 %v14779_v42  ;;  %v14790_v42 = vld [vmem:[#allocation112_spill] sm:$0xff] }
 0x111   : > { %10316 = vmatprep.mubr.f32.mxu0 %v14780_v24 }
 0x112   : > { %9714 = vmatmul.mubr.f32.gmra.mrb[10].mxu1 %v14781_v26  ;;  %v14792_v26 = vld [vmem:[#allocation125_spill] sm:$0xff] }
 0x113   : > { %9716 = vmatprep.mubr.f32.mxu1 %v14782_v49  ;;  %v14793_v49 = vld [vmem:[#allocation113_spill] sm:$0xff] }
 0x114   : > { %10317 = vmatmul.mubr.f32.gmra.mrb[12].mxu0 %v14783_v15  ;;  %v14794_v15 = vld [vmem:[#allocation128_spill] sm:$0xff] }
 0x115   : > { %10319 = vmatprep.mubr.f32.mxu0 %v14784_v32 }
 0x116   : > { %9717 = vmatmul.mubr.f32.gmra.mrb[12].mxu1 %v14785_v10  ;;  %v14796_v10 = vld [vmem:[#allocation141_spill] sm:$0xff] }
 0x117   : > { %9719 = vmatprep.mubr.f32.mxu1 %v14786_v9  ;;  %v14797_v9 = vld [vmem:[#allocation129_spill] sm:$0xff] }
 0x118   : > { %10320 = vmatmul.mubr.f32.gmra.mrb[14].mxu0 %v14787_v1  ;;  %v14798_v1 = vld [vmem:[#allocation144_spill] sm:$0xff] }
 0x119   : > { %10322 = vmatprep.mubr.f32.mxu0 %v14788_v55 }
 0x11a   : > { %9720 = vmatmul.mubr.f32.gmra.mrb[14].mxu1 %v14789_v52  ;;  %v14800_v52 = vld [vmem:[#allocation157_spill] sm:$0xff] }
 0x11b   : > { %9722 = vmatprep.mubr.f32.mxu1 %v14790_v42  ;;  %v14801_v42 = vld [vmem:[#allocation145_spill] sm:$0xff] }
 0x11c   : > { %10323 = vmatmul.mubr.f32.gmra.mrb[16].mxu0 %v14791_v34  ;;  %v14802_v34 = vld [vmem:[#allocation160_spill] sm:$0xff] }
 0x11d   : > { %10325 = vmatprep.mubr.f32.mxu0 %v14792_v26 }
 0x11e   : > { %9723 = vmatmul.mubr.f32.gmra.mrb[16].mxu1 %v14793_v49  ;;  %v14804_v49 = vld [vmem:[#allocation173_spill] sm:$0xff] }
 0x11f   : > { %9725 = vmatprep.mubr.f32.mxu1 %v14794_v15  ;;  %v14805_v15 = vld [vmem:[#allocation161_spill] sm:$0xff] }
 0x120   : > { %10326 = vmatmul.mubr.f32.gmra.mrb[18].mxu0 %v14795_v51  ;;  %v14806_v51 = vld [vmem:[#allocation176_spill] sm:$0xff] }
 0x121   : > { %10328 = vmatprep.mubr.f32.mxu0 %v14796_v10 }
 0x122   : > { %9726 = vmatmul.mubr.f32.gmra.mrb[18].mxu1 %v14797_v9  ;;  %v14808_v9 = vld [vmem:[#allocation189_spill] sm:$0xff] }
 0x123   : > { %9728 = vmatprep.mubr.f32.mxu1 %v14798_v1  ;;  %v14809_v1 = vld [vmem:[#allocation177_spill] sm:$0xff] }
 0x124   : > { %10329 = vmatmul.mubr.f32.gmra.mrb[20].mxu0 %v14799_v56  ;;  %v14810_v56 = vld [vmem:[#allocation187_spill] sm:$0xff] }
 0x125   : > { %10331 = vmatprep.mubr.f32.mxu0 %v14800_v52 }
 0x126   : > { %9729 = vmatmul.mubr.f32.gmra.mrb[20].mxu1 %v14801_v42  ;;  %v14811_v42 = vld [vmem:[#allocation206_spill] sm:$0xff] }
 0x127   : > { %9731 = vmatprep.mubr.f32.mxu1 %v14802_v34  ;;  %v14812_v34 = vld [vmem:[#allocation193_spill] sm:$0xff] }
 0x128   : > { %10332 = vmatmul.mubr.f32.gmra.mrb[22].mxu0 %v14803_v2  ;;  %v14813_v2 = vld [vmem:[#allocation209_spill] sm:$0xff] }
 0x129   : > { %10334 = vmatprep.mubr.f32.mxu0 %v14804_v49 }
 0x12a   : > { %9732 = vmatmul.mubr.f32.gmra.mrb[22].mxu1 %v14805_v15  ;;  %v14909_v15 = vld [vmem:[#allocation185_spill] sm:$0xff] }
 0x12b   : > { %9734 = vmatprep.mubr.f32.mxu1 %v14806_v51 }
 0x12c   : > { %10335 = vmatmul.mubr.f32.gmra.mrb[24].mxu0 %v14807_v37  ;;  %v14815_v37 = vand.u32 4294901760, %v14755_v36  ;;  %v14821_v36 = vld [vmem:[#allocation20_spill] sm:$0xff] }
 0x12d   : > { %10337 = vmatprep.mubr.f32.mxu0 %v14808_v9 }
 0x12e   : > { %9735 = vmatmul.mubr.f32.gmra.mrb[24].mxu1 %v14809_v1  ;;  %v14906_v1 = vld [vmem:[#allocation167_spill] sm:$0xff] }
 0x12f   : > { %9737 = vmatprep.mubr.f32.mxu1 %v12657_v58 }
 0x130   : > { %10338 = vmatmul.mubr.f32.gmra.mrb[26].mxu0 %v14810_v56  ;;  %v14816_v56 = vand.u32 4294901760, %v14756_v59  ;;  %v14829_v59 = vld [vmem:[#allocation43_spill] sm:$0xff] }
 0x131   : > { %10340 = vmatprep.mubr.f32.mxu0 %v14811_v42 }
 0x132   : > { %9738 = vmatmul.mubr.f32.gmra.mrb[26].mxu1 %v14812_v34  ;;  %v14817_v34 = vld [vmem:[#allocation12_spill] sm:$0xff] }
 0x133   : > { %9740 = vmatprep.mubr.f32.mxu1 %v14813_v2  ;;  %v14904_v2 = vld [vmem:[#allocation158_spill] sm:$0xff] }
 0x134   : > { %10341 = vmatmul.mubr.f32.gmra.mrb[28].mxu0 %v14814_v18  ;;  %v14818_v18 = vand.u32 4294901760, %v14758_v39  ;;  %v14824_v39 = vld [vmem:[#allocation32_spill] sm:$0xff] }
 0x135   : > { %10343 = vmatprep.mubr.f32.mxu0 %v12797_v35 }
 0x136   : > { %9741 = vmatmul.mubr.f32.gmra.mrb[28].mxu1 %v12739_v20  ;;  %v14819_v20 = vand.u32 4294901760, %v14759_v8  ;;  %v14826_v8 = vand.u32 4294901760, %v14768_v7  ;;  %v14835_v7 = vld [vmem:[#allocation60_spill] sm:$0xff] }
 0x137   : > { %9743 = vmatprep.mubr.f32.mxu1 %v12803_v14 }
 0x138   : > { %10344 = vmatmul.mubr.f32.gmra.mrb[30].mxu0 %v12784_v4 }
 0x139   : > { %10348 = vmatprep.mubr.f32.mxu0 %v14815_v37  ;;  %v14820_v37 = vld [vmem:[#allocation21_spill] sm:$0xff] }
 0x13a   : > { %9744 = vmatmul.mubr.f32.gmra.mrb[30].mxu1 %v12815_v13 }
 0x13b   : > { %9748 = vmatprep.mubr.f32.mxu1 %v14816_v56  ;;  %v14822_v56 = vand.u32 4294901760, %v14764_v40  ;;  %v14831_v40 = vld [vmem:[#allocation48_spill] sm:$0xff] }
 0x13c   : > { %10349 = vmatmul.mubr.f32.vlgmr.msra.gmra.mrb[0].mxu0 %v14817_v34  ;;  %v14833_v34 = vld [vmem:[#allocation56_spill] sm:$0xff] }
 0x13d   : > { %10397 = vmatpush3.msra.mxu0 %v14760_v53  ;;  %10351 = vmatprep.mubr.f32.mxu0 %v14818_v18  ;;  %v14823_v53 = vld [vmem:[#allocation24_spill] sm:$0xff]  ;;  %v14825_v18 = vld [vmem:[#allocation35_spill] sm:$0xff] }
 0x13e   : > { %9749 = vmatmul.mubr.f32.vlgmr.msra.gmra.mrb[0].mxu1 %v14819_v20  ;;  %10446 = vmatprep.subr.mxu0 %v11634_v5  ;;  %v14827_v20 = vld [vmem:[#allocation36_spill] sm:$0xff] }
 0x13f   : > { %9797 = vmatpush3.msra.mxu1 %v14763_v31  ;;  %9751 = vmatprep.mubr.f32.mxu1 %v14820_v37  ;;  %v14828_v31 = vld [vmem:[#allocation45_spill] sm:$0xff]  ;;  %v14901_v37 = vld [vmem:[#allocation202_spill] sm:$0xff] }
 0x140   : > { %10352 = vmatmul.mubr.f32.gmra.mrb[2].mxu0 %v14821_v36  ;;  %9846 = vmatprep.subr.mxu1 %v11636_v6  ;;  %v14830_v36 = vand.u32 4294901760, %v14772_v11  ;;  %v14839_v11 = vld [vmem:[#allocation72_spill] sm:$0xff]  ;;  %v14902_v13 = vrot.slane %v14901_v37, 7 }
 0x141   : > { %10354 = vmatprep.mubr.f32.mxu0 %v14822_v56  ;;  %v14832_v56 = vld [vmem:[#allocation58_spill] sm:$0xff] }
 0x142   : > { %9752 = vmatmul.mubr.f32.gmra.mrb[2].mxu1 %v14823_v53  ;;  %v14900_v53 = vld [vmem:[#allocation169_spill] sm:$0xff] }
 0x143   : > { %9754 = vmatprep.mubr.f32.mxu1 %v14824_v39  ;;  %v14899_v39 = vld [vmem:[#allocation151_spill] sm:$0xff] }
 0x144   : > { %10355 = vmatmul.mubr.f32.gmra.mrb[4].mxu0 %v14825_v18  ;;  %v14834_v18 = vand.u32 4294901760, %v14776_v3  ;;  %v14843_v3 = vld [vmem:[#allocation85_spill] sm:$0xff] }
 0x145   : > { %10357 = vmatprep.mubr.f32.mxu0 %v14826_v8  ;;  %v14836_v8 = vld [vmem:[#allocation69_spill] sm:$0xff] }
 0x146   : > { %9755 = vmatmul.mubr.f32.gmra.mrb[4].mxu1 %v14827_v20  ;;  %v14837_v20 = vld [vmem:[#allocation68_spill] sm:$0xff] }
 0x147   : > { %9757 = vmatprep.mubr.f32.mxu1 %v14828_v31 }
 0x148   : > { %10358 = vmatmul.mubr.f32.gmra.mrb[6].mxu0 %v14829_v59  ;;  %v14838_v59 = vand.u32 4294901760, %v14780_v24  ;;  %v14847_v24 = vld [vmem:[#allocation100_spill] sm:$0xff] }
 0x149   : > { %10360 = vmatprep.mubr.f32.mxu0 %v14830_v36  ;;  %v14840_v36 = vld [vmem:[#allocation82_spill] sm:$0xff] }
 0x14a   : > { %9758 = vmatmul.mubr.f32.gmra.mrb[6].mxu1 %v14831_v40  ;;  %v14841_v40 = vld [vmem:[#allocation81_spill] sm:$0xff] }
 0x14b   : > { %9760 = vmatprep.mubr.f32.mxu1 %v14832_v56  ;;  %v14898_v56 = vld [vmem:[#allocation213_spill] sm:$0xff] }
 0x14c   : > { %10361 = vmatmul.mubr.f32.gmra.mrb[8].mxu0 %v14833_v34  ;;  %v14842_v34 = vand.u32 4294901760, %v14784_v32  ;;  %v14851_v32 = vld [vmem:[#allocation116_spill] sm:$0xff]  ;;  %v14375_v31 = vrot.slane %v14898_v56, 1  ;;  %v14913_v56 = vld [vmem:[#allocation201_spill] sm:$0xff] }
 0x14d   : > { %10363 = vmatprep.mubr.f32.mxu0 %v14834_v18  ;;  %v14844_v18 = vld [vmem:[#allocation99_spill] sm:$0xff] }
 0x14e   : > { %9761 = vmatmul.mubr.f32.gmra.mrb[8].mxu1 %v14835_v7  ;;  %v14845_v7 = vld [vmem:[#allocation97_spill] sm:$0xff] }
 0x14f   : > { %9763 = vmatprep.mubr.f32.mxu1 %v14836_v8  ;;  %v14897_v8 = vld [vmem:[#allocation156_spill] sm:$0xff] }
 0x150   : > { %10364 = vmatmul.mubr.f32.gmra.mrb[10].mxu0 %v14837_v20  ;;  %v14846_v20 = vand.u32 4294901760, %v14788_v55  ;;  %v14855_v55 = vld [vmem:[#allocation132_spill] sm:$0xff] }
 0x151   : > { %10366 = vmatprep.mubr.f32.mxu0 %v14838_v59  ;;  %v14848_v59 = vld [vmem:[#allocation115_spill] sm:$0xff] }
 0x152   : > { %9764 = vmatmul.mubr.f32.gmra.mrb[10].mxu1 %v14839_v11  ;;  %v14849_v11 = vld [vmem:[#allocation111_spill] sm:$0xff] }
 0x153   : > { %9766 = vmatprep.mubr.f32.mxu1 %v14840_v36  ;;  %v14896_v36 = vld [vmem:[#allocation142_spill] sm:$0xff] }
 0x154   : > { %10367 = vmatmul.mubr.f32.gmra.mrb[12].mxu0 %v14841_v40  ;;  %v14850_v40 = vand.u32 4294901760, %v14792_v26  ;;  %v14859_v26 = vld [vmem:[#allocation148_spill] sm:$0xff] }
 0x155   : > { %10369 = vmatprep.mubr.f32.mxu0 %v14842_v34  ;;  %v14852_v34 = vld [vmem:[#allocation131_spill] sm:$0xff] }
 0x156   : > { %9767 = vmatmul.mubr.f32.gmra.mrb[12].mxu1 %v14843_v3  ;;  %v14853_v3 = vld [vmem:[#allocation127_spill] sm:$0xff] }
 0x157   : > { %9769 = vmatprep.mubr.f32.mxu1 %v14844_v18  ;;  %v14895_v18 = vld [vmem:[#allocation153_spill] sm:$0xff] }
 0x158   : > { %10370 = vmatmul.mubr.f32.gmra.mrb[14].mxu0 %v14845_v7  ;;  %v14854_v7 = vand.u32 4294901760, %v14796_v10  ;;  %v14863_v10 = vld [vmem:[#allocation164_spill] sm:$0xff] }
 0x159   : > { %10372 = vmatprep.mubr.f32.mxu0 %v14846_v20  ;;  %v14856_v20 = vld [vmem:[#allocation147_spill] sm:$0xff] }
 0x15a   : > { %9770 = vmatmul.mubr.f32.gmra.mrb[14].mxu1 %v14847_v24  ;;  %v14857_v24 = vld [vmem:[#allocation143_spill] sm:$0xff] }
 0x15b   : > { %9772 = vmatprep.mubr.f32.mxu1 %v14848_v59 }
 0x15c   : > { %10373 = vmatmul.mubr.f32.gmra.mrb[16].mxu0 %v14849_v11  ;;  %v14858_v11 = vand.u32 4294901760, %v14800_v52  ;;  %v14867_v52 = vld [vmem:[#allocation180_spill] sm:$0xff] }
 0x15d   : > { %10375 = vmatprep.mubr.f32.mxu0 %v14850_v40  ;;  %v14860_v40 = vld [vmem:[#allocation163_spill] sm:$0xff] }
 0x15e   : > { %9773 = vmatmul.mubr.f32.gmra.mrb[16].mxu1 %v14851_v32  ;;  %v14861_v32 = vld [vmem:[#allocation159_spill] sm:$0xff] }
 0x15f   : > { %9775 = vmatprep.mubr.f32.mxu1 %v14852_v34  ;;  %v14894_v34 = vld [vmem:[#allocation135_spill] sm:$0xff] }
 0x160   : > { %10376 = vmatmul.mubr.f32.gmra.mrb[18].mxu0 %v14853_v3  ;;  %v14862_v3 = vand.u32 4294901760, %v14804_v49  ;;  %v14871_v49 = vld [vmem:[#allocation196_spill] sm:$0xff] }
 0x161   : > { %10378 = vmatprep.mubr.f32.mxu0 %v14854_v7  ;;  %v14864_v7 = vld [vmem:[#allocation179_spill] sm:$0xff] }
 0x162   : > { %9776 = vmatmul.mubr.f32.gmra.mrb[18].mxu1 %v14855_v55  ;;  %v14865_v55 = vld [vmem:[#allocation175_spill] sm:$0xff] }
 0x163   : > { %9778 = vmatprep.mubr.f32.mxu1 %v14856_v20  ;;  %v14893_v20 = vld [vmem:[#allocation140_spill] sm:$0xff] }
 0x164   : > { %10379 = vmatmul.mubr.f32.gmra.mrb[20].mxu0 %v14857_v24  ;;  %v14866_v24 = vand.u32 4294901760, %v14808_v9  ;;  %v8797_v9 = vld [vmem:[%s13977_s3 + $0x18] sm:$0x1f] }
 0x165   : > { %10381 = vmatprep.mubr.f32.mxu0 %v14858_v11  ;;  %v14868_v11 = vld [vmem:[#allocation195_spill] sm:$0xff] }
 0x166   : > { %9779 = vmatmul.mubr.f32.gmra.mrb[20].mxu1 %v14859_v26  ;;  %v14869_v26 = vld [vmem:[#allocation191_spill] sm:$0xff] }
 0x167   : > { %9781 = vmatprep.mubr.f32.mxu1 %v14860_v40  ;;  %v14892_v40 = vld [vmem:[#allocation126_spill] sm:$0xff] }
 0x168   : > { %10382 = vmatmul.mubr.f32.gmra.mrb[22].mxu0 %v14861_v32  ;;  %v14870_v32 = vand.u32 4294901760, %v14811_v42  ;;  %v1056_v42 = vld [vmem:[%s13977_s3] sm:$0x1f] }
 0x169   : > { %10384 = vmatprep.mubr.f32.mxu0 %v14862_v3  ;;  %v14872_v3 = vld [vmem:[#allocation212_spill] sm:$0xff] }
 0x16a   : > { %9782 = vmatmul.mubr.f32.gmra.mrb[22].mxu1 %v14863_v10  ;;  %v14873_v10 = vld [vmem:[#allocation208_spill] sm:$0xff] }
 0x16b   : > { %9784 = vmatprep.mubr.f32.mxu1 %v14864_v7  ;;  %v367_v7 = vld [vmem:[%s319_s12] sm:$0xff] }
 0x16c   : > { %10385 = vmatmul.mubr.f32.gmra.mrb[24].mxu0 %v14865_v55  ;;  %v14875_v55 = vld [vmem:[#allocation214_spill] sm:$0xff]  ;;  %v506_v59 = vrot.slane %v367_v7, 7  ;;  %v14905_v7 = vld [vmem:[#allocation172_spill] sm:$0xff] }
 0x16d   : > { %10387 = vmatprep.mubr.f32.mxu0 %v14866_v24  ;;  %v14874_v24 = vand.u32 4294901760, %v12797_v35 }
 0x16e   : > { %9785 = vmatmul.mubr.f32.gmra.mrb[24].mxu1 %v14867_v52  ;;  %v14891_v52 = vld [vmem:[#allocation137_spill] sm:$0xff]  ;;  %v510_v14 = vsel %vm14903_vm15, %v14902_v13, %v506_v59  ;;  %v14911_v13 = vld [vmem:[#allocation188_spill] sm:$0xff] }
 0x16f   : > { %9787 = vmatprep.mubr.f32.mxu1 %v14868_v11  ;;  %v14890_v11 = vld [vmem:[#allocation119_spill] sm:$0xff]  ;;  %v6802_v58 = vrot.slane %v510_v14, 1 }
 0x170   : > { %10388 = vmatmul.mubr.f32.gmra.mrb[26].mxu0 %v14869_v26  ;;  %v13066_v26 = vsel %vm14878_vm0, %v1056_v42, 0  ;;  %v14884_v42 = vld [vmem:[#allocation94_spill] sm:$0xff]  ;;  %v14912_v14 = vld [vmem:[#allocation183_spill] sm:$0xff]  ;;  %vm14927_vm0 = vcmask 39936  }
 0x171   : > { %10390 = vmatprep.mubr.f32.mxu0 %v14870_v32  ;;  %v13060_v32 = vsel %vm14876_vm1, %v8797_v9, 0  ;;  %v13075_v9 = vand.u32 4294901760, %v13066_v26  ;;  %vm14907_vm1 = vcmask 1046528   ;;  %vm14931_vm15 = vmmov %vm14927_vm0 }
 0x172   : > { %9788 = vmatmul.mubr.f32.gmra.mrb[26].mxu1 %v14871_v49  ;;  %v13070_v35 = vand.u32 4294901760, %v13060_v32  ;;  %v14889_v49 = vld [vmem:[#allocation124_spill] sm:$0xff]  ;;  %v13141_v51 = vsel %vm14907_vm1, %v14375_v31, %v6802_v58  ;;  %v14914_v58 = vld [vmem:[#allocation190_spill] sm:$0xff]  ;;  %vm14932_vm1 = vmmov %vm14927_vm0 }
 0x173   : > { %9790 = vmatprep.mubr.f32.mxu1 %v14872_v3  ;;  %v14888_v3 = vld [vmem:[#allocation110_spill] sm:$0xff]  ;;  %14908 = vst [vmem:[#allocation11_spill] sm:$0xff] %v13141_v51  ;;  %v13153_v59 = vsub.f32 %v13066_v26, %v13075_v9  ;;  %v14916_v51 = vld [vmem:[#allocation205_spill] sm:$0xff] }
 0x174   : > { %10391 = vmatmul.mubr.f32.gmra.mrb[28].mxu0 %v14873_v10  ;;  %v14877_v10 = vand.u32 4294901760, %v12784_v4  ;;  %v14881_v4 = vld [vmem:[#allocation91_spill] sm:$0xff]  ;;  %v13147_v37 = vsub.f32 %v13060_v32, %v13070_v35 }
 0x175   : > { %10393 = vmatprep.mubr.f32.mxu0 %v14874_v24  ;;  %v14883_v24 = vld [vmem:[#allocation105_spill] sm:$0xff]  ;;  %v13163_v32 = vand.u32 4294901760, %v13153_v59 }
 0x176   : > { %9791 = vmatmul.mubr.f32.gmra.mrb[28].mxu1 %v14875_v55  ;;  %v14887_v55 = vld [vmem:[#allocation121_spill] sm:$0xff]  ;;  %v13158_v31 = vand.u32 4294901760, %v13147_v37 }
 0x177   : > { %9793 = vmatprep.mubr.f32.mxu1 %v12812_v0  ;;  %v14886_v0 = vld [vmem:[#allocation103_spill] sm:$0xff]  ;;  %14918 = vst [vmem:[#allocation16_spill] sm:$0xff] %v13163_v32 }
 0x178   : > { %10394 = vmatmul.mubr.f32.gmra.mrb[30].mxu0 %v14877_v10  ;;  %v14882_v10 = vld [vmem:[#allocation89_spill] sm:$0xff]  ;;  %14915 = vst [vmem:[#allocation13_spill] sm:$0xff] %v13158_v31  ;;  %v7201_v26 = vsub.f32 %v13147_v37, %v13158_v31 }
 0x179   : > { %10398 = vmatprep.mubr.f32.mxu0 %v11719_v44 }
 0x17a   : > { %9794 = vmatmul.mubr.f32.gmra.mrb[30].mxu1 %v12823_v17  ;;  %v14885_v17 = vld [vmem:[#allocation108_spill] sm:$0xff] }
 0x17b   : > { %9798 = vmatprep.mubr.f32.mxu1 %v11748_v61 }
 0x17c   : > { %10399 = vmatmul.mubr.f32.vlgmr.msra.gmra.mrb[0].mxu0 %v11712_v41 }
 0x17d   : > { %10447 = vmatpush3.msra.mxu0 %v11634_v5  ;;  %10401 = vmatprep.mubr.f32.mxu0 %v11769_v12  ;;  %v14879_v5 = vld [vmem:[#allocation88_spill] sm:$0xff] }
 0x17e   : > { %9799 = vmatmul.mubr.f32.vlgmr.msra.gmra.mrb[0].mxu1 %v11750_v62  ;;  %10496 = vmatprep.subr.mxu0 %v13070_v35 }
 0x17f   : > { %9847 = vmatpush3.msra.mxu1 %v11636_v6  ;;  %9801 = vmatprep.mubr.f32.mxu1 %v11783_v28  ;;  %v14880_v6 = vld [vmem:[#allocation79_spill] sm:$0xff] }
 0x180   : > { %10402 = vmatmul.mubr.f32.gmra.mrb[2].mxu0 %v11781_v27  ;;  %9896 = vmatprep.subr.mxu1 %v13075_v9 }
 0x181   : > { %10404 = vmatprep.mubr.f32.mxu0 %v11848_v57 }
 0x182   : > { %9802 = vmatmul.mubr.f32.gmra.mrb[2].mxu1 %v11801_v45 }
 0x183   : > { %9804 = vmatprep.mubr.f32.mxu1 %v11856_v46 }
 0x184   : > { %10405 = vmatmul.mubr.f32.gmra.mrb[4].mxu0 %v11866_v19 }
 0x185   : > { %10407 = vmatprep.mubr.f32.mxu0 %v11923_v50 }
 0x186   : > { %9805 = vmatmul.mubr.f32.gmra.mrb[4].mxu1 %v11868_v21 }
 0x187   : > { %9807 = vmatprep.mubr.f32.mxu1 %v11933_v47 }
 0x188   : > { %10408 = vmatmul.mubr.f32.gmra.mrb[6].mxu0 %v11925_v22 }
 0x189   : > { %10410 = vmatprep.mubr.f32.mxu0 %v11989_v54 }
 0x18a   : > { %9808 = vmatmul.mubr.f32.gmra.mrb[6].mxu1 %v11949_v38 }
 0x18b   : > { %9810 = vmatprep.mubr.f32.mxu1 %v12002_v33 }
 0x18c   : > { %10411 = vmatmul.mubr.f32.gmra.mrb[8].mxu0 %v11996_v43 }
 0x18d   : > { %10413 = vmatprep.mubr.f32.mxu0 %v12055_v16 }
 0x18e   : > { %9811 = vmatmul.mubr.f32.gmra.mrb[8].mxu1 %v12019_v60 }
 0x18f   : > { %9813 = vmatprep.mubr.f32.mxu1 %v12072_v23 }
 0x190   : > { %10414 = vmatmul.mubr.f32.gmra.mrb[10].mxu0 %v12069_v63 }
 0x191   : > { %10416 = vmatprep.mubr.f32.mxu0 %v12127_v25 }
 0x192   : > { %9814 = vmatmul.mubr.f32.gmra.mrb[10].mxu1 %v12088_v29 }
 0x193   : > { %9816 = vmatprep.mubr.f32.mxu1 %v12137_v48 }
 0x194   : > { %10417 = vmatmul.mubr.f32.gmra.mrb[12].mxu0 %v12135_v30 }
 0x195   : > { %10419 = vmatprep.mubr.f32.mxu0 %v14879_v5 }
 0x196   : > { %9817 = vmatmul.mubr.f32.gmra.mrb[12].mxu1 %v14880_v6 }
 0x197   : > { %9819 = vmatprep.mubr.f32.mxu1 %v14881_v4 }
 0x198   : > { %10420 = vmatmul.mubr.f32.gmra.mrb[14].mxu0 %v14882_v10 }
 0x199   : > { %10422 = vmatprep.mubr.f32.mxu0 %v14883_v24 }
 0x19a   : > { %9820 = vmatmul.mubr.f32.gmra.mrb[14].mxu1 %v14884_v42 }
 0x19b   : > { %9822 = vmatprep.mubr.f32.mxu1 %v14885_v17 }
 0x19c   : > { %10423 = vmatmul.mubr.f32.gmra.mrb[16].mxu0 %v14886_v0 }
 0x19d   : > { %10425 = vmatprep.mubr.f32.mxu0 %v14887_v55 }
 0x19e   : > { %9823 = vmatmul.mubr.f32.gmra.mrb[16].mxu1 %v14888_v3 }
 0x19f   : > { %9825 = vmatprep.mubr.f32.mxu1 %v14889_v49 }
 0x1a0   : > { %10426 = vmatmul.mubr.f32.gmra.mrb[18].mxu0 %v14890_v11 }
 0x1a1   : > { %10428 = vmatprep.mubr.f32.mxu0 %v14891_v52 }
 0x1a2   : > { %9826 = vmatmul.mubr.f32.gmra.mrb[18].mxu1 %v14892_v40 }
 0x1a3   : > { %9828 = vmatprep.mubr.f32.mxu1 %v14893_v20 }
 0x1a4   : > { %10429 = vmatmul.mubr.f32.gmra.mrb[20].mxu0 %v14894_v34 }
 0x1a5   : > { %10431 = vmatprep.mubr.f32.mxu0 %v14895_v18 }
 0x1a6   : > { %9829 = vmatmul.mubr.f32.gmra.mrb[20].mxu1 %v14896_v36 }
 0x1a7   : > { %9831 = vmatprep.mubr.f32.mxu1 %v14897_v8 }
 0x1a8   : > { %10432 = vmatmul.mubr.f32.gmra.mrb[22].mxu0 %v14899_v39  ;;  %v14910_v39 = vld [vmem:[#allocation174_spill] sm:$0xff] }
 0x1a9   : > { %10434 = vmatprep.mubr.f32.mxu0 %v14900_v53 }
 0x1aa   : > { %9832 = vmatmul.mubr.f32.gmra.mrb[22].mxu1 %v14904_v2 }
 0x1ab   : > { %9834 = vmatprep.mubr.f32.mxu1 %v14905_v7 }
 0x1ac   : > { %10435 = vmatmul.mubr.f32.gmra.mrb[24].mxu0 %v14906_v1 }
 0x1ad   : > { %10437 = vmatprep.mubr.f32.mxu0 %v14909_v15  ;;  %v3464_v15 = vsub.f32 %v13153_v59, %v13163_v32 }
 0x1ae   : > { %9835 = vmatmul.mubr.f32.gmra.mrb[24].mxu1 %v14910_v39  ;;  %v14917_v39 = vld [vmem:[#allocation199_spill] sm:$0xff] }
 0x1af   : > { %9837 = vmatprep.mubr.f32.mxu1 %v14911_v13  ;;  %v14919_v13 = vld [vmem:[#allocation219_spill] sm:$0xff] }
 0x1b0   : > { %10438 = vmatmul.mubr.f32.gmra.mrb[26].mxu0 %v14912_v14  ;;  %v14920_v14 = vld [vmem:[#allocation207_spill] sm:$0xff] }
 0x1b1   : > { %10440 = vmatprep.mubr.f32.mxu0 %v14913_v56  ;;  %v14921_v56 = vld [vmem:[#allocation221_spill] sm:$0xff] }
 0x1b2   : > { %9838 = vmatmul.mubr.f32.gmra.mrb[26].mxu1 %v14914_v58  ;;  %v14922_v58 = vld [vmem:[#allocation217_spill] sm:$0xff] }
 0x1b3   : > { %9840 = vmatprep.mubr.f32.mxu1 %v14916_v51  ;;  %v13175_v51 = vand.u32 4294901760, %v7201_v26 }
 0x1b4   : > { %10441 = vmatmul.mubr.f32.gmra.mrb[28].mxu0 %v14917_v39  ;;  %v14923_v39 = vld [vmem:[#allocation223_spill] sm:$0xff] }
 0x1b5   : > { %10443 = vmatprep.mubr.f32.mxu0 %v14919_v13 }
 0x1b6   : > { %9841 = vmatmul.mubr.f32.gmra.mrb[28].mxu1 %v14920_v14  ;;  %v13179_v14 = vand.u32 4294901760, %v3464_v15 }
 0x1b7   : > { %9843 = vmatprep.mubr.f32.mxu1 %v14921_v56 }
 0x1b8   : > { %10444 = vmatmul.mubr.f32.gmra.mrb[30].mxu0 %v14922_v58 }
 0x1b9   : > { %10448 = vmatprep.mubr.f32.mxu0 %v11719_v44  ;;  %v14925_v44 = vld [vmem:[#allocation5_spill] sm:$0xff] }
 0x1ba   : > { %9844 = vmatmul.mubr.f32.gmra.mrb[30].mxu1 %v14923_v39 }
 0x1bb   : > { %9848 = vmatprep.mubr.f32.mxu1 %v11748_v61 }
 0x1bc   : > { %10449 = vmatmul.mubr.f32.vlgmr.msra.gmra.mrb[0].mxu0 %v11712_v41 }
 0x1bd   : > { %10497 = vmatpush3.msra.mxu0 %v13070_v35  ;;  %10451 = vmatprep.mubr.f32.mxu0 %v11769_v12  ;;  %v14947_v12 = vld [vmem:[#allocation33_spill] sm:$0xff] }
 0x1be   : > { %9849 = vmatmul.mubr.f32.vlgmr.msra.gmra.mrb[0].mxu1 %v11750_v62  ;;  %10546 = vmatprep.subr.mxu0 %v13175_v51  ;;  %v14928_v62 = vld [vmem:[#allocation6_spill] sm:$0xff] }
 0x1bf   : > { %9897 = vmatpush3.msra.mxu1 %v13075_v9  ;;  %9851 = vmatprep.mubr.f32.mxu1 %v11783_v28 }
 0x1c0   : > { %10452 = vmatmul.mubr.f32.gmra.mrb[2].mxu0 %v11781_v27  ;;  %9946 = vmatprep.subr.mxu1 %v13179_v14 }
 0x1c1   : > { %10454 = vmatprep.mubr.f32.mxu0 %v11848_v57  ;;  %v1026_v57 = vsel %vm11722_vm5, 0.0, %v14928_v62  ;;  %v14939_v62 = vld [vmem:[#allocation19_spill] sm:$0xff]  ;;  %vm14946_vm5 = vmmov %vm14927_vm0 }
 0x1c2   : > { %9852 = vmatmul.mubr.f32.gmra.mrb[2].mxu1 %v11801_v45 }
 0x1c3   : > { %9854 = vmatprep.mubr.f32.mxu1 %v11856_v46 }
 0x1c4   : > { %10455 = vmatmul.mubr.f32.gmra.mrb[4].mxu0 %v11866_v19 }
 0x1c5   : > { %10457 = vmatprep.mubr.f32.mxu0 %v11923_v50  ;;  %v14926_v50 = vsel %vm11683_vm4, 0.0, %v14925_v44  ;;  %vm14937_vm4 = vmmov %vm14927_vm0 }
 0x1c6   : > { %9855 = vmatmul.mubr.f32.gmra.mrb[4].mxu1 %v11868_v21  ;;  %v2976_v61 = vsel %vm14927_vm0, %v14926_v50, 0 }
 0x1c7   : > { %9857 = vmatprep.mubr.f32.mxu1 %v11933_v47 }
 0x1c8   : > { %10458 = vmatmul.mubr.f32.gmra.mrb[6].mxu0 %v11925_v22 }
 0x1c9   : > { %10460 = vmatprep.mubr.f32.mxu0 %v11989_v54  ;;  %v14930_v54 = vld [vmem:[#allocation7_spill] sm:$0xff] }
 0x1ca   : > { %9858 = vmatmul.mubr.f32.gmra.mrb[6].mxu1 %v11949_v38 }
 0x1cb   : > { %9860 = vmatprep.mubr.f32.mxu1 %v12002_v33 }
 0x1cc   : > { %10461 = vmatmul.mubr.f32.gmra.mrb[8].mxu0 %v11996_v43 }
 0x1cd   : > { %10463 = vmatprep.mubr.f32.mxu0 %v12055_v16  ;;  %v2979_v16 = vsel %vm14931_vm15, %v14930_v54, 0  ;;  %vm15016_vm15 = vmmov %vm14932_vm1 }
 0x1ce   : > { %9861 = vmatmul.mubr.f32.gmra.mrb[8].mxu1 %v12019_v60 }
 0x1cf   : > { %9863 = vmatprep.mubr.f32.mxu1 %v12072_v23 }
 0x1d0   : > { %10464 = vmatmul.mubr.f32.gmra.mrb[10].mxu0 %v12069_v63 }
 0x1d1   : > { %10466 = vmatprep.mubr.f32.mxu0 %v12127_v25  ;;  %v13238_v25 = vand.u32 4294901760, %v2976_v61 }
 0x1d2   : > { %9864 = vmatmul.mubr.f32.gmra.mrb[10].mxu1 %v12088_v29 }
 0x1d3   : > { %9866 = vmatprep.mubr.f32.mxu1 %v12137_v48  ;;  %v13253_v44 = vsub.f32 %v2976_v61, %v13238_v25  ;;  %v14944_v61 = vld [vmem:[#allocation188_spill] sm:$0xff] }
 0x1d4   : > { %10467 = vmatmul.mubr.f32.gmra.mrb[12].mxu0 %v12135_v30 }
 0x1d5   : > { %10469 = vmatprep.mubr.f32.mxu0 %v14879_v5  ;;  %v14934_v5 = vld [vmem:[#allocation10_spill] sm:$0xff]  ;;  %14936 = vst [vmem:[#allocation14_spill] sm:$0xff] %v13253_v44  ;;  %v14382_v32 = vand.u32 4294901760, %v13253_v44 }
 0x1d6   : > { %9867 = vmatmul.mubr.f32.gmra.mrb[12].mxu1 %v14880_v6  ;;  %v1028_v26 = vsel %vm11822_vm6, 0.0, %v14934_v5  ;;  %v14942_v5 = vld [vmem:[#allocation174_spill] sm:$0xff]  ;;  %vm14953_vm6 = vmmov %vm14927_vm0 }
 0x1d7   : > { %9869 = vmatprep.mubr.f32.mxu1 %v14881_v4  ;;  %v2988_v50 = vsel %vm14937_vm4, %v1028_v26, 0  ;;  %v14945_v26 = vld [vmem:[#allocation183_spill] sm:$0xff] }
 0x1d8   : > { %10470 = vmatmul.mubr.f32.gmra.mrb[14].mxu0 %v14882_v10  ;;  %v13270_v31 = vand.u32 4294901760, %v2988_v50 }
 0x1d9   : > { %10472 = vmatprep.mubr.f32.mxu0 %v14883_v24 }
 0x1da   : > { %9870 = vmatmul.mubr.f32.gmra.mrb[14].mxu1 %v14884_v42 }
 0x1db   : > { %9872 = vmatprep.mubr.f32.mxu1 %v14885_v17 }
 0x1dc   : > { %10473 = vmatmul.mubr.f32.gmra.mrb[16].mxu0 %v14886_v0  ;;  %v15021_v0 = vld [vmem:[#allocation73_spill] sm:$0xff] }
 0x1dd   : > { %10475 = vmatprep.mubr.f32.mxu0 %v14887_v55  ;;  %v2982_v55 = vsel %vm14932_vm1, %v1026_v57, 0  ;;  %v1030_v57 = vsel %vm11890_vm7, 0.0, %v14939_v62  ;;  %v14955_v62 = vld [vmem:[#allocation44_spill] sm:$0xff]  ;;  %vm14961_vm7 = vmmov %vm14927_vm0 }
 0x1de   : > { %9873 = vmatmul.mubr.f32.gmra.mrb[16].mxu1 %v14888_v3  ;;  %v13249_v15 = vand.u32 4294901760, %v2982_v55 }
 0x1df   : > { %9875 = vmatprep.mubr.f32.mxu1 %v14889_v49 }
 0x1e0   : > { %10476 = vmatmul.mubr.f32.gmra.mrb[18].mxu0 %v14890_v11  ;;  %v13266_v24 = vsub.f32 %v2982_v55, %v13249_v15 }
 0x1e1   : > { %10478 = vmatprep.mubr.f32.mxu0 %v14891_v52  ;;  %v14933_v52 = vld [vmem:[#allocation151_spill] sm:$0xff] }
 0x1e2   : > { %9876 = vmatmul.mubr.f32.gmra.mrb[18].mxu1 %v14892_v40  ;;  %14943 = vst [vmem:[#allocation2_spill] sm:$0xff] %v13266_v24 }
 0x1e3   : > { %9878 = vmatprep.mubr.f32.mxu1 %v14893_v20 }
 0x1e4   : > { %10479 = vmatmul.mubr.f32.gmra.mrb[20].mxu0 %v14894_v34  ;;  %v1034_v34 = vsel %vm12028_vm9, 0.0, %v14955_v62  ;;  %vm14973_vm9 = vmmov %vm14927_vm0 }
 0x1e5   : > { %10481 = vmatprep.mubr.f32.mxu0 %v14895_v18  ;;  %v13246_v18 = vand.u32 4294901760, %v2979_v16  ;;  %v3006_v62 = vsel %vm14961_vm7, %v1034_v34, 0 }
 0x1e6   : > { %9879 = vmatmul.mubr.f32.gmra.mrb[20].mxu1 %v14896_v36 }
 0x1e7   : > { %9881 = vmatprep.mubr.f32.mxu1 %v14897_v8  ;;  %v13262_v54 = vsub.f32 %v2979_v16, %v13246_v18  ;;  %v1032_v16 = vsel %vm11966_vm8, 0.0, %v14947_v12  ;;  %vm14966_vm8 = vmmov %vm14927_vm0 }
 0x1e8   : > { %10482 = vmatmul.mubr.f32.gmra.mrb[22].mxu0 %v14933_v52  ;;  %v14950_v52 = vld [vmem:[#allocation190_spill] sm:$0xff]  ;;  %v3000_v12 = vsel %vm14953_vm6, %v1032_v16, 0  ;;  %vm15044_vm6 = vmmov %vm14937_vm4 }
 0x1e9   : > { %10484 = vmatprep.mubr.f32.mxu0 %v14900_v53  ;;  %v14938_v53 = vld [vmem:[#allocation185_spill] sm:$0xff]  ;;  %14941 = vst [vmem:[#allocation3_spill] sm:$0xff] %v13262_v54  ;;  %v13303_v11 = vand.u32 4294901760, %v3000_v12 }
 0x1ea   : > { %9882 = vmatmul.mubr.f32.gmra.mrb[22].mxu1 %v14904_v2 }
 0x1eb   : > { %9884 = vmatprep.mubr.f32.mxu1 %v14905_v7  ;;  %v15002_v7 = vld [vmem:[#allocation87_spill] sm:$0xff] }
 0x1ec   : > { %10485 = vmatmul.mubr.f32.gmra.mrb[24].mxu0 %v14906_v1  ;;  %v14949_v1 = vld [vmem:[#allocation201_spill] sm:$0xff] }
 0x1ed   : > { %10487 = vmatprep.mubr.f32.mxu0 %v14938_v53  ;;  %v2994_v53 = vsel %vm14946_vm5, %v1030_v57, 0  ;;  %v13286_v57 = vsub.f32 %v2988_v50, %v13270_v31  ;;  %v14959_v50 = vand.u32 4294901760, %v13266_v24  ;;  %vm15038_vm5 = vmmov %vm14937_vm4 }
 0x1ee   : > { %9885 = vmatmul.mubr.f32.gmra.mrb[24].mxu1 %v14942_v5  ;;  %v13288_v5 = vand.u32 4294901760, %v2994_v53 }
 0x1ef   : > { %9887 = vmatprep.mubr.f32.mxu1 %v14944_v61  ;;  %v14951_v61 = vld [vmem:[#allocation205_spill] sm:$0xff]  ;;  %14952 = vst [vmem:[#allocation28_spill] sm:$0xff] %v13286_v57 }
 0x1f0   : > { %10488 = vmatmul.mubr.f32.gmra.mrb[26].mxu0 %v14945_v26  ;;  %v3143_v26 = vsub.f32 %v13253_v44, %v14382_v32  ;;  %v3163_v44 = vsub.f32 %v13266_v24, %v14959_v50  ;;  %v13308_v55 = vsub.f32 %v2994_v53, %v13288_v5  ;;  %v13324_v53 = vand.u32 4294901760, %v3006_v62 }
 0x1f1   : > { %10490 = vmatprep.mubr.f32.mxu0 %v14949_v1  ;;  %v14954_v1 = vld [vmem:[#allocation199_spill] sm:$0xff] }
 0x1f2   : > { %9888 = vmatmul.mubr.f32.gmra.mrb[26].mxu1 %v14950_v52  ;;  %v14958_v52 = vand.u32 4294901760, %v13262_v54  ;;  %v3144_v16 = vand.u32 4294901760, %v3143_v26  ;;  %14960 = vst [vmem:[#allocation40_spill] sm:$0xff] %v13308_v55  ;;  %v3164_v24 = vand.u32 4294901760, %v3163_v44  ;;  %v13318_v26 = vsub.f32 %v3000_v12, %v13303_v11  ;;  %v14969_v44 = vld [vmem:[#allocation67_spill] sm:$0xff] }
 0x1f3   : > { %9890 = vmatprep.mubr.f32.mxu1 %v14951_v61  ;;  %v14957_v61 = vld [vmem:[#allocation207_spill] sm:$0xff]  ;;  %v14391_v34 = vand.u32 4294901760, %v13308_v55  ;;  %v1038_v12 = vsel %vm12176_vm11, 0.0, %v14969_v44  ;;  %v14974_v44 = vld [vmem:[#allocation50_spill] sm:$0xff]  ;;  %vm14988_vm11 = vmmov %vm14927_vm0 }
 0x1f4   : > { %10491 = vmatmul.mubr.f32.gmra.mrb[28].mxu0 %v14954_v1  ;;  %v3153_v32 = vsub.f32 %v13262_v54, %v14958_v52  ;;  %v14962_v1 = vld [vmem:[#allocation55_spill] sm:$0xff]  ;;  %14965 = vst [vmem:[#allocation51_spill] sm:$0xff] %v13318_v26 }
 0x1f5   : > { %10493 = vmatprep.mubr.f32.mxu0 %v14919_v13  ;;  %v14390_v13 = vand.u32 4294901760, %v13286_v57  ;;  %v1036_v54 = vsel %vm12107_vm10, 0.0, %v14962_v1  ;;  %v14967_v52 = vld [vmem:[#allocation27_spill] sm:$0xff]  ;;  %vm14981_vm10 = vmmov %vm14927_vm0 }
 0x1f6   : > { %9891 = vmatmul.mubr.f32.gmra.mrb[28].mxu1 %v14957_v61  ;;  %v14964_v61 = vld [vmem:[#allocation26_spill] sm:$0xff]  ;;  %v3154_v50 = vand.u32 4294901760, %v3153_v32  ;;  %v3012_v1 = vsel %vm14966_vm8, %v1036_v54, 0  ;;  %v14968_v32 = vld [vmem:[#allocation37_spill] sm:$0xff]  ;;  %vm8622_vm8 = vcmask 261120  }
 0x1f7   : > { %9893 = vmatprep.mubr.f32.mxu1 %v14921_v56  ;;  %v15000_v56 = vld [vmem:[#allocation149_spill] sm:$0xff] }
 0x1f8   : > { %10494 = vmatmul.mubr.f32.gmra.mrb[30].mxu0 %v14922_v58  ;;  %v3183_v58 = vsub.f32 %v13286_v57, %v14390_v13  ;;  %v13334_v13 = vand.u32 4294901760, %v3012_v1 }
 0x1f9   : > { %10498 = vmatprep.mubr.f32.mxu0 %v14964_v61  ;;  %v14975_v61 = vld [vmem:[#allocation80_spill] sm:$0xff] }
 0x1fa   : > { %9894 = vmatmul.mubr.f32.gmra.mrb[30].mxu1 %v14923_v39  ;;  %v3184_v54 = vand.u32 4294901760, %v3183_v58  ;;  %v14978_v58 = vand.u32 4294901760, %v13318_v26  ;;  %v14984_v39 = vld [vmem:[#allocation62_spill] sm:$0xff] }
 0x1fb   : > { %9898 = vmatprep.mubr.f32.mxu1 %v3144_v16 }
 0x1fc   : > { %10499 = vmatmul.mubr.f32.vlgmr.msra.gmra.mrb[0].mxu0 %v14967_v52  ;;  %v13342_v52 = vsub.f32 %v3006_v62, %v13324_v53  ;;  %v13356_v62 = vsub.f32 %v3012_v1, %v13334_v13 }
 0x1fd   : > { %10547 = vmatpush3.msra.mxu0 %v13175_v51  ;;  %10501 = vmatprep.mubr.f32.mxu0 %v14968_v32  ;;  %v3203_v51 = vsub.f32 %v13308_v55, %v14391_v34  ;;  %v14972_v32 = vld [vmem:[#allocation39_spill] sm:$0xff]  ;;  %v3223_v34 = vsub.f32 %v13318_v26, %v14978_v58  ;;  %v14985_v58 = vld [vmem:[#allocation25_spill] sm:$0xff] }
 0x1fe   : > { %9899 = vmatmul.mubr.f32.vlgmr.msra.gmra.mrb[0].mxu1 %v3154_v50  ;;  %10596 = vmatprep.subr.mxu0 %v13147_v37  ;;  %14971 = vst [vmem:[#allocation63_spill] sm:$0xff] %v13342_v52  ;;  %v3018_v50 = vsel %vm14973_vm9, %v1038_v12, 0  ;;  %14979 = vst [vmem:[#allocation75_spill] sm:$0xff] %v13356_v62  ;;  %v14399_v12 = vand.u32 4294901760, %v13342_v52  ;;  %v14994_v26 = vand.u32 4294901760, %v13356_v62 }
 0x1ff   : > { %9947 = vmatpush3.msra.mxu1 %v13179_v14  ;;  %9901 = vmatprep.mubr.f32.mxu1 %v3164_v24  ;;  %v1040_v14 = vsel %vm12252_vm12, 0.0, %v14975_v61  ;;  %v14977_v24 = vld [vmem:[#allocation15_spill] sm:$0xff]  ;;  %v13359_v55 = vand.u32 4294901760, %v3018_v50  ;;  %v14982_v61 = vld [vmem:[#allocation96_spill] sm:$0xff]  ;;  %v3224_v1 = vand.u32 4294901760, %v3223_v34  ;;  %vm14998_vm12 = vmmov %vm14927_vm0 }
 0x200   : > { %10502 = vmatmul.mubr.f32.gmra.mrb[2].mxu0 %v14972_v32  ;;  %9996 = vmatprep.subr.mxu1 %v13153_v59  ;;  %v3204_v32 = vand.u32 4294901760, %v3203_v51  ;;  %v3024_v16 = vsel %vm14981_vm10, %v1040_v14, 0  ;;  %v3243_v51 = vsub.f32 %v13342_v52, %v14399_v12  ;;  %v3263_v12 = vsub.f32 %v13356_v62, %v14994_v26  ;;  %v15003_v26 = vld [vmem:[#allocation49_spill] sm:$0xff] }
 0x201   : > { %10504 = vmatprep.mubr.f32.mxu0 %v14974_v44  ;;  %v14980_v44 = vld [vmem:[#allocation52_spill] sm:$0xff]  ;;  %v13375_v14 = vand.u32 4294901760, %v3024_v16 }
 0x202   : > { %9902 = vmatmul.mubr.f32.gmra.mrb[2].mxu1 %v14977_v24  ;;  %v1042_v24 = vsel %vm12321_vm13, 0.0, %v14982_v61  ;;  %v14989_v61 = vld [vmem:[#allocation64_spill] sm:$0xff]  ;;  %v3244_v52 = vand.u32 4294901760, %v3243_v51  ;;  %vm15001_vm13 = vnez %v15000_v56  ;;  %v3264_v62 = vand.u32 4294901760, %v3263_v12  ;;  %v15010_v12 = vld [vmem:[#allocation165_spill] sm:$0xff] }
 0x203   : > { %9904 = vmatprep.mubr.f32.mxu1 %v3184_v54  ;;  %14987 = vst [vmem:[#allocation109_spill] sm:$0xff] %v13375_v14  ;;  %v3030_v57 = vsel %vm14988_vm11, %v1042_v24, 0 }
 0x204   : > { %10505 = vmatmul.mubr.f32.gmra.mrb[4].mxu0 %v14980_v44  ;;  %v13373_v44 = vsub.f32 %v3018_v50, %v13359_v55  ;;  %v13387_v50 = vand.u32 4294901760, %v3030_v57 }
 0x205   : > { %10507 = vmatprep.mubr.f32.mxu0 %v14984_v39  ;;  %v14990_v39 = vld [vmem:[#allocation74_spill] sm:$0xff] }
 0x206   : > { %9905 = vmatmul.mubr.f32.gmra.mrb[4].mxu1 %v14985_v58  ;;  %14986 = vst [vmem:[#allocation90_spill] sm:$0xff] %v13373_v44  ;;  %v14991_v58 = vld [vmem:[#allocation114_spill] sm:$0xff]  ;;  %14995 = vst [vmem:[#allocation125_spill] sm:$0xff] %v13387_v50  ;;  %v14407_v24 = vand.u32 4294901760, %v13373_v44 }
 0x207   : > { %9907 = vmatprep.mubr.f32.mxu1 %v3204_v32  ;;  %v1044_v54 = vsel %vm12393_vm14, 0.0, %v14991_v58  ;;  %v14993_v32 = vld [vmem:[#allocation38_spill] sm:$0xff]  ;;  %vm15006_vm14 = vmmov %vm14927_vm0  ;;  %vm15011_vm0 = vnez %v15010_v12 }
 0x208   : > { %10508 = vmatmul.mubr.f32.gmra.mrb[6].mxu0 %v14989_v61  ;;  %v13391_v61 = vsub.f32 %v3024_v16, %v13375_v14  ;;  %v3036_v34 = vsel %vm14998_vm12, %v1044_v54, 0  ;;  %v14999_v58 = vld [vmem:[#allocation130_spill] sm:$0xff]  ;;  %v3283_v16 = vsub.f32 %v13373_v44, %v14407_v24  ;;  %v15019_v44 = vld [vmem:[#allocation181_spill] sm:$0xff] }
 0x209   : > { %10510 = vmatprep.mubr.f32.mxu0 %v14990_v39  ;;  %v14997_v39 = vld [vmem:[#allocation76_spill] sm:$0xff]  ;;  %v13407_v54 = vand.u32 4294901760, %v3036_v34  ;;  %vm15020_vm1 = vnez %v15019_v44 }
 0x20a   : > { %9908 = vmatmul.mubr.f32.gmra.mrb[6].mxu1 %v14993_v32  ;;  %14996 = vst [vmem:[#allocation141_spill] sm:$0xff] %v13391_v61  ;;  %v1046_v32 = vsel %vm15001_vm13, 0.0, %v14999_v58  ;;  %v14411_v51 = vand.u32 4294901760, %v13391_v61  ;;  %v15009_v58 = vld [vmem:[#allocation146_spill] sm:$0xff]  ;;  %v3284_v24 = vand.u32 4294901760, %v3283_v16 }
 0x20b   : > { %9910 = vmatprep.mubr.f32.mxu1 %v3224_v1  ;;  %v13401_v1 = vsub.f32 %v3030_v57, %v13387_v50  ;;  %15005 = vst [vmem:[#allocation173_spill] sm:$0xff] %v13407_v54  ;;  %v3042_v56 = vsel %vm15006_vm14, %v1046_v32, 0  ;;  %v1048_v57 = vsel %vm15011_vm0, 0.0, %v15009_v58  ;;  %v15017_v58 = vld [vmem:[#allocation120_spill] sm:$0xff] }
 0x20c   : > { %10511 = vmatmul.mubr.f32.gmra.mrb[8].mxu0 %v14997_v39  ;;  %v15007_v39 = vld [vmem:[#allocation92_spill] sm:$0xff]  ;;  %v13417_v2 = vand.u32 4294901760, %v3042_v56  ;;  %v3303_v32 = vsub.f32 %v13391_v61, %v14411_v51  ;;  %v3048_v12 = vsel %vm15016_vm15, %v1048_v57, 0 }
 0x20d   : > { %10513 = vmatprep.mubr.f32.mxu0 %v15002_v7  ;;  %15004 = vst [vmem:[#allocation157_spill] sm:$0xff] %v13401_v1  ;;  %v15008_v7 = vld [vmem:[#allocation104_spill] sm:$0xff]  ;;  %v13439_v57 = vand.u32 4294901760, %v3048_v12 }
 0x20e   : > { %9911 = vmatmul.mubr.f32.gmra.mrb[8].mxu1 %v15003_v26  ;;  %v15012_v26 = vld [vmem:[#allocation61_spill] sm:$0xff]  ;;  %15013 = vst [vmem:[#allocation189_spill] sm:$0xff] %v13417_v2  ;;  %v13436_v51 = vsub.f32 %v3042_v56, %v13417_v2  ;;  %v15034_v2 = vld [vmem:[#allocation211_spill] sm:$0xff] }
 0x20f   : > { %9913 = vmatprep.mubr.f32.mxu1 %v3244_v52  ;;  %15024 = vst [vmem:[#allocation79_spill] sm:$0xff] %v13439_v57  ;;  %v15035_v61 = vrot.slane %v15034_v2, 1 }
 0x210   : > { %10514 = vmatmul.mubr.f32.gmra.mrb[10].mxu0 %v15007_v39  ;;  %v13423_v39 = vsub.f32 %v3036_v34, %v13407_v54  ;;  %15023 = vst [vmem:[#allocation88_spill] sm:$0xff] %v13436_v51  ;;  %v3304_v34 = vand.u32 4294901760, %v3303_v32 }
 0x211   : > { %10516 = vmatprep.mubr.f32.mxu0 %v15008_v7  ;;  %v15015_v7 = vld [vmem:[#allocation106_spill] sm:$0xff] }
 0x212   : > { %9914 = vmatmul.mubr.f32.gmra.mrb[10].mxu1 %v15012_v26  ;;  %15014 = vst [vmem:[#allocation206_spill] sm:$0xff] %v13423_v39  ;;  %v15018_v26 = vld [vmem:[#allocation162_spill] sm:$0xff] }
 0x213   : > { %9916 = vmatprep.mubr.f32.mxu1 %v3264_v62  ;;  %v1050_v52 = vsel %vm15020_vm1, 0.0, %v15018_v26  ;;  %v15022_v62 = vand.u32 4294901760, %v13401_v1  ;;  %v15026_v26 = vld [vmem:[#allocation136_spill] sm:$0xff] }
 0x214   : > { %10517 = vmatmul.mubr.f32.gmra.mrb[12].mxu0 %v15015_v7  ;;  %v14421_v7 = vand.u32 4294901760, %v13423_v39  ;;  %v3054_v44 = vsel %vm14937_vm4, %v1050_v52, 0 }
 0x215   : > { %10519 = vmatprep.mubr.f32.mxu0 %v15017_v58  ;;  %v3323_v16 = vsub.f32 %v13401_v1, %v15022_v62  ;;  %v15025_v58 = vld [vmem:[#allocation122_spill] sm:$0xff]  ;;  %v13455_v52 = vand.u32 4294901760, %v3054_v44 }
 0x216   : > { %9917 = vmatmul.mubr.f32.gmra.mrb[12].mxu1 %v15021_v0  ;;  %v15027_v0 = vld [vmem:[#allocation178_spill] sm:$0xff]  ;;  %v3343_v32 = vsub.f32 %v13423_v39, %v14421_v7  ;;  %v15043_v39 = vand.u32 4294901760, %v13436_v51 }
 0x217   : > { %9919 = vmatprep.mubr.f32.mxu1 %v3284_v24  ;;  %v1052_v54 = vsel %vm12683_vm2, 0.0, %v15027_v0  ;;  %v15029_v62 = vld [vmem:[#allocation86_spill] sm:$0xff]  ;;  %v3324_v56 = vand.u32 4294901760, %v3323_v16  ;;  %15031 = vst [vmem:[#allocation105_spill] sm:$0xff] %v13455_v52  ;;  %vm15036_vm2 = vcmask 1046528  }
 0x218   : > { %10520 = vmatmul.mubr.f32.gmra.mrb[14].mxu0 %v15025_v58  ;;  %v13453_v58 = vsub.f32 %v3048_v12, %v13439_v57  ;;  %v3060_v16 = vsel %vm15038_vm5, %v1052_v54, 0  ;;  %v15040_v24 = vld [vmem:[#allocation194_spill] sm:$0xff]  ;;  %v13475_v54 = vsub.f32 %v3054_v44, %v13455_v52 }
 0x219   : > { %10522 = vmatprep.mubr.f32.mxu0 %v15026_v26  ;;  %v15032_v26 = vld [vmem:[#allocation213_spill] sm:$0xff]  ;;  %v1054_v7 = vsel %vm12761_vm3, 0.0, %v15040_v24  ;;  %v15042_v12 = vld [vmem:[#allocation102_spill] sm:$0xff]  ;;  %vm15048_vm3 = vmmov %vm14937_vm4 }
 0x21a   : > { %9920 = vmatmul.mubr.f32.gmra.mrb[14].mxu1 %v15029_v62  ;;  %15030 = vst [vmem:[#allocation91_spill] sm:$0xff] %v13453_v58  ;;  %v15033_v1 = vrot.slane %v15032_v26, 1  ;;  %v15037_v62 = vld [vmem:[#allocation138_spill] sm:$0xff]  ;;  %v3363_v26 = vsub.f32 %v13436_v51, %v15043_v39  ;;  %15045 = vst [vmem:[#allocation94_spill] sm:$0xff] %v13475_v54  ;;  %v3066_v8 = vsel %vm15048_vm3, %v1054_v7, 0  ;;  %v15049_v24 = vld [vmem:[#allocation168_spill] sm:$0xff] }
 0x21b   : > { %9922 = vmatprep.mubr.f32.mxu1 %v3304_v34  ;;  %v15039_v34 = vld [vmem:[#allocation152_spill] sm:$0xff]  ;;  %v15051_v39 = vld [vmem:[#allocation11_spill] sm:$0xff]  ;;  %vm15052_vm7 = vmmov %vm15048_vm3  ;;  %v14431_v51 = vand.u32 4294901760, %v13475_v54  ;;  %v13494_v7 = vand.u32 4294901760, %v3066_v8 }
 0x21c   : > { %v6801_v0 = vsel %vm15036_vm2, %v15035_v61, %v15033_v1  ;;  %10523 = vmatmul.mubr.f32.gmra.mrb[16].mxu0 %v15037_v62  ;;  %v3344_v1 = vand.u32 4294901760, %v3343_v32  ;;  %v14428_v61 = vand.u32 4294901760, %v13453_v58  ;;  %v13477_v62 = vand.u32 4294901760, %v3060_v16 }
 0x21d   : > { %10525 = vmatprep.mubr.f32.mxu0 %v15039_v34  ;;  %v6804_v2 = vsel %vm15044_vm6, %v6801_v0, 0  ;;  %v15047_v34 = vld [vmem:[#allocation154_spill] sm:$0xff]  ;;  %v6806_v0 = vsel %vm15052_vm7, %v15051_v39, 0  ;;  %v3364_v32 = vand.u32 4294901760, %v3363_v26  ;;  %15055 = vst [vmem:[#allocation124_spill] sm:$0xff] %v13494_v7  ;;  %v15058_v39 = vld [vmem:[#allocation184_spill] sm:$0xff] }
 0x21e   : > { %9923 = vmatmul.mubr.f32.gmra.mrb[16].mxu1 %v15042_v12  ;;  %15046 = vst [vmem:[#allocation108_spill] sm:$0xff] %v13477_v62  ;;  %v13482_v12 = vand.u32 4294901760, %v6804_v2  ;;  %v3383_v44 = vsub.f32 %v13453_v58, %v14428_v61  ;;  %v13497_v52 = vand.u32 4294901760, %v6806_v0  ;;  %v13509_v58 = vsub.f32 %v3066_v8, %v13494_v7 }
 0x21f   : > { %9925 = vmatprep.mubr.f32.mxu1 %v3324_v56  ;;  %v15053_v56 = vld [vmem:[#allocation118_spill] sm:$0xff] }
 0x220   : > { %10526 = vmatmul.mubr.f32.gmra.mrb[18].mxu0 %v15047_v34  ;;  %15050 = vst [vmem:[#allocation121_spill] sm:$0xff] %v13482_v12  ;;  %v13492_v34 = vsub.f32 %v3060_v16, %v13477_v62  ;;  %15057 = vst [vmem:[#allocation137_spill] sm:$0xff] %v13497_v52  ;;  %v13501_v26 = vsub.f32 %v6804_v2, %v13482_v12  ;;  %v3403_v16 = vsub.f32 %v13475_v54, %v14431_v51  ;;  %v15061_v2 = vld [vmem:[#allocation200_spill] sm:$0xff]  ;;  %v15063_v54 = vld [vmem:[#allocation203_spill] sm:$0xff] }
 0x221   : > { %10528 = vmatprep.mubr.f32.mxu0 %v15049_v24  ;;  %v15056_v24 = vld [vmem:[#allocation170_spill] sm:$0xff]  ;;  %v14441_v8 = vand.u32 4294901760, %v13509_v58 }
 0x222   : > { %9926 = vmatmul.mubr.f32.gmra.mrb[18].mxu1 %v15053_v56  ;;  %15054 = vst [vmem:[#allocation110_spill] sm:$0xff] %v13492_v34  ;;  %v3384_v56 = vand.u32 4294901760, %v3383_v44  ;;  %v14436_v61 = vand.u32 4294901760, %v13492_v34  ;;  %v3404_v44 = vand.u32 4294901760, %v3403_v16 }
 0x223   : > { %9928 = vmatprep.mubr.f32.mxu1 %v3344_v1  ;;  %v15059_v1 = vld [vmem:[#allocation134_spill] sm:$0xff]  ;;  %v3443_v16 = vsub.f32 %v13509_v58, %v14441_v8  ;;  %v15087_v8 = vld [vmem:[#allocation221_spill] sm:$0xff] }
 0x224   : > { %10529 = vmatmul.mubr.f32.gmra.mrb[20].mxu0 %v15056_v24  ;;  %v15060_v24 = vld [vmem:[#allocation186_spill] sm:$0xff]  ;;  %v3423_v51 = vsub.f32 %v13492_v34, %v14436_v61  ;;  %v15067_v61 = vld [vmem:[#allocation227_spill] sm:$0xff] }
 0x225   : > { %10531 = vmatprep.mubr.f32.mxu0 %v15058_v39  ;;  %v13513_v39 = vsub.f32 %v6806_v0, %v13497_v52  ;;  %v15064_v0 = vld [vmem:[#allocation218_spill] sm:$0xff] }
 0x226   : > { %9929 = vmatmul.mubr.f32.gmra.mrb[20].mxu1 %v15059_v1  ;;  %v14439_v1 = vand.u32 4294901760, %v13501_v26  ;;  %v15065_v52 = vld [vmem:[#allocation166_spill] sm:$0xff] }
 0x227   : > { %9931 = vmatprep.mubr.f32.mxu1 %v3364_v32  ;;  %v15062_v32 = vld [vmem:[#allocation150_spill] sm:$0xff] }
 0x228   : > { %10532 = vmatmul.mubr.f32.gmra.mrb[22].mxu0 %v15060_v24  ;;  %v14440_v24 = vand.u32 4294901760, %v13513_v39  ;;  %v15068_v34 = vld [vmem:[#allocation182_spill] sm:$0xff] }
 0x229   : > { %10534 = vmatprep.mubr.f32.mxu0 %v15061_v2  ;;  %v7180_v2 = vsub.f32 %v13501_v26, %v14439_v1  ;;  %v3444_v1 = vand.u32 4294901760, %v3443_v16  ;;  %v15079_v16 = vld [vmem:[#allocation174_spill] sm:$0xff] }
 0x22a   : > { %9932 = vmatmul.mubr.f32.gmra.mrb[22].mxu1 %v15062_v32  ;;  %v15066_v32 = vld [vmem:[#allocation220_spill] sm:$0xff] }
 0x22b   : > { %9934 = vmatprep.mubr.f32.mxu1 %v3384_v56  ;;  %v3424_v56 = vand.u32 4294901760, %v3423_v51 }
 0x22c   : > { %10535 = vmatmul.mubr.f32.gmra.mrb[24].mxu0 %v15063_v54  ;;  %v7190_v54 = vsub.f32 %v13513_v39, %v14440_v24  ;;  %v15086_v24 = vld [vmem:[#allocation207_spill] sm:$0xff] }
 0x22d   : > { %10537 = vmatprep.mubr.f32.mxu0 %v15064_v0  ;;  %v7181_v0 = vand.u32 4294901760, %v7180_v2  ;;  %v15077_v2 = vld [vmem:[#allocation119_spill] sm:$0xff] }
 0x22e   : > { %9935 = vmatmul.mubr.f32.gmra.mrb[24].mxu1 %v15065_v52  ;;  %v15069_v52 = vld [vmem:[#allocation228_spill] sm:$0xff]  ;;  %v7191_v51 = vand.u32 4294901760, %v7190_v54 }
 0x22f   : > { %9937 = vmatprep.mubr.f32.mxu1 %v3404_v44  ;;  %v15070_v44 = vld [vmem:[#allocation198_spill] sm:$0xff]  ;;  %v15080_v54 = vld [vmem:[#allocation188_spill] sm:$0xff] }
 0x230   : > { %10538 = vmatmul.mubr.f32.gmra.mrb[26].mxu0 %v15066_v32  ;;  %v15071_v32 = vld [vmem:[#allocation216_spill] sm:$0xff] }
 0x231   : > { %10540 = vmatprep.mubr.f32.mxu0 %v15067_v61  ;;  %v15074_v61 = vld [vmem:[#allocation173_spill] sm:$0xff] }
 0x232   : > { %9938 = vmatmul.mubr.f32.gmra.mrb[26].mxu1 %v15068_v34  ;;  %v15075_v34 = vld [vmem:[#allocation158_spill] sm:$0xff] }
 0x233   : > { %9940 = vmatprep.mubr.f32.mxu1 %v3424_v56  ;;  %v15078_v56 = vld [vmem:[#allocation189_spill] sm:$0xff] }
 0x234   : > { %10541 = vmatmul.mubr.f32.gmra.mrb[28].mxu0 %v15069_v52  ;;  %v15082_v52 = vld [vmem:[#allocation190_spill] sm:$0xff] }
 0x235   : > { %10543 = vmatprep.mubr.f32.mxu0 %v7181_v0  ;;  %v15081_v0 = vld [vmem:[#allocation135_spill] sm:$0xff] }
 0x236   : > { %9941 = vmatmul.mubr.f32.gmra.mrb[28].mxu1 %v15070_v44  ;;  %v15084_v44 = vld [vmem:[#allocation151_spill] sm:$0xff] }
 0x237   : > { %9943 = vmatprep.mubr.f32.mxu1 %v3444_v1  ;;  %v15076_v1 = vld [vmem:[#allocation172_spill] sm:$0xff] }
 0x238   : > { %10544 = vmatmul.mubr.f32.gmra.mrb[30].mxu0 %v7191_v51  ;;  %v15083_v51 = vld [vmem:[#allocation205_spill] sm:$0xff] }
 0x239   : > { %10548 = vmatprep.mubr.f32.mxu0 %v11783_v28 }
 0x23a   : > { %9944 = vmatmul.mubr.f32.gmra.mrb[30].mxu1 %v15071_v32  ;;  %v15085_v32 = vld [vmem:[#allocation105_spill] sm:$0xff] }
 0x23b   : > { %9948 = vmatprep.mubr.f32.mxu1 %v13238_v25 }
 0x23c   : > { %10549 = vmatmul.mubr.f32.vlgmr.msra.gmra.mrb[0].mxu0 %v11801_v45 }
 0x23d   : > { %10597 = vmatpush3.msra.mxu0 %v13147_v37  ;;  %10551 = vmatprep.mubr.f32.mxu0 %v11856_v46  ;;  %v15072_v37 = vld [vmem:[#allocation156_spill] sm:$0xff] }
 0x23e   : > { %9949 = vmatmul.mubr.f32.vlgmr.msra.gmra.mrb[0].mxu1 %v13246_v18  ;;  %10646 = vmatprep.subr.mxu0 %v13070_v35 }
 0x23f   : > { %9997 = vmatpush3.msra.mxu1 %v13153_v59  ;;  %9951 = vmatprep.mubr.f32.mxu1 %v13249_v15  ;;  %v15073_v59 = vld [vmem:[#allocation103_spill] sm:$0xff] }
 0x240   : > { %10552 = vmatmul.mubr.f32.gmra.mrb[2].mxu0 %v11868_v21  ;;  %10046 = vmatprep.subr.mxu1 %v13075_v9 }
 0x241   : > { %10554 = vmatprep.mubr.f32.mxu0 %v11933_v47 }
 0x242   : > { %9952 = vmatmul.mubr.f32.gmra.mrb[2].mxu1 %v11712_v41 }
 0x243   : > { %9954 = vmatprep.mubr.f32.mxu1 %v13270_v31 }
 0x244   : > { %10555 = vmatmul.mubr.f32.gmra.mrb[4].mxu0 %v11949_v38 }
 0x245   : > { %10557 = vmatprep.mubr.f32.mxu0 %v12002_v33 }
 0x246   : > { %9955 = vmatmul.mubr.f32.gmra.mrb[4].mxu1 %v11781_v27 }
 0x247   : > { %9957 = vmatprep.mubr.f32.mxu1 %v13288_v5 }
 0x248   : > { %10558 = vmatmul.mubr.f32.gmra.mrb[6].mxu0 %v12019_v60 }
 0x249   : > { %10560 = vmatprep.mubr.f32.mxu0 %v12072_v23 }
 0x24a   : > { %9958 = vmatmul.mubr.f32.gmra.mrb[6].mxu1 %v11866_v19 }
 0x24b   : > { %9960 = vmatprep.mubr.f32.mxu1 %v13303_v11 }
 0x24c   : > { %10561 = vmatmul.mubr.f32.gmra.mrb[8].mxu0 %v12088_v29 }
 0x24d   : > { %10563 = vmatprep.mubr.f32.mxu0 %v12137_v48 }
 0x24e   : > { %9961 = vmatmul.mubr.f32.gmra.mrb[8].mxu1 %v11925_v22 }
 0x24f   : > { %9963 = vmatprep.mubr.f32.mxu1 %v13324_v53 }
 0x250   : > { %10564 = vmatmul.mubr.f32.gmra.mrb[10].mxu0 %v14880_v6 }
 0x251   : > { %10566 = vmatprep.mubr.f32.mxu0 %v14881_v4 }
 0x252   : > { %9964 = vmatmul.mubr.f32.gmra.mrb[10].mxu1 %v11996_v43 }
 0x253   : > { %9966 = vmatprep.mubr.f32.mxu1 %v13334_v13 }
 0x254   : > { %10567 = vmatmul.mubr.f32.gmra.mrb[12].mxu0 %v14884_v42 }
 0x255   : > { %10569 = vmatprep.mubr.f32.mxu0 %v14885_v17 }
 0x256   : > { %9967 = vmatmul.mubr.f32.gmra.mrb[12].mxu1 %v12069_v63 }
 0x257   : > { %9969 = vmatprep.mubr.f32.mxu1 %v13359_v55 }
 0x258   : > { %10570 = vmatmul.mubr.f32.gmra.mrb[14].mxu0 %v14888_v3 }
 0x259   : > { %10572 = vmatprep.mubr.f32.mxu0 %v14889_v49 }
 0x25a   : > { %9970 = vmatmul.mubr.f32.gmra.mrb[14].mxu1 %v12135_v30 }
 0x25b   : > { %9972 = vmatprep.mubr.f32.mxu1 %v13375_v14  ;;  %v15151_v14 = vld [vmem:[#allocation171_spill] sm:$0xff] }
 0x25c   : > { %10573 = vmatmul.mubr.f32.gmra.mrb[16].mxu0 %v14892_v40  ;;  %v15147_v40 = vld [vmem:[#allocation155_spill] sm:$0xff] }
 0x25d   : > { %10575 = vmatprep.mubr.f32.mxu0 %v14893_v20  ;;  %v15143_v20 = vld [vmem:[#allocation139_spill] sm:$0xff] }
 0x25e   : > { %9973 = vmatmul.mubr.f32.gmra.mrb[16].mxu1 %v14882_v10  ;;  %v15139_v10 = vld [vmem:[#allocation123_spill] sm:$0xff] }
 0x25f   : > { %9975 = vmatprep.mubr.f32.mxu1 %v13387_v50  ;;  %v15135_v50 = vld [vmem:[#allocation107_spill] sm:$0xff] }
 0x260   : > { %10576 = vmatmul.mubr.f32.gmra.mrb[18].mxu0 %v14896_v36  ;;  %v15131_v36 = vld [vmem:[#allocation93_spill] sm:$0xff] }
 0x261   : > { %10578 = vmatprep.mubr.f32.mxu0 %v15072_v37  ;;  %v15127_v37 = vld [vmem:[#allocation77_spill] sm:$0xff] }
 0x262   : > { %9976 = vmatmul.mubr.f32.gmra.mrb[18].mxu1 %v15073_v59  ;;  %v15123_v59 = vld [vmem:[#allocation65_spill] sm:$0xff] }
 0x263   : > { %9978 = vmatprep.mubr.f32.mxu1 %v15074_v61  ;;  %v15119_v61 = vld [vmem:[#allocation53_spill] sm:$0xff] }
 0x264   : > { %10579 = vmatmul.mubr.f32.gmra.mrb[20].mxu0 %v15075_v34  ;;  %v15115_v34 = vld [vmem:[#allocation41_spill] sm:$0xff] }
 0x265   : > { %10581 = vmatprep.mubr.f32.mxu0 %v15076_v1  ;;  %v15112_v1 = vld [vmem:[#allocation51_spill] sm:$0xff] }
 0x266   : > { %9979 = vmatmul.mubr.f32.gmra.mrb[20].mxu1 %v15077_v2  ;;  %v15110_v2 = vld [vmem:[#allocation66_spill] sm:$0xff] }
 0x267   : > { %9981 = vmatprep.mubr.f32.mxu1 %v15078_v56  ;;  %v15088_v56 = vld [vmem:[#allocation167_spill] sm:$0xff] }
 0x268   : > { %10582 = vmatmul.mubr.f32.gmra.mrb[22].mxu0 %v15079_v16  ;;  %v15109_v16 = vld [vmem:[#allocation59_spill] sm:$0xff] }
 0x269   : > { %10584 = vmatprep.mubr.f32.mxu0 %v15080_v54  ;;  %v15089_v54 = vld [vmem:[#allocation223_spill] sm:$0xff] }
 0x26a   : > { %9982 = vmatmul.mubr.f32.gmra.mrb[22].mxu1 %v15081_v0  ;;  %v15108_v0 = vld [vmem:[#allocation40_spill] sm:$0xff] }
 0x26b   : > { %9984 = vmatprep.mubr.f32.mxu1 %v13439_v57  ;;  %v15090_v57 = vld [vmem:[#allocation183_spill] sm:$0xff] }
 0x26c   : > { %10585 = vmatmul.mubr.f32.gmra.mrb[24].mxu0 %v15082_v52  ;;  %v15107_v52 = vld [vmem:[#allocation17_spill] sm:$0xff] }
 0x26d   : > { %10587 = vmatprep.mubr.f32.mxu0 %v15083_v51  ;;  %v15091_v51 = vld [vmem:[#allocation137_spill] sm:$0xff] }
 0x26e   : > { %9985 = vmatmul.mubr.f32.gmra.mrb[24].mxu1 %v15084_v44  ;;  %v15092_v44 = vld [vmem:[#allocation18_spill] sm:$0xff] }
 0x26f   : > { %9987 = vmatprep.mubr.f32.mxu1 %v15085_v32  ;;  %v15093_v32 = vld [vmem:[#allocation199_spill] sm:$0xff] }
 0x270   : > { %10588 = vmatmul.mubr.f32.gmra.mrb[26].mxu0 %v15086_v24  ;;  %v15094_v24 = vld [vmem:[#allocation14_spill] sm:$0xff] }
 0x271   : > { %10590 = vmatprep.mubr.f32.mxu0 %v15087_v8  ;;  %v15095_v8 = vld [vmem:[#allocation22_spill] sm:$0xff] }
 0x272   : > { %9988 = vmatmul.mubr.f32.gmra.mrb[26].mxu1 %v15088_v56  ;;  %v15105_v56 = vld [vmem:[#allocation46_spill] sm:$0xff] }
 0x273   : > { %9990 = vmatprep.mubr.f32.mxu1 %v13477_v62  ;;  %v15096_v62 = vld [vmem:[#allocation29_spill] sm:$0xff] }
 0x274   : > { %10591 = vmatmul.mubr.f32.gmra.mrb[28].mxu0 %v15089_v54  ;;  %v15097_v54 = vld [vmem:[#allocation3_spill] sm:$0xff] }
 0x275   : > { %10593 = vmatprep.mubr.f32.mxu0 %v13482_v12  ;;  %v15098_v12 = vld [vmem:[#allocation13_spill] sm:$0xff] }
 0x276   : > { %9991 = vmatmul.mubr.f32.gmra.mrb[28].mxu1 %v15090_v57  ;;  %v15103_v57 = vld [vmem:[#allocation9_spill] sm:$0xff] }
 0x277   : > { %9993 = vmatprep.mubr.f32.mxu1 %v13494_v7  ;;  %v15099_v7 = vld [vmem:[#allocation2_spill] sm:$0xff] }
 0x278   : > { %10594 = vmatmul.mubr.f32.gmra.mrb[30].mxu0 %v15091_v51  ;;  %v15100_v51 = vld [vmem:[#allocation31_spill] sm:$0xff] }
 0x279   : > { %10598 = vmatprep.mubr.f32.mxu0 %v15092_v44  ;;  %v15101_v44 = vld [vmem:[#allocation16_spill] sm:$0xff] }
 0x27a   : > { %9994 = vmatmul.mubr.f32.gmra.mrb[30].mxu1 %v15093_v32  ;;  %v15102_v32 = vld [vmem:[#allocation42_spill] sm:$0xff] }
 0x27b   : > { %9998 = vmatprep.mubr.f32.mxu1 %v15094_v24 }
 0x27c   : > { %10599 = vmatmul.mubr.f32.vlgmr.msra.gmra.mrb[0].mxu0 %v15095_v8  ;;  %v15104_v8 = vld [vmem:[#allocation28_spill] sm:$0xff] }
 0x27d   : > { %10647 = vmatpush3.msra.mxu0 %v13070_v35  ;;  %10601 = vmatprep.mubr.f32.mxu0 %v15096_v62  ;;  %v15106_v62 = vld [vmem:[#allocation54_spill] sm:$0xff] }
 0x27e   : > { %9999 = vmatmul.mubr.f32.vlgmr.msra.gmra.mrb[0].mxu1 %v15097_v54  ;;  %10696 = vmatprep.subr.mxu0 %v15098_v12 }
 0x27f   : > { %10047 = vmatpush3.msra.mxu1 %v13075_v9  ;;  %10001 = vmatprep.mubr.f32.mxu1 %v15099_v7 }
 0x280   : > { %10602 = vmatmul.mubr.f32.gmra.mrb[2].mxu0 %v15100_v51  ;;  %10096 = vmatprep.subr.mxu1 %v15101_v44  ;;  %v15111_v51 = vld [vmem:[#allocation30_spill] sm:$0xff] }
 0x281   : > { %10604 = vmatprep.mubr.f32.mxu0 %v15102_v32  ;;  %v15113_v32 = vld [vmem:[#allocation70_spill] sm:$0xff] }
 0x282   : > { %10002 = vmatmul.mubr.f32.gmra.mrb[2].mxu1 %v15103_v57  ;;  %v15114_v57 = vld [vmem:[#allocation78_spill] sm:$0xff] }
 0x283   : > { %10004 = vmatprep.mubr.f32.mxu1 %v15104_v8 }
 0x284   : > { %10605 = vmatmul.mubr.f32.gmra.mrb[4].mxu0 %v15105_v56  ;;  %v15116_v56 = vld [vmem:[#allocation63_spill] sm:$0xff] }
 0x285   : > { %10607 = vmatprep.mubr.f32.mxu0 %v15106_v62  ;;  %v15117_v62 = vld [vmem:[#allocation83_spill] sm:$0xff] }
 0x286   : > { %10005 = vmatmul.mubr.f32.gmra.mrb[4].mxu1 %v15107_v52  ;;  %v15118_v52 = vld [vmem:[#allocation95_spill] sm:$0xff] }
 0x287   : > { %10007 = vmatprep.mubr.f32.mxu1 %v15108_v0 }
 0x288   : > { %10608 = vmatmul.mubr.f32.gmra.mrb[6].mxu0 %v15109_v16  ;;  %v15120_v16 = vld [vmem:[#allocation75_spill] sm:$0xff] }
 0x289   : > { %10610 = vmatprep.mubr.f32.mxu0 %v15110_v2  ;;  %v15121_v2 = vld [vmem:[#allocation98_spill] sm:$0xff] }
 0x28a   : > { %10008 = vmatmul.mubr.f32.gmra.mrb[6].mxu1 %v15111_v51  ;;  %v15122_v51 = vld [vmem:[#allocation112_spill] sm:$0xff] }
 0x28b   : > { %10010 = vmatprep.mubr.f32.mxu1 %v15112_v1 }
 0x28c   : > { %10611 = vmatmul.mubr.f32.gmra.mrb[8].mxu0 %v15113_v32  ;;  %v15124_v32 = vld [vmem:[#allocation90_spill] sm:$0xff] }
 0x28d   : > { %10613 = vmatprep.mubr.f32.mxu0 %v15114_v57  ;;  %v15125_v57 = vld [vmem:[#allocation113_spill] sm:$0xff] }
 0x28e   : > { %10011 = vmatmul.mubr.f32.gmra.mrb[8].mxu1 %v15115_v34  ;;  %v15126_v34 = vld [vmem:[#allocation128_spill] sm:$0xff] }
 0x28f   : > { %10013 = vmatprep.mubr.f32.mxu1 %v15116_v56 }
 0x290   : > { %10614 = vmatmul.mubr.f32.gmra.mrb[10].mxu0 %v15117_v62  ;;  %v15128_v62 = vld [vmem:[#allocation141_spill] sm:$0xff] }
 0x291   : > { %10616 = vmatprep.mubr.f32.mxu0 %v15118_v52  ;;  %v15129_v52 = vld [vmem:[#allocation129_spill] sm:$0xff] }
 0x292   : > { %10014 = vmatmul.mubr.f32.gmra.mrb[10].mxu1 %v15119_v61  ;;  %v15130_v61 = vld [vmem:[#allocation144_spill] sm:$0xff] }
 0x293   : > { %10016 = vmatprep.mubr.f32.mxu1 %v15120_v16 }
 0x294   : > { %10617 = vmatmul.mubr.f32.gmra.mrb[12].mxu0 %v15121_v2  ;;  %v15132_v2 = vld [vmem:[#allocation157_spill] sm:$0xff] }
 0x295   : > { %10619 = vmatprep.mubr.f32.mxu0 %v15122_v51  ;;  %v15133_v51 = vld [vmem:[#allocation145_spill] sm:$0xff] }
 0x296   : > { %10017 = vmatmul.mubr.f32.gmra.mrb[12].mxu1 %v15123_v59  ;;  %v15134_v59 = vld [vmem:[#allocation160_spill] sm:$0xff] }
 0x297   : > { %10019 = vmatprep.mubr.f32.mxu1 %v15124_v32 }
 0x298   : > { %10620 = vmatmul.mubr.f32.gmra.mrb[14].mxu0 %v15125_v57  ;;  %v15136_v57 = vld [vmem:[#allocation206_spill] sm:$0xff] }
 0x299   : > { %10622 = vmatprep.mubr.f32.mxu0 %v15126_v34  ;;  %v15137_v34 = vld [vmem:[#allocation161_spill] sm:$0xff] }
 0x29a   : > { %10020 = vmatmul.mubr.f32.gmra.mrb[14].mxu1 %v15127_v37  ;;  %v15138_v37 = vld [vmem:[#allocation176_spill] sm:$0xff] }
 0x29b   : > { %10022 = vmatprep.mubr.f32.mxu1 %v15128_v62 }
 0x29c   : > { %10623 = vmatmul.mubr.f32.gmra.mrb[16].mxu0 %v15129_v52  ;;  %v15140_v52 = vld [vmem:[#allocation88_spill] sm:$0xff] }
 0x29d   : > { %10625 = vmatprep.mubr.f32.mxu0 %v15130_v61  ;;  %v15141_v61 = vld [vmem:[#allocation177_spill] sm:$0xff] }
 0x29e   : > { %10023 = vmatmul.mubr.f32.gmra.mrb[16].mxu1 %v15131_v36  ;;  %v15142_v36 = vld [vmem:[#allocation192_spill] sm:$0xff] }
 0x29f   : > { %10025 = vmatprep.mubr.f32.mxu1 %v15132_v2 }
 0x2a0   : > { %10626 = vmatmul.mubr.f32.gmra.mrb[18].mxu0 %v15133_v51  ;;  %v15144_v51 = vld [vmem:[#allocation91_spill] sm:$0xff] }
 0x2a1   : > { %10628 = vmatprep.mubr.f32.mxu0 %v15134_v59  ;;  %v15145_v59 = vld [vmem:[#allocation193_spill] sm:$0xff] }
 0x2a2   : > { %10026 = vmatmul.mubr.f32.gmra.mrb[18].mxu1 %v15135_v50  ;;  %v15146_v50 = vld [vmem:[#allocation209_spill] sm:$0xff] }
 0x2a3   : > { %10028 = vmatprep.mubr.f32.mxu1 %v15136_v57 }
 0x2a4   : > { %10629 = vmatmul.mubr.f32.gmra.mrb[20].mxu0 %v15137_v34  ;;  %v15148_v34 = vld [vmem:[#allocation94_spill] sm:$0xff] }
 0x2a5   : > { %10631 = vmatprep.mubr.f32.mxu0 %v15138_v37  ;;  %v15149_v37 = vld [vmem:[#allocation210_spill] sm:$0xff] }
 0x2a6   : > { %10029 = vmatmul.mubr.f32.gmra.mrb[20].mxu1 %v15139_v10  ;;  %v15150_v10 = vld [vmem:[#allocation222_spill] sm:$0xff] }
 0x2a7   : > { %10031 = vmatprep.mubr.f32.mxu1 %v15140_v52 }
 0x2a8   : > { %10632 = vmatmul.mubr.f32.gmra.mrb[22].mxu0 %v15141_v61  ;;  %v15152_v61 = vld [vmem:[#allocation110_spill] sm:$0xff] }
 0x2a9   : > { %10634 = vmatprep.mubr.f32.mxu0 %v15142_v36  ;;  %v15153_v36 = vld [vmem:[#allocation225_spill] sm:$0xff] }
 0x2aa   : > { %10032 = vmatmul.mubr.f32.gmra.mrb[22].mxu1 %v15143_v20  ;;  %v15154_v20 = vld [vmem:[#allocation187_spill] sm:$0xff] }
 0x2ab   : > { %10034 = vmatprep.mubr.f32.mxu1 %v15144_v51 }
 0x2ac   : > { %10635 = vmatmul.mubr.f32.gmra.mrb[24].mxu0 %v15145_v59  ;;  %v15156_v59 = vld [vmem:[#allocation204_spill] sm:$0xff] }
 0x2ad   : > { %10637 = vmatprep.mubr.f32.mxu0 %v15146_v50  ;;  %v15157_v50 = vand.u32 4294901760, %v15094_v24  ;;  %v15163_v24 = vld [vmem:[#allocation45_spill] sm:$0xff] }
 0x2ae   : > { %10035 = vmatmul.mubr.f32.gmra.mrb[24].mxu1 %v15147_v40  ;;  %v15155_v40 = vld [vmem:[#allocation21_spill] sm:$0xff] }
 0x2af   : > { %10037 = vmatprep.mubr.f32.mxu1 %v15148_v34 }
 0x2b0   : > { %10638 = vmatmul.mubr.f32.gmra.mrb[26].mxu0 %v15149_v37  ;;  %v15159_v37 = vld [vmem:[#allocation32_spill] sm:$0xff] }
 0x2b1   : > { %10640 = vmatprep.mubr.f32.mxu0 %v15150_v10  ;;  %v15160_v10 = vand.u32 4294901760, %v15097_v54  ;;  %v15166_v54 = vld [vmem:[#allocation48_spill] sm:$0xff] }
 0x2b2   : > { %10038 = vmatmul.mubr.f32.gmra.mrb[26].mxu1 %v15151_v14  ;;  %v15158_v14 = vld [vmem:[#allocation24_spill] sm:$0xff] }
 0x2b3   : > { %10040 = vmatprep.mubr.f32.mxu1 %v15152_v61 }
 0x2b4   : > { %10641 = vmatmul.mubr.f32.gmra.mrb[28].mxu0 %v15153_v36  ;;  %v15161_v36 = vand.u32 4294901760, %v15099_v7  ;;  %v15169_v7 = vand.u32 4294901760, %v15108_v0  ;;  %v15178_v0 = vld [vmem:[#allocation85_spill] sm:$0xff] }
 0x2b5   : > { %10643 = vmatprep.mubr.f32.mxu0 %v13501_v26 }
 0x2b6   : > { %10041 = vmatmul.mubr.f32.gmra.mrb[28].mxu1 %v15154_v20  ;;  %v15162_v20 = vld [vmem:[#allocation36_spill] sm:$0xff] }
 0x2b7   : > { %10043 = vmatprep.mubr.f32.mxu1 %v13509_v58 }
 0x2b8   : > { %10644 = vmatmul.mubr.f32.gmra.mrb[30].mxu0 %v13513_v39 }
 0x2b9   : > { %10648 = vmatprep.mubr.f32.mxu0 %v15155_v40  ;;  %v15164_v40 = vld [vmem:[#allocation12_spill] sm:$0xff] }
 0x2ba   : > { %10044 = vmatmul.mubr.f32.gmra.mrb[30].mxu1 %v15156_v59  ;;  %v15167_v59 = vld [vmem:[#allocation58_spill] sm:$0xff] }
 0x2bb   : > { %10048 = vmatprep.mubr.f32.mxu1 %v15157_v50  ;;  %v15168_v50 = vld [vmem:[#allocation20_spill] sm:$0xff] }
 0x2bc   : > { %10649 = vmatmul.mubr.f32.vlgmr.msra.gmra.mrb[0].mxu0 %v15158_v14  ;;  %v15171_v14 = vld [vmem:[#allocation69_spill] sm:$0xff] }
 0x2bd   : > { %10697 = vmatpush3.msra.mxu0 %v15098_v12  ;;  %10651 = vmatprep.mubr.f32.mxu0 %v15159_v37  ;;  %v15165_v12 = vand.u32 4294901760, %v15104_v8  ;;  %v15172_v37 = vld [vmem:[#allocation35_spill] sm:$0xff]  ;;  %v15174_v8 = vld [vmem:[#allocation72_spill] sm:$0xff] }
 0x2be   : > { %10049 = vmatmul.mubr.f32.vlgmr.msra.gmra.mrb[0].mxu1 %v15160_v10  ;;  %10746 = vmatprep.subr.mxu0 %v13070_v35  ;;  %v15173_v10 = vand.u32 4294901760, %v15112_v1  ;;  %v15182_v1 = vld [vmem:[#allocation100_spill] sm:$0xff] }
 0x2bf   : > { %10097 = vmatpush3.msra.mxu1 %v15101_v44  ;;  %10051 = vmatprep.mubr.f32.mxu1 %v15161_v36  ;;  %v15170_v44 = vld [vmem:[#allocation60_spill] sm:$0xff]  ;;  %v15175_v36 = vld [vmem:[#allocation82_spill] sm:$0xff] }
 0x2c0   : > { %10652 = vmatmul.mubr.f32.gmra.mrb[2].mxu0 %v15162_v20  ;;  %10146 = vmatprep.subr.mxu1 %v13075_v9  ;;  %v15176_v20 = vld [vmem:[#allocation43_spill] sm:$0xff] }
 0x2c1   : > { %10654 = vmatprep.mubr.f32.mxu0 %v15163_v24  ;;  %v15177_v24 = vand.u32 4294901760, %v15116_v56  ;;  %v15186_v56 = vld [vmem:[#allocation116_spill] sm:$0xff] }
 0x2c2   : > { %10052 = vmatmul.mubr.f32.gmra.mrb[2].mxu1 %v15164_v40  ;;  %v15179_v40 = vld [vmem:[#allocation99_spill] sm:$0xff] }
 0x2c3   : > { %10054 = vmatprep.mubr.f32.mxu1 %v15165_v12  ;;  %v15180_v12 = vld [vmem:[#allocation56_spill] sm:$0xff] }
 0x2c4   : > { %10655 = vmatmul.mubr.f32.gmra.mrb[4].mxu0 %v15166_v54  ;;  %v15181_v54 = vand.u32 4294901760, %v15120_v16  ;;  %v15190_v16 = vld [vmem:[#allocation132_spill] sm:$0xff] }
 0x2c5   : > { %10657 = vmatprep.mubr.f32.mxu0 %v15167_v59  ;;  %v15183_v59 = vld [vmem:[#allocation115_spill] sm:$0xff] }
 0x2c6   : > { %10055 = vmatmul.mubr.f32.gmra.mrb[4].mxu1 %v15168_v50  ;;  %v15184_v50 = vld [vmem:[#allocation68_spill] sm:$0xff] }
 0x2c7   : > { %10057 = vmatprep.mubr.f32.mxu1 %v15169_v7  ;;  %v15185_v7 = vand.u32 4294901760, %v15124_v32  ;;  %v15194_v32 = vld [vmem:[#allocation148_spill] sm:$0xff] }
 0x2c8   : > { %10658 = vmatmul.mubr.f32.gmra.mrb[6].mxu0 %v15170_v44  ;;  %v15187_v44 = vld [vmem:[#allocation131_spill] sm:$0xff] }
 0x2c9   : > { %10660 = vmatprep.mubr.f32.mxu0 %v15171_v14  ;;  %v15188_v14 = vld [vmem:[#allocation81_spill] sm:$0xff] }
 0x2ca   : > { %10058 = vmatmul.mubr.f32.gmra.mrb[6].mxu1 %v15172_v37  ;;  %v15189_v37 = vand.u32 4294901760, %v15128_v62  ;;  %v15198_v62 = vld [vmem:[#allocation164_spill] sm:$0xff] }
 0x2cb   : > { %10060 = vmatprep.mubr.f32.mxu1 %v15173_v10  ;;  %v15191_v10 = vld [vmem:[#allocation147_spill] sm:$0xff] }
 0x2cc   : > { %10661 = vmatmul.mubr.f32.gmra.mrb[8].mxu0 %v15174_v8  ;;  %v15192_v8 = vld [vmem:[#allocation97_spill] sm:$0xff] }
 0x2cd   : > { %10663 = vmatprep.mubr.f32.mxu0 %v15175_v36  ;;  %v15193_v36 = vand.u32 4294901760, %v15132_v2  ;;  %v15202_v2 = vld [vmem:[#allocation180_spill] sm:$0xff] }
 0x2ce   : > { %10061 = vmatmul.mubr.f32.gmra.mrb[8].mxu1 %v15176_v20  ;;  %v15195_v20 = vld [vmem:[#allocation163_spill] sm:$0xff] }
 0x2cf   : > { %10063 = vmatprep.mubr.f32.mxu1 %v15177_v24  ;;  %v15196_v24 = vld [vmem:[#allocation111_spill] sm:$0xff] }
 0x2d0   : > { %10664 = vmatmul.mubr.f32.gmra.mrb[10].mxu0 %v15178_v0  ;;  %v15197_v0 = vand.u32 4294901760, %v15136_v57  ;;  %v15206_v57 = vld [vmem:[#allocation196_spill] sm:$0xff] }
 0x2d1   : > { %10666 = vmatprep.mubr.f32.mxu0 %v15179_v40  ;;  %v15199_v40 = vld [vmem:[#allocation179_spill] sm:$0xff] }
 0x2d2   : > { %10064 = vmatmul.mubr.f32.gmra.mrb[10].mxu1 %v15180_v12  ;;  %v15200_v12 = vld [vmem:[#allocation127_spill] sm:$0xff] }
 0x2d3   : > { %10066 = vmatprep.mubr.f32.mxu1 %v15181_v54  ;;  %v15201_v54 = vand.u32 4294901760, %v15140_v52  ;;  %v15210_v52 = vld [vmem:[#allocation214_spill] sm:$0xff] }
 0x2d4   : > { %10667 = vmatmul.mubr.f32.gmra.mrb[12].mxu0 %v15182_v1  ;;  %v15203_v1 = vld [vmem:[#allocation195_spill] sm:$0xff] }
 0x2d5   : > { %10669 = vmatprep.mubr.f32.mxu0 %v15183_v59  ;;  %v15204_v59 = vld [vmem:[#allocation143_spill] sm:$0xff] }
 0x2d6   : > { %10067 = vmatmul.mubr.f32.gmra.mrb[12].mxu1 %v15184_v50  ;;  %v15205_v50 = vand.u32 4294901760, %v15144_v51  ;;  %v15214_v51 = vld [vmem:[#allocation226_spill] sm:$0xff] }
 0x2d7   : > { %10069 = vmatprep.mubr.f32.mxu1 %v15185_v7  ;;  %v15207_v7 = vld [vmem:[#allocation212_spill] sm:$0xff] }
 0x2d8   : > { %10670 = vmatmul.mubr.f32.gmra.mrb[14].mxu0 %v15186_v56  ;;  %v15208_v56 = vld [vmem:[#allocation159_spill] sm:$0xff] }
 0x2d9   : > { %10672 = vmatprep.mubr.f32.mxu0 %v15187_v44  ;;  %v15209_v44 = vand.u32 4294901760, %v15148_v34  ;;  %v15218_v34 = vand.u32 4294901760, %v13513_v39  ;;  %v15224_v39 = vld [vmem:[#allocation125_spill] sm:$0xff] }
 0x2da   : > { %10070 = vmatmul.mubr.f32.gmra.mrb[14].mxu1 %v15188_v14  ;;  %v15211_v14 = vld [vmem:[#allocation224_spill] sm:$0xff] }
 0x2db   : > { %10072 = vmatprep.mubr.f32.mxu1 %v15189_v37  ;;  %v15212_v37 = vld [vmem:[#allocation175_spill] sm:$0xff] }
 0x2dc   : > { %10673 = vmatmul.mubr.f32.gmra.mrb[16].mxu0 %v15190_v16  ;;  %v15213_v16 = vand.u32 4294901760, %v15152_v61  ;;  %v15225_v61 = vld [vmem:[#allocation142_spill] sm:$0xff] }
 0x2dd   : > { %10675 = vmatprep.mubr.f32.mxu0 %v15191_v10  ;;  %v15215_v10 = vand.u32 4294901760, %v13501_v26  ;;  %v15223_v26 = vld [vmem:[#allocation89_spill] sm:$0xff] }
 0x2de   : > { %10073 = vmatmul.mubr.f32.gmra.mrb[16].mxu1 %v15192_v8  ;;  %v15216_v8 = vld [vmem:[#allocation191_spill] sm:$0xff] }
 0x2df   : > { %10075 = vmatprep.mubr.f32.mxu1 %v15193_v36  ;;  %v15217_v36 = vand.u32 4294901760, %v13509_v58  ;;  %v15222_v58 = vld [vmem:[#allocation140_spill] sm:$0xff] }
 0x2e0   : > { %10676 = vmatmul.mubr.f32.gmra.mrb[18].mxu0 %v15194_v32  ;;  %v15219_v32 = vld [vmem:[#allocation208_spill] sm:$0xff] }
 0x2e1   : > { %10678 = vmatprep.mubr.f32.mxu0 %v15195_v20  ;;  %v15226_v20 = vld [vmem:[#allocation156_spill] sm:$0xff] }
 0x2e2   : > { %10076 = vmatmul.mubr.f32.gmra.mrb[18].mxu1 %v15196_v24  ;;  %v15227_v24 = vld [vmem:[#allocation103_spill] sm:$0xff] }
 0x2e3   : > { %10078 = vmatprep.mubr.f32.mxu1 %v15197_v0  ;;  %v15228_v0 = vld [vmem:[#allocation173_spill] sm:$0xff] }
 0x2e4   : > { %10679 = vmatmul.mubr.f32.gmra.mrb[20].mxu0 %v15198_v62  ;;  %v15229_v62 = vld [vmem:[#allocation158_spill] sm:$0xff] }
 0x2e5   : > { %10681 = vmatprep.mubr.f32.mxu0 %v15199_v40  ;;  %v15230_v40 = vld [vmem:[#allocation172_spill] sm:$0xff] }
 0x2e6   : > { %10079 = vmatmul.mubr.f32.gmra.mrb[20].mxu1 %v15200_v12  ;;  %v15231_v12 = vld [vmem:[#allocation119_spill] sm:$0xff] }
 0x2e7   : > { %10081 = vmatprep.mubr.f32.mxu1 %v15201_v54  ;;  %v15232_v54 = vld [vmem:[#allocation189_spill] sm:$0xff] }
 0x2e8   : > { %10682 = vmatmul.mubr.f32.gmra.mrb[22].mxu0 %v15202_v2  ;;  %v15233_v2 = vld [vmem:[#allocation174_spill] sm:$0xff] }
 0x2e9   : > { %10684 = vmatprep.mubr.f32.mxu0 %v15203_v1  ;;  %v15234_v1 = vld [vmem:[#allocation188_spill] sm:$0xff] }
 0x2ea   : > { %10082 = vmatmul.mubr.f32.gmra.mrb[22].mxu1 %v15204_v59  ;;  %v15235_v59 = vld [vmem:[#allocation135_spill] sm:$0xff] }
 0x2eb   : > { %10084 = vmatprep.mubr.f32.mxu1 %v15205_v50  ;;  %v15236_v50 = vld [vmem:[#allocation79_spill] sm:$0xff] }
 0x2ec   : > { %10685 = vmatmul.mubr.f32.gmra.mrb[24].mxu0 %v15206_v57  ;;  %v15237_v57 = vld [vmem:[#allocation190_spill] sm:$0xff] }
 0x2ed   : > { %10687 = vmatprep.mubr.f32.mxu0 %v15207_v7  ;;  %v15238_v7 = vld [vmem:[#allocation205_spill] sm:$0xff] }
 0x2ee   : > { %10085 = vmatmul.mubr.f32.gmra.mrb[24].mxu1 %v15208_v56  ;;  %v15239_v56 = vld [vmem:[#allocation151_spill] sm:$0xff] }
 0x2ef   : > { %10087 = vmatprep.mubr.f32.mxu1 %v15209_v44  ;;  %v15240_v44 = vld [vmem:[#allocation105_spill] sm:$0xff] }
 0x2f0   : > { %10688 = vmatmul.mubr.f32.gmra.mrb[26].mxu0 %v15210_v52  ;;  %v15241_v52 = vld [vmem:[#allocation207_spill] sm:$0xff] }
 0x2f1   : > { %10690 = vmatprep.mubr.f32.mxu0 %v15211_v14  ;;  %v15242_v14 = vld [vmem:[#allocation221_spill] sm:$0xff] }
 0x2f2   : > { %10088 = vmatmul.mubr.f32.gmra.mrb[26].mxu1 %v15212_v37  ;;  %v15243_v37 = vld [vmem:[#allocation167_spill] sm:$0xff] }
 0x2f3   : > { %10090 = vmatprep.mubr.f32.mxu1 %v15213_v16  ;;  %v15244_v16 = vld [vmem:[#allocation108_spill] sm:$0xff] }
 0x2f4   : > { %10691 = vmatmul.mubr.f32.gmra.mrb[28].mxu0 %v15214_v51  ;;  %v15245_v51 = vld [vmem:[#allocation223_spill] sm:$0xff] }
 0x2f5   : > { %10693 = vmatprep.mubr.f32.mxu0 %v15215_v10  ;;  %v15246_v10 = vld [vmem:[#allocation121_spill] sm:$0xff] }
 0x2f6   : > { %10091 = vmatmul.mubr.f32.gmra.mrb[28].mxu1 %v15216_v8  ;;  %v15247_v8 = vld [vmem:[#allocation183_spill] sm:$0xff] }
 0x2f7   : > { %10093 = vmatprep.mubr.f32.mxu1 %v15217_v36  ;;  %v15248_v36 = vld [vmem:[#allocation124_spill] sm:$0xff] }
 0x2f8   : > { %10694 = vmatmul.mubr.f32.gmra.mrb[30].mxu0 %v15218_v34  ;;  %v15249_v34 = vld [vmem:[#allocation137_spill] sm:$0xff] }
 0x2f9   : > { %10698 = vmatprep.mubr.f32.mxu0 %v11783_v28 }
 0x2fa   : > { %10094 = vmatmul.mubr.f32.gmra.mrb[30].mxu1 %v15219_v32  ;;  %v15250_v32 = vld [vmem:[#allocation199_spill] sm:$0xff] }
 0x2fb   : > { %10098 = vmatprep.mubr.f32.mxu1 %v13238_v25 }
 0x2fc   : > { %10699 = vmatmul.mubr.f32.vlgmr.msra.gmra.mrb[0].mxu0 %v11801_v45 }
 0x2fd   : > { %10747 = vmatpush3.msra.mxu0 %v13070_v35  ;;  %10701 = vmatprep.mubr.f32.mxu0 %v11856_v46  ;;  %v15220_v35 = vld [vmem:[#allocation109_spill] sm:$0xff] }
 0x2fe   : > { %10099 = vmatmul.mubr.f32.vlgmr.msra.gmra.mrb[0].mxu1 %v13246_v18 }
 0x2ff   : > { %10147 = vmatpush3.msra.mxu1 %v13075_v9  ;;  %10101 = vmatprep.mubr.f32.mxu1 %v13249_v15  ;;  %v15221_v9 = vld [vmem:[#allocation126_spill] sm:$0xff] }
 0x300   : > { %10702 = vmatmul.mubr.f32.gmra.mrb[2].mxu0 %v11868_v21 }
 0x301   : > { %10704 = vmatprep.mubr.f32.mxu0 %v11933_v47 }
 0x302   : > { %10102 = vmatmul.mubr.f32.gmra.mrb[2].mxu1 %v11712_v41 }
 0x303   : > { %10104 = vmatprep.mubr.f32.mxu1 %v13270_v31 }
 0x304   : > { %10705 = vmatmul.mubr.f32.gmra.mrb[4].mxu0 %v11949_v38 }
 0x305   : > { %10707 = vmatprep.mubr.f32.mxu0 %v12002_v33 }
 0x306   : > { %10105 = vmatmul.mubr.f32.gmra.mrb[4].mxu1 %v11781_v27 }
 0x307   : > { %10107 = vmatprep.mubr.f32.mxu1 %v13288_v5 }
 0x308   : > { %10708 = vmatmul.mubr.f32.gmra.mrb[6].mxu0 %v12019_v60 }
 0x309   : > { %10710 = vmatprep.mubr.f32.mxu0 %v12072_v23 }
 0x30a   : > { %10108 = vmatmul.mubr.f32.gmra.mrb[6].mxu1 %v11866_v19 }
 0x30b   : > { %10110 = vmatprep.mubr.f32.mxu1 %v13303_v11 }
 0x30c   : > { %10711 = vmatmul.mubr.f32.gmra.mrb[8].mxu0 %v12088_v29 }
 0x30d   : > { %10713 = vmatprep.mubr.f32.mxu0 %v12137_v48 }
 0x30e   : > { %10111 = vmatmul.mubr.f32.gmra.mrb[8].mxu1 %v11925_v22 }
 0x30f   : > { %10113 = vmatprep.mubr.f32.mxu1 %v13324_v53 }
 0x310   : > { %10714 = vmatmul.mubr.f32.gmra.mrb[10].mxu0 %v14880_v6 }
 0x311   : > { %10716 = vmatprep.mubr.f32.mxu0 %v14881_v4 }
 0x312   : > { %10114 = vmatmul.mubr.f32.gmra.mrb[10].mxu1 %v11996_v43 }
 0x313   : > { %10116 = vmatprep.mubr.f32.mxu1 %v13334_v13 }
 0x314   : > { %10717 = vmatmul.mubr.f32.gmra.mrb[12].mxu0 %v14884_v42 }
 0x315   : > { %10719 = vmatprep.mubr.f32.mxu0 %v14885_v17 }
 0x316   : > { %10117 = vmatmul.mubr.f32.gmra.mrb[12].mxu1 %v12069_v63 }
 0x317   : > { %10119 = vmatprep.mubr.f32.mxu1 %v13359_v55 }
 0x318   : > { %10720 = vmatmul.mubr.f32.gmra.mrb[14].mxu0 %v14888_v3 }
 0x319   : > { %10722 = vmatprep.mubr.f32.mxu0 %v14889_v49 }
 0x31a   : > { %10120 = vmatmul.mubr.f32.gmra.mrb[14].mxu1 %v12135_v30 }
 0x31b   : > { %10122 = vmatprep.mubr.f32.mxu1 %v15220_v35 }
 0x31c   : > { %10723 = vmatmul.mubr.f32.gmra.mrb[16].mxu0 %v15221_v9 }
 0x31d   : > { %10725 = vmatprep.mubr.f32.mxu0 %v15222_v58 }
 0x31e   : > { %10123 = vmatmul.mubr.f32.gmra.mrb[16].mxu1 %v15223_v26 }
 0x31f   : > { %10125 = vmatprep.mubr.f32.mxu1 %v15224_v39 }
 0x320   : > { %10726 = vmatmul.mubr.f32.gmra.mrb[18].mxu0 %v15225_v61 }
 0x321   : > { %10728 = vmatprep.mubr.f32.mxu0 %v15226_v20 }
 0x322   : > { %10126 = vmatmul.mubr.f32.gmra.mrb[18].mxu1 %v15227_v24 }
 0x323   : > { %10128 = vmatprep.mubr.f32.mxu1 %v15228_v0 }
 0x324   : > { %10729 = vmatmul.mubr.f32.gmra.mrb[20].mxu0 %v15229_v62 }
 0x325   : > { %10731 = vmatprep.mubr.f32.mxu0 %v15230_v40 }
 0x326   : > { %10129 = vmatmul.mubr.f32.gmra.mrb[20].mxu1 %v15231_v12 }
 0x327   : > { %10131 = vmatprep.mubr.f32.mxu1 %v15232_v54 }
 0x328   : > { %10732 = vmatmul.mubr.f32.gmra.mrb[22].mxu0 %v15233_v2 }
 0x329   : > { %10734 = vmatprep.mubr.f32.mxu0 %v15234_v1 }
 0x32a   : > { %10132 = vmatmul.mubr.f32.gmra.mrb[22].mxu1 %v15235_v59 }
 0x32b   : > { %10134 = vmatprep.mubr.f32.mxu1 %v15236_v50 }
 0x32c   : > { %10735 = vmatmul.mubr.f32.gmra.mrb[24].mxu0 %v15237_v57 }
 0x32d   : > { %10737 = vmatprep.mubr.f32.mxu0 %v15238_v7 }
 0x32e   : > { %10135 = vmatmul.mubr.f32.gmra.mrb[24].mxu1 %v15239_v56 }
 0x32f   : > { %10137 = vmatprep.mubr.f32.mxu1 %v15240_v44 }
 0x330   : > { %10738 = vmatmul.mubr.f32.gmra.mrb[26].mxu0 %v15241_v52 }
 0x331   : > { %10740 = vmatprep.mubr.f32.mxu0 %v15242_v14 }
 0x332   : > { %10138 = vmatmul.mubr.f32.gmra.mrb[26].mxu1 %v15243_v37 }
 0x333   : > { %10140 = vmatprep.mubr.f32.mxu1 %v15244_v16 }
 0x334   : > { %10741 = vmatmul.mubr.f32.gmra.mrb[28].mxu0 %v15245_v51 }
 0x335   : > { %10743 = vmatprep.mubr.f32.mxu0 %v15246_v10 }
 0x336   : > { %10141 = vmatmul.mubr.f32.gmra.mrb[28].mxu1 %v15247_v8 }
 0x337   : > { %10143 = vmatprep.mubr.f32.mxu1 %v15248_v36 }
 0x338   : > { %10744 = vmatmul.mubr.f32.gmra.mrb[30].mxu0 %v15249_v34 }
 0x339   : > { %10748 = vmatprep.mubr.f32.mxu0 %v11783_v28 }
 0x33a   : > { %10144 = vmatmul.mubr.f32.gmra.mrb[30].mxu1 %v15250_v32 }
 0x33b   : > { %10148 = vmatprep.mubr.f32.mxu1 %v13238_v25 }
 0x33c   : > { %10749 = vmatmul.mubr.f32.vlgmr.msra.gmra.mrb[0].mxu0 %v11801_v45 }
 0x33d   : > { %10751 = vmatprep.mubr.f32.mxu0 %v11856_v46 }
 0x33e   : > { %10149 = vmatmul.mubr.f32.vlgmr.msra.gmra.mrb[0].mxu1 %v13246_v18 }
 0x33f   : > { %10151 = vmatprep.mubr.f32.mxu1 %v13249_v15 }
 0x340   : > { %10752 = vmatmul.mubr.f32.gmra.mrb[2].mxu0 %v11868_v21 }
 0x341   : > { %10754 = vmatprep.mubr.f32.mxu0 %v11933_v47 }
 0x342   : > { %10152 = vmatmul.mubr.f32.gmra.mrb[2].mxu1 %v11712_v41 }
 0x343   : > { %10154 = vmatprep.mubr.f32.mxu1 %v13270_v31 }
 0x344   : > { %10755 = vmatmul.mubr.f32.gmra.mrb[4].mxu0 %v11949_v38 }
 0x345   : > { %10757 = vmatprep.mubr.f32.mxu0 %v12002_v33 }
 0x346   : > { %10155 = vmatmul.mubr.f32.gmra.mrb[4].mxu1 %v11781_v27 }
 0x347   : > { %10157 = vmatprep.mubr.f32.mxu1 %v13288_v5 }
 0x348   : > { %10758 = vmatmul.mubr.f32.gmra.mrb[6].mxu0 %v12019_v60 }
 0x349   : > { %10760 = vmatprep.mubr.f32.mxu0 %v12072_v23 }
 0x34a   : > { %10158 = vmatmul.mubr.f32.gmra.mrb[6].mxu1 %v11866_v19 }
 0x34b   : > { %10160 = vmatprep.mubr.f32.mxu1 %v13303_v11 }
 0x34c   : > { %10761 = vmatmul.mubr.f32.gmra.mrb[8].mxu0 %v12088_v29 }
 0x34d   : > { %10763 = vmatprep.mubr.f32.mxu0 %v12137_v48 }
 0x34e   : > { %10161 = vmatmul.mubr.f32.gmra.mrb[8].mxu1 %v11925_v22 }
 0x34f   : > { %10163 = vmatprep.mubr.f32.mxu1 %v13324_v53 }
 0x350   : > { %10764 = vmatmul.mubr.f32.gmra.mrb[10].mxu0 %v14880_v6 }
 0x351   : > { %10766 = vmatprep.mubr.f32.mxu0 %v14881_v4 }
 0x352   : > { %10164 = vmatmul.mubr.f32.gmra.mrb[10].mxu1 %v11996_v43 }
 0x353   : > { %10166 = vmatprep.mubr.f32.mxu1 %v13334_v13 }
 0x354   : > { %10767 = vmatmul.mubr.f32.gmra.mrb[12].mxu0 %v14884_v42 }
 0x355   : > { %10769 = vmatprep.mubr.f32.mxu0 %v14885_v17 }
 0x356   : > { %10167 = vmatmul.mubr.f32.gmra.mrb[12].mxu1 %v12069_v63 }
 0x357   : > { %10169 = vmatprep.mubr.f32.mxu1 %v13359_v55 }
 0x358   : > { %10770 = vmatmul.mubr.f32.gmra.mrb[14].mxu0 %v14888_v3 }
 0x359   : > { %10772 = vmatprep.mubr.f32.mxu0 %v14889_v49 }
 0x35a   : > { %10170 = vmatmul.mubr.f32.gmra.mrb[14].mxu1 %v12135_v30 }
 0x35b   : > { %10172 = vmatprep.mubr.f32.mxu1 %v15220_v35 }
 0x35c   : > { %10773 = vmatmul.mubr.f32.gmra.mrb[16].mxu0 %v15221_v9 }
 0x35d   : > { %10775 = vmatprep.mubr.f32.mxu0 %v15222_v58 }
 0x35e   : > { %10173 = vmatmul.mubr.f32.gmra.mrb[16].mxu1 %v15223_v26 }
 0x35f   : > { %10175 = vmatprep.mubr.f32.mxu1 %v15224_v39 }
 0x360   : > { %10776 = vmatmul.mubr.f32.gmra.mrb[18].mxu0 %v15225_v61 }
 0x361   : > { %10778 = vmatprep.mubr.f32.mxu0 %v15226_v20 }
 0x362   : > { %10176 = vmatmul.mubr.f32.gmra.mrb[18].mxu1 %v15227_v24 }
 0x363   : > { %10178 = vmatprep.mubr.f32.mxu1 %v15228_v0 }
 0x364   : > { %10779 = vmatmul.mubr.f32.gmra.mrb[20].mxu0 %v15229_v62 }
 0x365   : > { %10781 = vmatprep.mubr.f32.mxu0 %v15230_v40 }
 0x366   : > { %10179 = vmatmul.mubr.f32.gmra.mrb[20].mxu1 %v15231_v12 }
 0x367   : > { %10181 = vmatprep.mubr.f32.mxu1 %v15232_v54 }
 0x368   : > { %10782 = vmatmul.mubr.f32.gmra.mrb[22].mxu0 %v15233_v2 }
 0x369   : > { %10784 = vmatprep.mubr.f32.mxu0 %v15234_v1 }
 0x36a   : > { %10182 = vmatmul.mubr.f32.gmra.mrb[22].mxu1 %v15235_v59 }
 0x36b   : > { %10184 = vmatprep.mubr.f32.mxu1 %v15236_v50 }
 0x36c   : > { %10785 = vmatmul.mubr.f32.gmra.mrb[24].mxu0 %v15237_v57 }
 0x36d   : > { %10787 = vmatprep.mubr.f32.mxu0 %v15238_v7 }
 0x36e   : > { %10185 = vmatmul.mubr.f32.gmra.mrb[24].mxu1 %v15239_v56 }
 0x36f   : > { %10187 = vmatprep.mubr.f32.mxu1 %v15240_v44 }
 0x370   : > { %10788 = vmatmul.mubr.f32.gmra.mrb[26].mxu0 %v15241_v52 }
 0x371   : > { %10790 = vmatprep.mubr.f32.mxu0 %v15242_v14 }
 0x372   : > { %10188 = vmatmul.mubr.f32.gmra.mrb[26].mxu1 %v15243_v37 }
 0x373   : > { %10190 = vmatprep.mubr.f32.mxu1 %v15244_v16 }
 0x374   : > { %10791 = vmatmul.mubr.f32.gmra.mrb[28].mxu0 %v15245_v51 }
 0x375   : > { %10793 = vmatprep.mubr.f32.mxu0 %v15246_v10 }
 0x376   : > { %10191 = vmatmul.mubr.f32.gmra.mrb[28].mxu1 %v15247_v8 }
 0x377   : > { %10193 = vmatprep.mubr.f32.mxu1 %v15248_v36 }
 0x378   : > { %10794 = vmatmul.mubr.f32.gmra.mrb[30].mxu0 %v15249_v34 }
 0x37a   : > { %10194 = vmatmul.mubr.f32.gmra.mrb[30].mxu1 %v15250_v32 }
 0x40f   : > { %v10750_v41 = vpop.f32.mrb[0].mxu0 }
 0x410   : > { %v8400_v47 = vpop.f32.mrb[1].mxu0 }
 0x411   : > { %v10150_v27 = vpop.f32.mrb[0].mxu1 }
 0x412   : > { %v10796_v28 = vadd.f32 %v10750_v41, %v10150_v27  ;;  %v4663_v45 = vpop.f32.mrb[1].mxu1 }
 0x413   : > { %v10797_v46 = vadd.f32 %v8400_v47, %v4663_v45  ;;  %v10753_v19 = vpop.f32.mrb[2].mxu0 }
 0x414   : > { %8624 = vst.msk [vmem:[%s13899_s19 + $0x8] sm:$0xff] %vm8622_vm8, %v10796_v28  ;;  %v8412_v21 = vpop.f32.mrb[3].mxu0 }
 0x415   : > { %8623 = vst.msk [vmem:[%s13899_s19] sm:$0xff] %vm8622_vm8, %v10797_v46  ;;  %v10153_v22 = vpop.f32.mrb[2].mxu1 }
 0x416   : > { %v10798_v43 = vadd.f32 %v10753_v19, %v10153_v22  ;;  %v4675_v29 = vpop.f32.mrb[3].mxu1 }
 0x417   : > { %v10799_v38 = vadd.f32 %v8412_v21, %v4675_v29  ;;  %v10756_v33 = vpop.f32.mrb[4].mxu0 }
 0x418   : > { %8626 = vst.msk [vmem:[%s13899_s19 + $0x18] sm:$0xff] %vm8622_vm8, %v10798_v43  ;;  %v8424_v63 = vpop.f32.mrb[5].mxu0 }
 0x419   : > { %8625 = vst.msk [vmem:[%s13899_s19 + $0x10] sm:$0xff] %vm8622_vm8, %v10799_v38  ;;  %v10156_v60 = vpop.f32.mrb[4].mxu1 }
 0x41a   : > { %v10800_v23 = vadd.f32 %v10756_v33, %v10156_v60  ;;  %v4687_v30 = vpop.f32.mrb[5].mxu1 }
 0x41b   : > { %v10801_v48 = vadd.f32 %v8424_v63, %v4687_v30  ;;  %v10759_v17 = vpop.f32.mrb[6].mxu0 }
 0x41c   : > { %8628 = vst.msk [vmem:[%s13899_s19 + $0x28] sm:$0xff] %vm8622_vm8, %v10800_v23  ;;  %v8436_v31 = vpop.f32.mrb[7].mxu0 }
 0x41d   : > { %8627 = vst.msk [vmem:[%s13899_s19 + $0x20] sm:$0xff] %vm8622_vm8, %v10801_v48  ;;  %v10159_v11 = vpop.f32.mrb[6].mxu1 }
 0x41e   : > { %v10802_v49 = vadd.f32 %v10759_v17, %v10159_v11  ;;  %v4699_v3 = vpop.f32.mrb[7].mxu1 }
 0x41f   : > { %v10803_v6 = vadd.f32 %v8436_v31, %v4699_v3  ;;  %v10762_v4 = vpop.f32.mrb[8].mxu0 }
 0x420   : > { %8630 = vst.msk [vmem:[%s13899_s19 + $0x38] sm:$0xff] %vm8622_vm8, %v10802_v49  ;;  %v8448_v42 = vpop.f32.mrb[9].mxu0 }
 0x421   : > { %8629 = vst.msk [vmem:[%s13899_s19 + $0x30] sm:$0xff] %vm8622_vm8, %v10803_v6  ;;  %v10162_v25 = vpop.f32.mrb[8].mxu1 }
 0x422   : > { %v10804_v18 = vadd.f32 %v10762_v4, %v10162_v25  ;;  %v4711_v15 = vpop.f32.mrb[9].mxu1 }
 0x423   : > { %v10805_v5 = vadd.f32 %v8448_v42, %v4711_v15  ;;  %v10765_v13 = vpop.f32.mrb[10].mxu0 }
 0x424   : > { %8632 = vst.msk [vmem:[%s13899_s19 + $0x48] sm:$0xff] %vm8622_vm8, %v10804_v18  ;;  %v8460_v55 = vpop.f32.mrb[11].mxu0 }
 0x425   : > { %8631 = vst.msk [vmem:[%s13899_s19 + $0x40] sm:$0xff] %vm8622_vm8, %v10805_v5  ;;  %v10165_v53 = vpop.f32.mrb[10].mxu1 }
 0x426   : > { %v10806_v35 = vadd.f32 %v10765_v13, %v10165_v53  ;;  %v4723_v9 = vpop.f32.mrb[11].mxu1 }
 0x427   : > { %v10807_v58 = vadd.f32 %v8460_v55, %v4723_v9  ;;  %v10768_v26 = vpop.f32.mrb[12].mxu0 }
 0x428   : > { %8634 = vst.msk [vmem:[%s13899_s19 + $0x58] sm:$0xff] %vm8622_vm8, %v10806_v35  ;;  %v8472_v39 = vpop.f32.mrb[13].mxu0 }
 0x429   : > { %8633 = vst.msk [vmem:[%s13899_s19 + $0x50] sm:$0xff] %vm8622_vm8, %v10807_v58  ;;  %v10168_v61 = vpop.f32.mrb[12].mxu1 }
 0x42a   : > { %v10808_v20 = vadd.f32 %v10768_v26, %v10168_v61  ;;  %v4735_v24 = vpop.f32.mrb[13].mxu1 }
 0x42b   : > { %v10809_v0 = vadd.f32 %v8472_v39, %v4735_v24  ;;  %v10771_v62 = vpop.f32.mrb[14].mxu0 }
 0x42c   : > { %8636 = vst.msk [vmem:[%s13899_s19 + $0x68] sm:$0xff] %vm8622_vm8, %v10808_v20  ;;  %v8484_v40 = vpop.f32.mrb[15].mxu0 }
 0x42d   : > { %8635 = vst.msk [vmem:[%s13899_s19 + $0x60] sm:$0xff] %vm8622_vm8, %v10809_v0  ;;  %v10171_v12 = vpop.f32.mrb[14].mxu1 }
 0x42e   : > { %v10810_v54 = vadd.f32 %v10771_v62, %v10171_v12  ;;  %v4747_v2 = vpop.f32.mrb[15].mxu1 }
 0x42f   : > { %v10811_v1 = vadd.f32 %v8484_v40, %v4747_v2  ;;  %v10774_v59 = vpop.f32.mrb[16].mxu0 }
 0x430   : > { %8638 = vst.msk [vmem:[%s13899_s19 + $0x78] sm:$0xff] %vm8622_vm8, %v10810_v54  ;;  %v8496_v50 = vpop.f32.mrb[17].mxu0 }
 0x431   : > { %8637 = vst.msk [vmem:[%s13899_s19 + $0x70] sm:$0xff] %vm8622_vm8, %v10811_v1  ;;  %v10174_v57 = vpop.f32.mrb[16].mxu1 }
 0x432   : > { %v10812_v7 = vadd.f32 %v10774_v59, %v10174_v57  ;;  %v4759_v56 = vpop.f32.mrb[17].mxu1 }
 0x433   : > { %v10813_v44 = vadd.f32 %v8496_v50, %v4759_v56  ;;  %v10777_v52 = vpop.f32.mrb[18].mxu0 }
 0x434   : > { %8640 = vst.msk [vmem:[%s13899_s19 + $0x88] sm:$0xff] %vm8622_vm8, %v10812_v7  ;;  %v8508_v14 = vpop.f32.mrb[19].mxu0 }
 0x435   : > { %8639 = vst.msk [vmem:[%s13899_s19 + $0x80] sm:$0xff] %vm8622_vm8, %v10813_v44  ;;  %v10177_v37 = vpop.f32.mrb[18].mxu1 }
 0x436   : > { %v10814_v16 = vadd.f32 %v10777_v52, %v10177_v37  ;;  %v4771_v51 = vpop.f32.mrb[19].mxu1 }
 0x437   : > { %v10815_v10 = vadd.f32 %v8508_v14, %v4771_v51  ;;  %v10780_v8 = vpop.f32.mrb[20].mxu0 }
 0x438   : > { %8642 = vst.msk [vmem:[%s13899_s19 + $0x98] sm:$0xff] %vm8622_vm8, %v10814_v16  ;;  %v8520_v36 = vpop.f32.mrb[21].mxu0 }
 0x439   : > { %8641 = vst.msk [vmem:[%s13899_s19 + $0x90] sm:$0xff] %vm8622_vm8, %v10815_v10  ;;  %v10180_v34 = vpop.f32.mrb[20].mxu1 }
 0x43a   : > { %v10816_v32 = vadd.f32 %v10780_v8, %v10180_v34  ;;  %v4783_v41 = vpop.f32.mrb[21].mxu1 }
 0x43b   : > { %v10817_v47 = vadd.f32 %v8520_v36, %v4783_v41  ;;  %v10783_v27 = vpop.f32.mrb[22].mxu0 }
 0x43c   : > { %8644 = vst.msk [vmem:[%s13899_s19 + $0xa8] sm:$0xff] %vm8622_vm8, %v10816_v32  ;;  %v8532_v28 = vpop.f32.mrb[23].mxu0 }
 0x43d   : > { %8643 = vst.msk [vmem:[%s13899_s19 + $0xa0] sm:$0xff] %vm8622_vm8, %v10817_v47  ;;  %v10183_v45 = vpop.f32.mrb[22].mxu1 }
 0x43e   : > { %v10818_v46 = vadd.f32 %v10783_v27, %v10183_v45  ;;  %v4795_v19 = vpop.f32.mrb[23].mxu1 }
 0x43f   : > { %v10819_v21 = vadd.f32 %v8532_v28, %v4795_v19  ;;  %v10786_v22 = vpop.f32.mrb[24].mxu0 }
 0x440   : > { %8646 = vst.msk [vmem:[%s13899_s19 + $0xb8] sm:$0xff] %vm8622_vm8, %v10818_v46  ;;  %v8544_v43 = vpop.f32.mrb[25].mxu0 }
 0x441   : > { %8645 = vst.msk [vmem:[%s13899_s19 + $0xb0] sm:$0xff] %vm8622_vm8, %v10819_v21  ;;  %v10186_v29 = vpop.f32.mrb[24].mxu1 }
 0x442   : > { %v10820_v38 = vadd.f32 %v10786_v22, %v10186_v29  ;;  %v4807_v33 = vpop.f32.mrb[25].mxu1 }
 0x443   : > { %v10821_v63 = vadd.f32 %v8544_v43, %v4807_v33  ;;  %v10789_v60 = vpop.f32.mrb[26].mxu0 }
 0x444   : > { %8648 = vst.msk [vmem:[%s13899_s19 + $0xc8] sm:$0xff] %vm8622_vm8, %v10820_v38  ;;  %v8556_v23 = vpop.f32.mrb[27].mxu0 }
 0x445   : > { %8647 = vst.msk [vmem:[%s13899_s19 + $0xc0] sm:$0xff] %vm8622_vm8, %v10821_v63  ;;  %v10189_v30 = vpop.f32.mrb[26].mxu1 }
 0x446   : > { %v10822_v48 = vadd.f32 %v10789_v60, %v10189_v30  ;;  %v4819_v17 = vpop.f32.mrb[27].mxu1 }
 0x447   : > { %v10823_v31 = vadd.f32 %v8556_v23, %v4819_v17  ;;  %v10792_v11 = vpop.f32.mrb[28].mxu0 }
 0x448   : > { %8650 = vst.msk [vmem:[%s13899_s19 + $0xd8] sm:$0xff] %vm8622_vm8, %v10822_v48  ;;  %v8568_v49 = vpop.f32.mrb[29].mxu0 }
 0x449   : > { %8649 = vst.msk [vmem:[%s13899_s19 + $0xd0] sm:$0xff] %vm8622_vm8, %v10823_v31  ;;  %v10192_v3 = vpop.f32.mrb[28].mxu1 }
 0x44a   : > { %v10824_v6 = vadd.f32 %v10792_v11, %v10192_v3  ;;  %v4831_v4 = vpop.f32.mrb[29].mxu1 }
 0x44b   : > { %v10825_v42 = vadd.f32 %v8568_v49, %v4831_v4  ;;  %v10795_v25 = vpop.f32.mrb[30].mxu0 }
 0x44c   : > { %8652 = vst.msk [vmem:[%s13899_s19 + $0xe8] sm:$0xff] %vm8622_vm8, %v10824_v6  ;;  %v8580_v18 = vpop.f32.mrb[31].mxu0 }
 0x44d   : > { %8651 = vst.msk [vmem:[%s13899_s19 + $0xe0] sm:$0xff] %vm8622_vm8, %v10825_v42  ;;  %v10195_v15 = vpop.f32.mrb[30].mxu1 }
 0x44e   : > { %v10826_v5 = vadd.f32 %v10795_v25, %v10195_v15  ;;  %v4843_v13 = vpop.f32.mrb[31].mxu1 }
 0x44f   : > { %v10827_v55 = vadd.f32 %v8580_v18, %v4843_v13 }
 0x450   : > { %8654 = vst.msk [vmem:[%s13899_s19 + $0xf8] sm:$0xff] %vm8622_vm8, %v10826_v5 }
 0x451   : > { %8653 = vst.msk [vmem:[%s13899_s19 + $0xf0] sm:$0xff] %vm8622_vm8, %v10827_v55 }
 0x452 PF: > { %s14_s17 = sadd.s32 1, %s11581_s17   ;;  %s15251_s15 = smov %s11577_s16 }
 0x453   : > { %p11_p5 = scmp.ge.s32.totalorder %s14_s17, 4   ;;  %s15252_s16 = smov %s15254_s18 }
 0x455   :  { %13 = sbr.rel (!%p11_p5) target bundleno = 2 (0x2), region = 75 }

</bundles_post_ra>
